<compile_context>
chip_gen: v7x
topology: tpu7x:2x2x1
jax: 0.10.0
libtpu: 0.0.40
codegen_flags: <defaults>
</compile_context>

<pallas_src>
import jax
import jax.numpy as jnp
from jax import lax
from jax.experimental import pallas as pl
from jax.experimental.pallas import tpu as pltpu

# ---- small, module-consistent hyperparameters ------------------------------
IDIM = 8
ODIM = 8
BN_DIM = 16
HIDDEN = 32
N_LAYER = 2
KERNEL = 7
DILATION = 2
DW_PAD = DILATION * (KERNEL // 2)   # 'same' padding of the depthwise conv (=6)
B = 2
T = 16

ROWPAD = 8      # sublane-aligned halo rows on each side (>= max conv padding)
OPAD = 128      # lane-dense padded output channel count (sliced to ODIM outside)

_PREC = lax.Precision.HIGHEST


# ---- in-kernel math helpers -------------------------------------------------
def _erf(x):
    # TODO(synk): switch to lax.erf (EUP slot) once a Mosaic lowering is
    # guaranteed; nn.GELU() is the exact-erf GELU and this A&S 7.1.26
    # polynomial matches it to ~1.5e-7 absolute error.
    a1, a2, a3, a4, a5 = (0.254829592, -0.284496736, 1.421413741,
                          -1.453152027, 1.061405429)
    p = 0.3275911
    s = jnp.where(x >= 0.0, 1.0, -1.0)
    z = jnp.abs(x)
    t = 1.0 / (1.0 + p * z)
    poly = t * (a1 + t * (a2 + t * (a3 + t * (a4 + t * a5))))
    return s * (1.0 - poly * jnp.exp(-z * z))


def _gelu(x):
    return 0.5 * x * (1.0 + _erf(x * 0.7071067811865476))


# ---- fused decoder kernel ----------------------------------------------------
def _dvae_decoder_kernel(x_ref,
                         w_in1_ref, b_in1_ref, w_in2_ref, b_in2_ref,
                         dww_ref, dwb_ref, lng_ref, lnb_ref,
                         w1_ref, b1_ref, w2_ref, b2_ref, gamma_ref,
                         w_out_ref,
                         o_ref,
                         pad_a, cat_a, pad_b, cat_b, pad_h):
    # Zero the halo rows once; only the [ROWPAD, ROWPAD+T) window is rewritten.
    pad_a[...] = jnp.zeros_like(pad_a)
    pad_b[...] = jnp.zeros_like(pad_b)
    pad_h[...] = jnp.zeros_like(pad_h)

    # ---- conv_in: Conv1d(idim->bn,3,p=1) -> GELU -> Conv1d(bn->hidden,3,p=1)
    # Taps are folded into the contraction: (T, 3*Cin) @ (3*Cin, Cout).
    pad_a[ROWPAD:ROWPAD + T, :] = x_ref[0]
    for k in range(3):
        s = ROWPAD + k - 1
        cat_a[:, k * IDIM:(k + 1) * IDIM] = pad_a[s:s + T, :]
    h = jnp.dot(cat_a[...], w_in1_ref[...],
                preferred_element_type=jnp.float32, precision=_PREC)
    h = _gelu(h + b_in1_ref[...])

    pad_b[ROWPAD:ROWPAD + T, :] = h
    for k in range(3):
        s = ROWPAD + k - 1
        cat_b[:, k * BN_DIM:(k + 1) * BN_DIM] = pad_b[s:s + T, :]
    x = jnp.dot(cat_b[...], w_in2_ref[...],
                preferred_element_type=jnp.float32, precision=_PREC) + b_in2_ref[...]

    # ---- N_LAYER ConvNeXt blocks (statically unrolled; weights stacked on axis 0)
    for l in range(N_LAYER):
        # depthwise Conv1d(hidden, hidden, k=7, dil=2, groups=hidden, 'same')
        pad_h[ROWPAD:ROWPAD + T, :] = x
        dww = dww_ref[l]                                    # (KERNEL, HIDDEN)
        h = jnp.zeros((T, HIDDEN), jnp.float32)
        for k in range(KERNEL):
            s = ROWPAD + k * DILATION - DW_PAD
            h = h + pad_h[s:s + T, :] * dww[k:k + 1, :]
        h = h + dwb_ref[l]
        # LayerNorm over channels, eps=1e-6 (biased variance, like PyTorch)
        mu = jnp.mean(h, axis=-1, keepdims=True)
        hc = h - mu
        var = jnp.mean(hc * hc, axis=-1, keepdims=True)
        h = hc * lax.rsqrt(var + 1e-6)
        h = h * lng_ref[l] + lnb_ref[l]
        # pwconv1 -> GELU -> pwconv2 -> layer-scale -> residual
        z = jnp.dot(h, w1_ref[l],
                    preferred_element_type=jnp.float32, precision=_PREC) + b1_ref[l]
        z = _gelu(z)
        y = jnp.dot(z, w2_ref[l],
                    preferred_element_type=jnp.float32, precision=_PREC) + b2_ref[l]
        x = x + gamma_ref[l] * y

    # ---- conv_out: Conv1d(hidden, odim, 1, bias=False); weight lane-padded to
    #      OPAD=128 so the HBM store is a full-lane, unmasked vst.
    o_ref[0] = jnp.dot(x, w_out_ref[...],
                       preferred_element_type=jnp.float32, precision=_PREC)


# ---- pallas_call wrapper -----------------------------------------------------
def _full(a):
    nd = a.ndim
    return pl.BlockSpec(a.shape, lambda b, nd=nd: (0,) * nd)


def dvae_decoder_forward(inp, pk):
    """inp: (B, T, idim) -> (B, T, odim), matching DVAEDecoder.forward."""
    Bn, Tn, _ = inp.shape
    assert Tn == T
    weights = (pk["w_in1"], pk["b_in1"], pk["w_in2"], pk["b_in2"],
               pk["dw_w"], pk["dw_b"], pk["ln_g"], pk["ln_b"],
               pk["w1"], pk["b1"], pk["w2"], pk["b2"], pk["gamma"],
               pk["w_out"])
    out = pl.pallas_call(
        _dvae_decoder_kernel,
        out_shape=jax.ShapeDtypeStruct((Bn, Tn, OPAD), jnp.float32),
        grid=(Bn,),
        in_specs=[pl.BlockSpec((1, Tn, IDIM), lambda b: (b, 0, 0))]
                 + [_full(w) for w in weights],
        out_specs=pl.BlockSpec((1, Tn, OPAD), lambda b: (b, 0, 0)),
        scratch_shapes=[
            pltpu.VMEM((T + 2 * ROWPAD, IDIM), jnp.float32),     # pad_a
            pltpu.VMEM((T, 3 * IDIM), jnp.float32),              # cat_a
            pltpu.VMEM((T + 2 * ROWPAD, BN_DIM), jnp.float32),   # pad_b
            pltpu.VMEM((T, 3 * BN_DIM), jnp.float32),            # cat_b
            pltpu.VMEM((T + 2 * ROWPAD, HIDDEN), jnp.float32),   # pad_h
        ],
        compiler_params=pltpu.CompilerParams(
            dimension_semantics=("parallel",)),   # 2-way split -> both v7x TCs
    )(inp, *weights)
    return out[..., :ODIM]


# ---- deterministic synthetic parameters (shapes from __init__) --------------
def init_params(key):
    keys = jax.random.split(key, 6 + N_LAYER)

    def nrm(k, shape, scale=0.1):
        return scale * jax.random.normal(k, shape, jnp.float32)

    p = {
        # conv_in[0]: Conv1d(idim, bn, 3) -> stored as (K, Cin, Cout)
        "w_in1": nrm(keys[0], (3, IDIM, BN_DIM)),
        "b_in1": nrm(keys[1], (1, BN_DIM)),
        # conv_in[2]: Conv1d(bn, hidden, 3)
        "w_in2": nrm(keys[2], (3, BN_DIM, HIDDEN)),
        "b_in2": nrm(keys[3], (1, HIDDEN)),
        # conv_out: Conv1d(hidden, odim, 1, bias=False) -> (Cin, Cout)
        "w_out": nrm(keys[4], (HIDDEN, ODIM)),
        "blocks": [],
    }
    for i in range(N_LAYER):
        bk = jax.random.split(keys[5 + i], 9)
        p["blocks"].append(dict(
            dw_w=nrm(bk[0], (KERNEL, HIDDEN)),       # depthwise taps (K, C)
            dw_b=nrm(bk[1], (1, HIDDEN)),
            ln_g=1.0 + nrm(bk[2], (1, HIDDEN)),
            ln_b=nrm(bk[3], (1, HIDDEN)),
            w1=nrm(bk[4], (HIDDEN, 4 * HIDDEN)),     # pwconv1 (Linear) as x @ W
            b1=nrm(bk[5], (1, 4 * HIDDEN)),
            w2=nrm(bk[6], (4 * HIDDEN, HIDDEN)),     # pwconv2
            b2=nrm(bk[7], (1, HIDDEN)),
            gamma=1e-6 + nrm(bk[8], (1, HIDDEN)),    # layer-scale
        ))
    return p


def pack_params(p):
    """One-time weight prep for the fused kernel: fold conv taps into the
    contraction dim, stack per-layer ConvNeXt weights, lane-pad conv_out."""
    stk = lambda k: jnp.stack([blk[k] for blk in p["blocks"]], axis=0)
    w_out_pad = jnp.zeros((HIDDEN, OPAD), jnp.float32).at[:, :ODIM].set(p["w_out"])
    return dict(
        w_in1=p["w_in1"].reshape(3 * IDIM, BN_DIM),
        b_in1=p["b_in1"],
        w_in2=p["w_in2"].reshape(3 * BN_DIM, HIDDEN),
        b_in2=p["b_in2"],
        dw_w=stk("dw_w"), dw_b=stk("dw_b"),
        ln_g=stk("ln_g"), ln_b=stk("ln_b"),
        w1=stk("w1"), b1=stk("b1"),
        w2=stk("w2"), b2=stk("b2"),
        gamma=stk("gamma"),
        w_out=w_out_pad,
    )


# ---- plain-JAX reference (independent math path, exact erf GELU) ------------
def reference_forward(inp, p):
    def conv1d(x_nct, w_kio, b, dilation=1, groups=1):
        w = jnp.transpose(w_kio, (2, 1, 0))          # (O, I/g, K) PyTorch layout
        k = w.shape[-1]
        pad = dilation * (k // 2)
        y = lax.conv_general_dilated(
            x_nct, w, window_strides=(1,), padding=[(pad, pad)],
            rhs_dilation=(dilation,),
            dimension_numbers=("NCH", "OIH", "NCH"),
            feature_group_count=groups, precision=_PREC)
        if b is not None:
            y = y + b[0][None, :, None]
        return y

    x = jnp.transpose(inp, (0, 2, 1))                # (B, C, T)
    x = conv1d(x, p["w_in1"], p["b_in1"])
    x = jax.nn.gelu(x, approximate=False)
    x = conv1d(x, p["w_in2"], p["b_in2"])
    for blk in p["blocks"]:
        res = x
        h = conv1d(x, blk["dw_w"].reshape(KERNEL, 1, HIDDEN), blk["dw_b"],
                   dilation=DILATION, groups=HIDDEN)
        h = jnp.transpose(h, (0, 2, 1))              # (B, T, C)
        mu = h.mean(-1, keepdims=True)
        var = ((h - mu) ** 2).mean(-1, keepdims=True)
        h = (h - mu) / jnp.sqrt(var + 1e-6) * blk["ln_g"][0] + blk["ln_b"][0]
        h = jax.nn.gelu(jnp.matmul(h, blk["w1"], precision=_PREC) + blk["b1"][0],
                        approximate=False)
        h = jnp.matmul(h, blk["w2"], precision=_PREC) + blk["b2"][0]
        h = blk["gamma"][0] * h
        x = res + jnp.transpose(h, (0, 2, 1))
    x = jnp.einsum("bct,co->bot", x, p["w_out"], precision=_PREC)
    return jnp.transpose(x, (0, 2, 1))


if __name__ == "__main__":
    key = jax.random.PRNGKey(0)
    kx, kp = jax.random.split(key)
    inp = jax.random.normal(kx, (B, T, IDIM), jnp.float32)
    params = init_params(kp)
    packed = pack_params(params)

    out = dvae_decoder_forward(inp, packed)
    out = jax.block_until_ready(out)
    assert out.shape == (B, T, ODIM), out.shape

    ref = reference_forward(inp, params)
    err = float(jnp.max(jnp.abs(out - ref)))
    assert err < 2e-3, f"max abs error vs reference: {err}"

    print("KERNEL_OK")
</pallas_src>

<mosaic_0001>
module attributes {stable_mosaic.version = 11 : i64} {
  func.func @_dvae_decoder_kernel(%arg0: i32, %arg1: memref<1x16x8xf32, #tpu.memory_space<vmem>>, %arg2: memref<24x16xf32, #tpu.memory_space<vmem>>, %arg3: memref<1x16xf32, #tpu.memory_space<vmem>>, %arg4: memref<48x32xf32, #tpu.memory_space<vmem>>, %arg5: memref<1x32xf32, #tpu.memory_space<vmem>>, %arg6: memref<2x7x32xf32, #tpu.memory_space<vmem>>, %arg7: memref<2x1x32xf32, #tpu.memory_space<vmem>>, %arg8: memref<2x1x32xf32, #tpu.memory_space<vmem>>, %arg9: memref<2x1x32xf32, #tpu.memory_space<vmem>>, %arg10: memref<2x32x128xf32, #tpu.memory_space<vmem>>, %arg11: memref<2x1x128xf32, #tpu.memory_space<vmem>>, %arg12: memref<2x128x32xf32, #tpu.memory_space<vmem>>, %arg13: memref<2x1x32xf32, #tpu.memory_space<vmem>>, %arg14: memref<2x1x32xf32, #tpu.memory_space<vmem>>, %arg15: memref<32x128xf32, #tpu.memory_space<vmem>>, %arg16: memref<1x16x128xf32, #tpu.memory_space<vmem>>, %arg17: memref<32x8xf32, #tpu.memory_space<vmem>>, %arg18: memref<16x24xf32, #tpu.memory_space<vmem>>, %arg19: memref<32x16xf32, #tpu.memory_space<vmem>>, %arg20: memref<16x48xf32, #tpu.memory_space<vmem>>, %arg21: memref<32x32xf32, #tpu.memory_space<vmem>>) attributes {dimension_semantics = [#tpu.dimension_semantics<parallel>], iteration_bounds = array<i64: 2>, scalar_prefetch = 0 : i64, scratch_operands = 5 : i64, tpu.core_type = #tpu.core_type<tc>, window_params = [{transform_indices = @transform_0, window_bounds = array<i64: 1, 16, 8>}, {pipeline_mode = #tpu.pipeline_mode<synchronous>, transform_indices = @transform_1, window_bounds = array<i64: 24, 16>}, {pipeline_mode = #tpu.pipeline_mode<synchronous>, transform_indices = @transform_2, window_bounds = array<i64: 1, 16>}, {pipeline_mode = #tpu.pipeline_mode<synchronous>, transform_indices = @transform_3, window_bounds = array<i64: 48, 32>}, {pipeline_mode = #tpu.pipeline_mode<synchronous>, transform_indices = @transform_4, window_bounds = array<i64: 1, 32>}, {pipeline_mode = #tpu.pipeline_mode<synchronous>, transform_indices = @transform_5, window_bounds = array<i64: 2, 7, 32>}, {pipeline_mode = #tpu.pipeline_mode<synchronous>, transform_indices = @transform_6, window_bounds = array<i64: 2, 1, 32>}, {pipeline_mode = #tpu.pipeline_mode<synchronous>, transform_indices = @transform_7, window_bounds = array<i64: 2, 1, 32>}, {pipeline_mode = #tpu.pipeline_mode<synchronous>, transform_indices = @transform_8, window_bounds = array<i64: 2, 1, 32>}, {pipeline_mode = #tpu.pipeline_mode<synchronous>, transform_indices = @transform_9, window_bounds = array<i64: 2, 32, 128>}, {pipeline_mode = #tpu.pipeline_mode<synchronous>, transform_indices = @transform_10, window_bounds = array<i64: 2, 1, 128>}, {pipeline_mode = #tpu.pipeline_mode<synchronous>, transform_indices = @transform_11, window_bounds = array<i64: 2, 128, 32>}, {pipeline_mode = #tpu.pipeline_mode<synchronous>, transform_indices = @transform_12, window_bounds = array<i64: 2, 1, 32>}, {pipeline_mode = #tpu.pipeline_mode<synchronous>, transform_indices = @transform_13, window_bounds = array<i64: 2, 1, 32>}, {pipeline_mode = #tpu.pipeline_mode<synchronous>, transform_indices = @transform_14, window_bounds = array<i64: 32, 128>}, {transform_indices = @transform_15, window_bounds = array<i64: 1, 16, 128>}]} {
    %cst = arith.constant 0.000000e+00 : f32
    %0 = vector.broadcast %cst : f32 to vector<32x8xf32>
    %c0 = arith.constant 0 : index
    %c0_0 = arith.constant 0 : index
    %1 = vector.load %arg17[%c0, %c0_0] : memref<32x8xf32, #tpu.memory_space<vmem>>, vector<32x8xf32>
    tpu.vector_store %arg17[%c0, %c0_0], %0 {strides = array<i32>} : memref<32x8xf32, #tpu.memory_space<vmem>>, vector<32x8xf32>,
    %cst_1 = arith.constant 0.000000e+00 : f32
    %2 = vector.broadcast %cst_1 : f32 to vector<32x16xf32>
    %c0_2 = arith.constant 0 : index
    %c0_3 = arith.constant 0 : index
    %3 = vector.load %arg19[%c0_2, %c0_3] : memref<32x16xf32, #tpu.memory_space<vmem>>, vector<32x16xf32>
    tpu.vector_store %arg19[%c0_2, %c0_3], %2 {strides = array<i32>} : memref<32x16xf32, #tpu.memory_space<vmem>>, vector<32x16xf32>,
    %cst_4 = arith.constant 0.000000e+00 : f32
    %4 = vector.broadcast %cst_4 : f32 to vector<32x32xf32>
    %c0_5 = arith.constant 0 : index
    %c0_6 = arith.constant 0 : index
    %5 = vector.load %arg21[%c0_5, %c0_6] : memref<32x32xf32, #tpu.memory_space<vmem>>, vector<32x32xf32>
    tpu.vector_store %arg21[%c0_5, %c0_6], %4 {strides = array<i32>} : memref<32x32xf32, #tpu.memory_space<vmem>>, vector<32x32xf32>,
    %c0_7 = arith.constant 0 : index
    %c0_8 = arith.constant 0 : index
    %c0_9 = arith.constant 0 : index
    %6 = vector.load %arg1[%c0_7, %c0_8, %c0_9] : memref<1x16x8xf32, #tpu.memory_space<vmem>>, vector<1x16x8xf32>
    %7 = vector.shape_cast %6 : vector<1x16x8xf32> to vector<16x8xf32>
    %c8 = arith.constant 8 : index
    %c0_10 = arith.constant 0 : index
    %8 = vector.load %arg17[%c8, %c0_10] : memref<32x8xf32, #tpu.memory_space<vmem>>, vector<16x8xf32>
    tpu.vector_store %arg17[%c8, %c0_10], %7 {strides = array<i32>} : memref<32x8xf32, #tpu.memory_space<vmem>>, vector<16x8xf32>,
    %c7 = arith.constant 7 : index
    %c0_11 = arith.constant 0 : index
    %9 = vector.load %arg17[%c7, %c0_11] : memref<32x8xf32, #tpu.memory_space<vmem>>, vector<16x8xf32>
    %c0_12 = arith.constant 0 : index
    %c0_13 = arith.constant 0 : index
    %10 = vector.load %arg18[%c0_12, %c0_13] : memref<16x24xf32, #tpu.memory_space<vmem>>, vector<16x8xf32>
    tpu.vector_store %arg18[%c0_12, %c0_13], %9 {strides = array<i32>} : memref<16x24xf32, #tpu.memory_space<vmem>>, vector<16x8xf32>,
    %c8_14 = arith.constant 8 : index
    %c0_15 = arith.constant 0 : index
    %11 = vector.load %arg17[%c8_14, %c0_15] : memref<32x8xf32, #tpu.memory_space<vmem>>, vector<16x8xf32>
    %c0_16 = arith.constant 0 : index
    %c8_17 = arith.constant 8 : index
    %12 = vector.load %arg18[%c0_16, %c8_17] : memref<16x24xf32, #tpu.memory_space<vmem>>, vector<16x8xf32>
    tpu.vector_store %arg18[%c0_16, %c8_17], %11 {strides = array<i32>} : memref<16x24xf32, #tpu.memory_space<vmem>>, vector<16x8xf32>,
    %c9 = arith.constant 9 : index
    %c0_18 = arith.constant 0 : index
    %13 = vector.load %arg17[%c9, %c0_18] : memref<32x8xf32, #tpu.memory_space<vmem>>, vector<16x8xf32>
    %c0_19 = arith.constant 0 : index
    %c16 = arith.constant 16 : index
    %14 = vector.load %arg18[%c0_19, %c16] : memref<16x24xf32, #tpu.memory_space<vmem>>, vector<16x8xf32>
    tpu.vector_store %arg18[%c0_19, %c16], %13 {strides = array<i32>} : memref<16x24xf32, #tpu.memory_space<vmem>>, vector<16x8xf32>,
    %c0_20 = arith.constant 0 : index
    %c0_21 = arith.constant 0 : index
    %15 = vector.load %arg18[%c0_20, %c0_21] : memref<16x24xf32, #tpu.memory_space<vmem>>, vector<16x24xf32>
    %c0_22 = arith.constant 0 : index
    %c0_23 = arith.constant 0 : index
    %16 = vector.load %arg2[%c0_22, %c0_23] : memref<24x16xf32, #tpu.memory_space<vmem>>, vector<24x16xf32>
    %cst_24 = arith.constant dense<0.000000e+00> : vector<16x16xf32>
    %17 = tpu.matmul %15, %16, %cst_24 {dimension_numbers = #tpu.dot_dimension_numbers<[1], [0], [0], [1], [0, 0, 1, 1], [], []>, precision = #tpu.contract_precision<fp32>} : vector<16x24xf32>, vector<24x16xf32>, vector<16x16xf32> -> vector<16x16xf32>
    %c0_25 = arith.constant 0 : index
    %c0_26 = arith.constant 0 : index
    %18 = vector.load %arg3[%c0_25, %c0_26] : memref<1x16xf32, #tpu.memory_space<vmem>>, vector<1x16xf32>
    %19 = vector.broadcast %18 : vector<1x16xf32> to vector<16x16xf32>
    %20 = arith.addf %17, %19 : vector<16x16xf32>
    %cst_27 = arith.constant 5.000000e-01 : f32
    %21 = vector.broadcast %cst_27 : f32 to vector<16x16xf32>
    %22 = arith.mulf %21, %20 : vector<16x16xf32>
    %cst_28 = arith.constant 0.707106769 : f32
    %23 = vector.broadcast %cst_28 : f32 to vector<16x16xf32>
    %24 = arith.mulf %20, %23 : vector<16x16xf32>
    %cst_29 = arith.constant 0.000000e+00 : f32
    %25 = vector.broadcast %cst_29 : f32 to vector<16x16xf32>
    %26 = arith.cmpf oge, %24, %25 : vector<16x16xf32>
    %cst_30 = arith.constant 1.000000e+00 : f32
    %cst_31 = arith.constant -1.000000e+00 : f32
    %27 = vector.broadcast %cst_30 : f32 to vector<16x16xf32>
    %28 = vector.broadcast %cst_31 : f32 to vector<16x16xf32>
    %29 = arith.select %26, %27, %28 : vector<16x16xi1>, vector<16x16xf32>
    %30 = math.absf %24 : vector<16x16xf32>
    %cst_32 = arith.constant 0.327591091 : f32
    %31 = vector.broadcast %cst_32 : f32 to vector<16x16xf32>
    %32 = arith.mulf %31, %30 : vector<16x16xf32>
    %cst_33 = arith.constant 1.000000e+00 : f32
    %33 = vector.broadcast %cst_33 : f32 to vector<16x16xf32>
    %34 = arith.addf %33, %32 : vector<16x16xf32>
    %cst_34 = arith.constant 1.000000e+00 : f32
    %35 = vector.broadcast %cst_34 : f32 to vector<16x16xf32>
    %36 = arith.divf %35, %34 : vector<16x16xf32>
    %cst_35 = arith.constant 1.06140542 : f32
    %37 = vector.broadcast %cst_35 : f32 to vector<16x16xf32>
    %38 = arith.mulf %36, %37 : vector<16x16xf32>
    %cst_36 = arith.constant -1.45315206 : f32
    %39 = vector.broadcast %cst_36 : f32 to vector<16x16xf32>
    %40 = arith.addf %39, %38 : vector<16x16xf32>
    %41 = arith.mulf %36, %40 : vector<16x16xf32>
    %cst_37 = arith.constant 1.42141378 : f32
    %42 = vector.broadcast %cst_37 : f32 to vector<16x16xf32>
    %43 = arith.addf %42, %41 : vector<16x16xf32>
    %44 = arith.mulf %36, %43 : vector<16x16xf32>
    %cst_38 = arith.constant -0.284496725 : f32
    %45 = vector.broadcast %cst_38 : f32 to vector<16x16xf32>
    %46 = arith.addf %45, %44 : vector<16x16xf32>
    %47 = arith.mulf %36, %46 : vector<16x16xf32>
    %cst_39 = arith.constant 0.254829586 : f32
    %48 = vector.broadcast %cst_39 : f32 to vector<16x16xf32>
    %49 = arith.addf %48, %47 : vector<16x16xf32>
    %50 = arith.mulf %36, %49 : vector<16x16xf32>
    %cst_40 = arith.constant 0.000000e+00 : f32
    %51 = vector.broadcast %cst_40 : f32 to vector<16x16xf32>
    %52 = arith.subf %51, %30 : vector<16x16xf32>
    %53 = arith.mulf %52, %30 : vector<16x16xf32>
    %54 = math.exp %53 : vector<16x16xf32>
    %55 = arith.mulf %50, %54 : vector<16x16xf32>
    %cst_41 = arith.constant 1.000000e+00 : f32
    %56 = vector.broadcast %cst_41 : f32 to vector<16x16xf32>
    %57 = arith.subf %56, %55 : vector<16x16xf32>
    %58 = arith.mulf %29, %57 : vector<16x16xf32>
    %cst_42 = arith.constant 1.000000e+00 : f32
    %59 = vector.broadcast %cst_42 : f32 to vector<16x16xf32>
    %60 = arith.addf %59, %58 : vector<16x16xf32>
    %61 = arith.mulf %22, %60 : vector<16x16xf32>
    %c8_43 = arith.constant 8 : index
    %c0_44 = arith.constant 0 : index
    %62 = vector.load %arg19[%c8_43, %c0_44] : memref<32x16xf32, #tpu.memory_space<vmem>>, vector<16x16xf32>
    tpu.vector_store %arg19[%c8_43, %c0_44], %61 {strides = array<i32>} : memref<32x16xf32, #tpu.memory_space<vmem>>, vector<16x16xf32>,
    %c7_45 = arith.constant 7 : index
    %c0_46 = arith.constant 0 : index
    %63 = vector.load %arg19[%c7_45, %c0_46] : memref<32x16xf32, #tpu.memory_space<vmem>>, vector<16x16xf32>
    %c0_47 = arith.constant 0 : index
    %c0_48 = arith.constant 0 : index
    %64 = vector.load %arg20[%c0_47, %c0_48] : memref<16x48xf32, #tpu.memory_space<vmem>>, vector<16x16xf32>
    tpu.vector_store %arg20[%c0_47, %c0_48], %63 {strides = array<i32>} : memref<16x48xf32, #tpu.memory_space<vmem>>, vector<16x16xf32>,
    %c8_49 = arith.constant 8 : index
    %c0_50 = arith.constant 0 : index
    %65 = vector.load %arg19[%c8_49, %c0_50] : memref<32x16xf32, #tpu.memory_space<vmem>>, vector<16x16xf32>
    %c0_51 = arith.constant 0 : index
    %c16_52 = arith.constant 16 : index
    %66 = vector.load %arg20[%c0_51, %c16_52] : memref<16x48xf32, #tpu.memory_space<vmem>>, vector<16x16xf32>
    tpu.vector_store %arg20[%c0_51, %c16_52], %65 {strides = array<i32>} : memref<16x48xf32, #tpu.memory_space<vmem>>, vector<16x16xf32>,
    %c9_53 = arith.constant 9 : index
    %c0_54 = arith.constant 0 : index
    %67 = vector.load %arg19[%c9_53, %c0_54] : memref<32x16xf32, #tpu.memory_space<vmem>>, vector<16x16xf32>
    %c0_55 = arith.constant 0 : index
    %c32 = arith.constant 32 : index
    %68 = vector.load %arg20[%c0_55, %c32] : memref<16x48xf32, #tpu.memory_space<vmem>>, vector<16x16xf32>
    tpu.vector_store %arg20[%c0_55, %c32], %67 {strides = array<i32>} : memref<16x48xf32, #tpu.memory_space<vmem>>, vector<16x16xf32>,
    %c0_56 = arith.constant 0 : index
    %c0_57 = arith.constant 0 : index
    %69 = vector.load %arg20[%c0_56, %c0_57] : memref<16x48xf32, #tpu.memory_space<vmem>>, vector<16x48xf32>
    %c0_58 = arith.constant 0 : index
    %c0_59 = arith.constant 0 : index
    %70 = vector.load %arg4[%c0_58, %c0_59] : memref<48x32xf32, #tpu.memory_space<vmem>>, vector<48x32xf32>
    %cst_60 = arith.constant dense<0.000000e+00> : vector<16x32xf32>
    %71 = tpu.matmul %69, %70, %cst_60 {dimension_numbers = #tpu.dot_dimension_numbers<[1], [0], [0], [1], [0, 0, 1, 1], [], []>, precision = #tpu.contract_precision<fp32>} : vector<16x48xf32>, vector<48x32xf32>, vector<16x32xf32> -> vector<16x32xf32>
    %c0_61 = arith.constant 0 : index
    %c0_62 = arith.constant 0 : index
    %72 = vector.load %arg5[%c0_61, %c0_62] : memref<1x32xf32, #tpu.memory_space<vmem>>, vector<1x32xf32>
    %73 = vector.broadcast %72 : vector<1x32xf32> to vector<16x32xf32>
    %74 = arith.addf %71, %73 : vector<16x32xf32>
    %c8_63 = arith.constant 8 : index
    %c0_64 = arith.constant 0 : index
    %75 = vector.load %arg21[%c8_63, %c0_64] : memref<32x32xf32, #tpu.memory_space<vmem>>, vector<16x32xf32>
    tpu.vector_store %arg21[%c8_63, %c0_64], %74 {strides = array<i32>} : memref<32x32xf32, #tpu.memory_space<vmem>>, vector<16x32xf32>,
    %c0_65 = arith.constant 0 : index
    %c0_66 = arith.constant 0 : index
    %c0_67 = arith.constant 0 : index
    %76 = vector.load %arg6[%c0_65, %c0_66, %c0_67] : memref<2x7x32xf32, #tpu.memory_space<vmem>>, vector<1x7x32xf32>
    %77 = vector.shape_cast %76 : vector<1x7x32xf32> to vector<7x32xf32>
    %cst_68 = arith.constant 0.000000e+00 : f32
    %78 = vector.broadcast %cst_68 : f32 to vector<16x32xf32>
    %c2 = arith.constant 2 : index
    %c0_69 = arith.constant 0 : index
    %79 = vector.load %arg21[%c2, %c0_69] : memref<32x32xf32, #tpu.memory_space<vmem>>, vector<16x32xf32>
    %80 = vector.extract_strided_slice %77 {offsets = [0, 0], sizes = [1, 32], strides = [1, 1]} : vector<7x32xf32> to vector<1x32xf32>
    %81 = vector.broadcast %80 : vector<1x32xf32> to vector<16x32xf32>
    %82 = arith.mulf %79, %81 : vector<16x32xf32>
    %83 = arith.addf %78, %82 : vector<16x32xf32>
    %c4 = arith.constant 4 : index
    %c0_70 = arith.constant 0 : index
    %84 = vector.load %arg21[%c4, %c0_70] : memref<32x32xf32, #tpu.memory_space<vmem>>, vector<16x32xf32>
    %85 = vector.extract_strided_slice %77 {offsets = [1, 0], sizes = [1, 32], strides = [1, 1]} : vector<7x32xf32> to vector<1x32xf32>
    %86 = vector.broadcast %85 : vector<1x32xf32> to vector<16x32xf32>
    %87 = arith.mulf %84, %86 : vector<16x32xf32>
    %88 = arith.addf %83, %87 : vector<16x32xf32>
    %c6 = arith.constant 6 : index
    %c0_71 = arith.constant 0 : index
    %89 = vector.load %arg21[%c6, %c0_71] : memref<32x32xf32, #tpu.memory_space<vmem>>, vector<16x32xf32>
    %90 = vector.extract_strided_slice %77 {offsets = [2, 0], sizes = [1, 32], strides = [1, 1]} : vector<7x32xf32> to vector<1x32xf32>
    %91 = vector.broadcast %90 : vector<1x32xf32> to vector<16x32xf32>
    %92 = arith.mulf %89, %91 : vector<16x32xf32>
    %93 = arith.addf %88, %92 : vector<16x32xf32>
    %c8_72 = arith.constant 8 : index
    %c0_73 = arith.constant 0 : index
    %94 = vector.load %arg21[%c8_72, %c0_73] : memref<32x32xf32, #tpu.memory_space<vmem>>, vector<16x32xf32>
    %95 = vector.extract_strided_slice %77 {offsets = [3, 0], sizes = [1, 32], strides = [1, 1]} : vector<7x32xf32> to vector<1x32xf32>
    %96 = vector.broadcast %95 : vector<1x32xf32> to vector<16x32xf32>
    %97 = arith.mulf %94, %96 : vector<16x32xf32>
    %98 = arith.addf %93, %97 : vector<16x32xf32>
    %c10 = arith.constant 10 : index
    %c0_74 = arith.constant 0 : index
    %99 = vector.load %arg21[%c10, %c0_74] : memref<32x32xf32, #tpu.memory_space<vmem>>, vector<16x32xf32>
    %100 = vector.extract_strided_slice %77 {offsets = [4, 0], sizes = [1, 32], strides = [1, 1]} : vector<7x32xf32> to vector<1x32xf32>
    %101 = vector.broadcast %100 : vector<1x32xf32> to vector<16x32xf32>
    %102 = arith.mulf %99, %101 : vector<16x32xf32>
    %103 = arith.addf %98, %102 : vector<16x32xf32>
    %c12 = arith.constant 12 : index
    %c0_75 = arith.constant 0 : index
    %104 = vector.load %arg21[%c12, %c0_75] : memref<32x32xf32, #tpu.memory_space<vmem>>, vector<16x32xf32>
    %105 = vector.extract_strided_slice %77 {offsets = [5, 0], sizes = [1, 32], strides = [1, 1]} : vector<7x32xf32> to vector<1x32xf32>
    %106 = vector.broadcast %105 : vector<1x32xf32> to vector<16x32xf32>
    %107 = arith.mulf %104, %106 : vector<16x32xf32>
    %108 = arith.addf %103, %107 : vector<16x32xf32>
    %c14 = arith.constant 14 : index
    %c0_76 = arith.constant 0 : index
    %109 = vector.load %arg21[%c14, %c0_76] : memref<32x32xf32, #tpu.memory_space<vmem>>, vector<16x32xf32>
    %110 = vector.extract_strided_slice %77 {offsets = [6, 0], sizes = [1, 32], strides = [1, 1]} : vector<7x32xf32> to vector<1x32xf32>
    %111 = vector.broadcast %110 : vector<1x32xf32> to vector<16x32xf32>
    %112 = arith.mulf %109, %111 : vector<16x32xf32>
    %113 = arith.addf %108, %112 : vector<16x32xf32>
    %c0_77 = arith.constant 0 : index
    %c0_78 = arith.constant 0 : index
    %c0_79 = arith.constant 0 : index
    %114 = vector.load %arg7[%c0_77, %c0_78, %c0_79] : memref<2x1x32xf32, #tpu.memory_space<vmem>>, vector<1x1x32xf32>
    %115 = vector.shape_cast %114 : vector<1x1x32xf32> to vector<1x32xf32>
    %116 = vector.broadcast %115 : vector<1x32xf32> to vector<16x32xf32>
    %117 = arith.addf %113, %116 : vector<16x32xf32>
    %cst_80 = arith.constant dense<0.000000e+00> : vector<16xf32>
    %118 = vector.multi_reduction <add>, %117, %cst_80 [1] : vector<16x32xf32> to vector<16xf32>
    %119 = vector.shape_cast %118 : vector<16xf32> to vector<16x1xf32>
    %cst_81 = arith.constant 3.200000e+01 : f32
    %120 = vector.broadcast %cst_81 : f32 to vector<16x1xf32>
    %121 = arith.divf %119, %120 : vector<16x1xf32>
    %122 = vector.broadcast %121 : vector<16x1xf32> to vector<16x32xf32>
    %123 = arith.subf %117, %122 : vector<16x32xf32>
    %124 = arith.mulf %123, %123 : vector<16x32xf32>
    %cst_82 = arith.constant dense<0.000000e+00> : vector<16xf32>
    %125 = vector.multi_reduction <add>, %124, %cst_82 [1] : vector<16x32xf32> to vector<16xf32>
    %126 = vector.shape_cast %125 : vector<16xf32> to vector<16x1xf32>
    %cst_83 = arith.constant 3.200000e+01 : f32
    %127 = vector.broadcast %cst_83 : f32 to vector<16x1xf32>
    %128 = arith.divf %126, %127 : vector<16x1xf32>
    %cst_84 = arith.constant 9.99999997E-7 : f32
    %129 = vector.broadcast %cst_84 : f32 to vector<16x1xf32>
    %130 = arith.addf %128, %129 : vector<16x1xf32>
    %131 = math.rsqrt %130 : vector<16x1xf32>
    %132 = vector.broadcast %131 : vector<16x1xf32> to vector<16x32xf32>
    %133 = arith.mulf %123, %132 : vector<16x32xf32>
    %c0_85 = arith.constant 0 : index
    %c0_86 = arith.constant 0 : index
    %c0_87 = arith.constant 0 : index
    %134 = vector.load %arg8[%c0_85, %c0_86, %c0_87] : memref<2x1x32xf32, #tpu.memory_space<vmem>>, vector<1x1x32xf32>
    %135 = vector.shape_cast %134 : vector<1x1x32xf32> to vector<1x32xf32>
    %136 = vector.broadcast %135 : vector<1x32xf32> to vector<16x32xf32>
    %137 = arith.mulf %133, %136 : vector<16x32xf32>
    %c0_88 = arith.constant 0 : index
    %c0_89 = arith.constant 0 : index
    %c0_90 = arith.constant 0 : index
    %138 = vector.load %arg9[%c0_88, %c0_89, %c0_90] : memref<2x1x32xf32, #tpu.memory_space<vmem>>, vector<1x1x32xf32>
    %139 = vector.shape_cast %138 : vector<1x1x32xf32> to vector<1x32xf32>
    %140 = vector.broadcast %139 : vector<1x32xf32> to vector<16x32xf32>
    %141 = arith.addf %137, %140 : vector<16x32xf32>
    %c0_91 = arith.constant 0 : index
    %c0_92 = arith.constant 0 : index
    %c0_93 = arith.constant 0 : index
    %142 = vector.load %arg10[%c0_91, %c0_92, %c0_93] : memref<2x32x128xf32, #tpu.memory_space<vmem>>, vector<1x32x128xf32>
    %143 = vector.shape_cast %142 : vector<1x32x128xf32> to vector<32x128xf32>
    %cst_94 = arith.constant dense<0.000000e+00> : vector<16x128xf32>
    %144 = tpu.matmul %141, %143, %cst_94 {dimension_numbers = #tpu.dot_dimension_numbers<[1], [0], [0], [1], [0, 0, 1, 1], [], []>, precision = #tpu.contract_precision<fp32>} : vector<16x32xf32>, vector<32x128xf32>, vector<16x128xf32> -> vector<16x128xf32>
    %c0_95 = arith.constant 0 : index
    %c0_96 = arith.constant 0 : index
    %c0_97 = arith.constant 0 : index
    %145 = vector.load %arg11[%c0_95, %c0_96, %c0_97] : memref<2x1x128xf32, #tpu.memory_space<vmem>>, vector<1x1x128xf32>
    %146 = vector.shape_cast %145 : vector<1x1x128xf32> to vector<1x128xf32>
    %147 = vector.broadcast %146 : vector<1x128xf32> to vector<16x128xf32>
    %148 = arith.addf %144, %147 : vector<16x128xf32>
    %cst_98 = arith.constant 5.000000e-01 : f32
    %149 = vector.broadcast %cst_98 : f32 to vector<16x128xf32>
    %150 = arith.mulf %149, %148 : vector<16x128xf32>
    %cst_99 = arith.constant 0.707106769 : f32
    %151 = vector.broadcast %cst_99 : f32 to vector<16x128xf32>
    %152 = arith.mulf %148, %151 : vector<16x128xf32>
    %cst_100 = arith.constant 0.000000e+00 : f32
    %153 = vector.broadcast %cst_100 : f32 to vector<16x128xf32>
    %154 = arith.cmpf oge, %152, %153 : vector<16x128xf32>
    %cst_101 = arith.constant 1.000000e+00 : f32
    %cst_102 = arith.constant -1.000000e+00 : f32
    %155 = vector.broadcast %cst_101 : f32 to vector<16x128xf32>
    %156 = vector.broadcast %cst_102 : f32 to vector<16x128xf32>
    %157 = arith.select %154, %155, %156 : vector<16x128xi1>, vector<16x128xf32>
    %158 = math.absf %152 : vector<16x128xf32>
    %cst_103 = arith.constant 0.327591091 : f32
    %159 = vector.broadcast %cst_103 : f32 to vector<16x128xf32>
    %160 = arith.mulf %159, %158 : vector<16x128xf32>
    %cst_104 = arith.constant 1.000000e+00 : f32
    %161 = vector.broadcast %cst_104 : f32 to vector<16x128xf32>
    %162 = arith.addf %161, %160 : vector<16x128xf32>
    %cst_105 = arith.constant 1.000000e+00 : f32
    %163 = vector.broadcast %cst_105 : f32 to vector<16x128xf32>
    %164 = arith.divf %163, %162 : vector<16x128xf32>
    %cst_106 = arith.constant 1.06140542 : f32
    %165 = vector.broadcast %cst_106 : f32 to vector<16x128xf32>
    %166 = arith.mulf %164, %165 : vector<16x128xf32>
    %cst_107 = arith.constant -1.45315206 : f32
    %167 = vector.broadcast %cst_107 : f32 to vector<16x128xf32>
    %168 = arith.addf %167, %166 : vector<16x128xf32>
    %169 = arith.mulf %164, %168 : vector<16x128xf32>
    %cst_108 = arith.constant 1.42141378 : f32
    %170 = vector.broadcast %cst_108 : f32 to vector<16x128xf32>
    %171 = arith.addf %170, %169 : vector<16x128xf32>
    %172 = arith.mulf %164, %171 : vector<16x128xf32>
    %cst_109 = arith.constant -0.284496725 : f32
    %173 = vector.broadcast %cst_109 : f32 to vector<16x128xf32>
    %174 = arith.addf %173, %172 : vector<16x128xf32>
    %175 = arith.mulf %164, %174 : vector<16x128xf32>
    %cst_110 = arith.constant 0.254829586 : f32
    %176 = vector.broadcast %cst_110 : f32 to vector<16x128xf32>
    %177 = arith.addf %176, %175 : vector<16x128xf32>
    %178 = arith.mulf %164, %177 : vector<16x128xf32>
    %cst_111 = arith.constant 0.000000e+00 : f32
    %179 = vector.broadcast %cst_111 : f32 to vector<16x128xf32>
    %180 = arith.subf %179, %158 : vector<16x128xf32>
    %181 = arith.mulf %180, %158 : vector<16x128xf32>
    %182 = math.exp %181 : vector<16x128xf32>
    %183 = arith.mulf %178, %182 : vector<16x128xf32>
    %cst_112 = arith.constant 1.000000e+00 : f32
    %184 = vector.broadcast %cst_112 : f32 to vector<16x128xf32>
    %185 = arith.subf %184, %183 : vector<16x128xf32>
    %186 = arith.mulf %157, %185 : vector<16x128xf32>
    %cst_113 = arith.constant 1.000000e+00 : f32
    %187 = vector.broadcast %cst_113 : f32 to vector<16x128xf32>
    %188 = arith.addf %187, %186 : vector<16x128xf32>
    %189 = arith.mulf %150, %188 : vector<16x128xf32>
    %c0_114 = arith.constant 0 : index
    %c0_115 = arith.constant 0 : index
    %c0_116 = arith.constant 0 : index
    %190 = vector.load %arg12[%c0_114, %c0_115, %c0_116] : memref<2x128x32xf32, #tpu.memory_space<vmem>>, vector<1x128x32xf32>
    %191 = vector.shape_cast %190 : vector<1x128x32xf32> to vector<128x32xf32>
    %cst_117 = arith.constant dense<0.000000e+00> : vector<16x32xf32>
    %192 = tpu.matmul %189, %191, %cst_117 {dimension_numbers = #tpu.dot_dimension_numbers<[1], [0], [0], [1], [0, 0, 1, 1], [], []>, precision = #tpu.contract_precision<fp32>} : vector<16x128xf32>, vector<128x32xf32>, vector<16x32xf32> -> vector<16x32xf32>
    %c0_118 = arith.constant 0 : index
    %c0_119 = arith.constant 0 : index
    %c0_120 = arith.constant 0 : index
    %193 = vector.load %arg13[%c0_118, %c0_119, %c0_120] : memref<2x1x32xf32, #tpu.memory_space<vmem>>, vector<1x1x32xf32>
    %194 = vector.shape_cast %193 : vector<1x1x32xf32> to vector<1x32xf32>
    %195 = vector.broadcast %194 : vector<1x32xf32> to vector<16x32xf32>
    %196 = arith.addf %192, %195 : vector<16x32xf32>
    %c0_121 = arith.constant 0 : index
    %c0_122 = arith.constant 0 : index
    %c0_123 = arith.constant 0 : index
    %197 = vector.load %arg14[%c0_121, %c0_122, %c0_123] : memref<2x1x32xf32, #tpu.memory_space<vmem>>, vector<1x1x32xf32>
    %198 = vector.shape_cast %197 : vector<1x1x32xf32> to vector<1x32xf32>
    %199 = vector.broadcast %198 : vector<1x32xf32> to vector<16x32xf32>
    %200 = arith.mulf %199, %196 : vector<16x32xf32>
    %201 = arith.addf %74, %200 : vector<16x32xf32>
    %c8_124 = arith.constant 8 : index
    %c0_125 = arith.constant 0 : index
    %202 = vector.load %arg21[%c8_124, %c0_125] : memref<32x32xf32, #tpu.memory_space<vmem>>, vector<16x32xf32>
    tpu.vector_store %arg21[%c8_124, %c0_125], %201 {strides = array<i32>} : memref<32x32xf32, #tpu.memory_space<vmem>>, vector<16x32xf32>,
    %c1 = arith.constant 1 : index
    %c0_126 = arith.constant 0 : index
    %c0_127 = arith.constant 0 : index
    %203 = vector.load %arg6[%c1, %c0_126, %c0_127] : memref<2x7x32xf32, #tpu.memory_space<vmem>>, vector<1x7x32xf32>
    %204 = vector.shape_cast %203 : vector<1x7x32xf32> to vector<7x32xf32>
    %cst_128 = arith.constant 0.000000e+00 : f32
    %205 = vector.broadcast %cst_128 : f32 to vector<16x32xf32>
    %c2_129 = arith.constant 2 : index
    %c0_130 = arith.constant 0 : index
    %206 = vector.load %arg21[%c2_129, %c0_130] : memref<32x32xf32, #tpu.memory_space<vmem>>, vector<16x32xf32>
    %207 = vector.extract_strided_slice %204 {offsets = [0, 0], sizes = [1, 32], strides = [1, 1]} : vector<7x32xf32> to vector<1x32xf32>
    %208 = vector.broadcast %207 : vector<1x32xf32> to vector<16x32xf32>
    %209 = arith.mulf %206, %208 : vector<16x32xf32>
    %210 = arith.addf %205, %209 : vector<16x32xf32>
    %c4_131 = arith.constant 4 : index
    %c0_132 = arith.constant 0 : index
    %211 = vector.load %arg21[%c4_131, %c0_132] : memref<32x32xf32, #tpu.memory_space<vmem>>, vector<16x32xf32>
    %212 = vector.extract_strided_slice %204 {offsets = [1, 0], sizes = [1, 32], strides = [1, 1]} : vector<7x32xf32> to vector<1x32xf32>
    %213 = vector.broadcast %212 : vector<1x32xf32> to vector<16x32xf32>
    %214 = arith.mulf %211, %213 : vector<16x32xf32>
    %215 = arith.addf %210, %214 : vector<16x32xf32>
    %c6_133 = arith.constant 6 : index
    %c0_134 = arith.constant 0 : index
    %216 = vector.load %arg21[%c6_133, %c0_134] : memref<32x32xf32, #tpu.memory_space<vmem>>, vector<16x32xf32>
    %217 = vector.extract_strided_slice %204 {offsets = [2, 0], sizes = [1, 32], strides = [1, 1]} : vector<7x32xf32> to vector<1x32xf32>
    %218 = vector.broadcast %217 : vector<1x32xf32> to vector<16x32xf32>
    %219 = arith.mulf %216, %218 : vector<16x32xf32>
    %220 = arith.addf %215, %219 : vector<16x32xf32>
    %c8_135 = arith.constant 8 : index
    %c0_136 = arith.constant 0 : index
    %221 = vector.load %arg21[%c8_135, %c0_136] : memref<32x32xf32, #tpu.memory_space<vmem>>, vector<16x32xf32>
    %222 = vector.extract_strided_slice %204 {offsets = [3, 0], sizes = [1, 32], strides = [1, 1]} : vector<7x32xf32> to vector<1x32xf32>
    %223 = vector.broadcast %222 : vector<1x32xf32> to vector<16x32xf32>
    %224 = arith.mulf %221, %223 : vector<16x32xf32>
    %225 = arith.addf %220, %224 : vector<16x32xf32>
    %c10_137 = arith.constant 10 : index
    %c0_138 = arith.constant 0 : index
    %226 = vector.load %arg21[%c10_137, %c0_138] : memref<32x32xf32, #tpu.memory_space<vmem>>, vector<16x32xf32>
    %227 = vector.extract_strided_slice %204 {offsets = [4, 0], sizes = [1, 32], strides = [1, 1]} : vector<7x32xf32> to vector<1x32xf32>
    %228 = vector.broadcast %227 : vector<1x32xf32> to vector<16x32xf32>
    %229 = arith.mulf %226, %228 : vector<16x32xf32>
    %230 = arith.addf %225, %229 : vector<16x32xf32>
    %c12_139 = arith.constant 12 : index
    %c0_140 = arith.constant 0 : index
    %231 = vector.load %arg21[%c12_139, %c0_140] : memref<32x32xf32, #tpu.memory_space<vmem>>, vector<16x32xf32>
    %232 = vector.extract_strided_slice %204 {offsets = [5, 0], sizes = [1, 32], strides = [1, 1]} : vector<7x32xf32> to vector<1x32xf32>
    %233 = vector.broadcast %232 : vector<1x32xf32> to vector<16x32xf32>
    %234 = arith.mulf %231, %233 : vector<16x32xf32>
    %235 = arith.addf %230, %234 : vector<16x32xf32>
    %c14_141 = arith.constant 14 : index
    %c0_142 = arith.constant 0 : index
    %236 = vector.load %arg21[%c14_141, %c0_142] : memref<32x32xf32, #tpu.memory_space<vmem>>, vector<16x32xf32>
    %237 = vector.extract_strided_slice %204 {offsets = [6, 0], sizes = [1, 32], strides = [1, 1]} : vector<7x32xf32> to vector<1x32xf32>
    %238 = vector.broadcast %237 : vector<1x32xf32> to vector<16x32xf32>
    %239 = arith.mulf %236, %238 : vector<16x32xf32>
    %240 = arith.addf %235, %239 : vector<16x32xf32>
    %c1_143 = arith.constant 1 : index
    %c0_144 = arith.constant 0 : index
    %c0_145 = arith.constant 0 : index
    %241 = vector.load %arg7[%c1_143, %c0_144, %c0_145] : memref<2x1x32xf32, #tpu.memory_space<vmem>>, vector<1x1x32xf32>
    %242 = vector.shape_cast %241 : vector<1x1x32xf32> to vector<1x32xf32>
    %243 = vector.broadcast %242 : vector<1x32xf32> to vector<16x32xf32>
    %244 = arith.addf %240, %243 : vector<16x32xf32>
    %cst_146 = arith.constant dense<0.000000e+00> : vector<16xf32>
    %245 = vector.multi_reduction <add>, %244, %cst_146 [1] : vector<16x32xf32> to vector<16xf32>
    %246 = vector.shape_cast %245 : vector<16xf32> to vector<16x1xf32>
    %cst_147 = arith.constant 3.200000e+01 : f32
    %247 = vector.broadcast %cst_147 : f32 to vector<16x1xf32>
    %248 = arith.divf %246, %247 : vector<16x1xf32>
    %249 = vector.broadcast %248 : vector<16x1xf32> to vector<16x32xf32>
    %250 = arith.subf %244, %249 : vector<16x32xf32>
    %251 = arith.mulf %250, %250 : vector<16x32xf32>
    %cst_148 = arith.constant dense<0.000000e+00> : vector<16xf32>
    %252 = vector.multi_reduction <add>, %251, %cst_148 [1] : vector<16x32xf32> to vector<16xf32>
    %253 = vector.shape_cast %252 : vector<16xf32> to vector<16x1xf32>
    %cst_149 = arith.constant 3.200000e+01 : f32
    %254 = vector.broadcast %cst_149 : f32 to vector<16x1xf32>
    %255 = arith.divf %253, %254 : vector<16x1xf32>
    %cst_150 = arith.constant 9.99999997E-7 : f32
    %256 = vector.broadcast %cst_150 : f32 to vector<16x1xf32>
    %257 = arith.addf %255, %256 : vector<16x1xf32>
    %258 = math.rsqrt %257 : vector<16x1xf32>
    %259 = vector.broadcast %258 : vector<16x1xf32> to vector<16x32xf32>
    %260 = arith.mulf %250, %259 : vector<16x32xf32>
    %c1_151 = arith.constant 1 : index
    %c0_152 = arith.constant 0 : index
    %c0_153 = arith.constant 0 : index
    %261 = vector.load %arg8[%c1_151, %c0_152, %c0_153] : memref<2x1x32xf32, #tpu.memory_space<vmem>>, vector<1x1x32xf32>
    %262 = vector.shape_cast %261 : vector<1x1x32xf32> to vector<1x32xf32>
    %263 = vector.broadcast %262 : vector<1x32xf32> to vector<16x32xf32>
    %264 = arith.mulf %260, %263 : vector<16x32xf32>
    %c1_154 = arith.constant 1 : index
    %c0_155 = arith.constant 0 : index
    %c0_156 = arith.constant 0 : index
    %265 = vector.load %arg9[%c1_154, %c0_155, %c0_156] : memref<2x1x32xf32, #tpu.memory_space<vmem>>, vector<1x1x32xf32>
    %266 = vector.shape_cast %265 : vector<1x1x32xf32> to vector<1x32xf32>
    %267 = vector.broadcast %266 : vector<1x32xf32> to vector<16x32xf32>
    %268 = arith.addf %264, %267 : vector<16x32xf32>
    %c1_157 = arith.constant 1 : index
    %c0_158 = arith.constant 0 : index
    %c0_159 = arith.constant 0 : index
    %269 = vector.load %arg10[%c1_157, %c0_158, %c0_159] : memref<2x32x128xf32, #tpu.memory_space<vmem>>, vector<1x32x128xf32>
    %270 = vector.shape_cast %269 : vector<1x32x128xf32> to vector<32x128xf32>
    %cst_160 = arith.constant dense<0.000000e+00> : vector<16x128xf32>
    %271 = tpu.matmul %268, %270, %cst_160 {dimension_numbers = #tpu.dot_dimension_numbers<[1], [0], [0], [1], [0, 0, 1, 1], [], []>, precision = #tpu.contract_precision<fp32>} : vector<16x32xf32>, vector<32x128xf32>, vector<16x128xf32> -> vector<16x128xf32>
    %c1_161 = arith.constant 1 : index
    %c0_162 = arith.constant 0 : index
    %c0_163 = arith.constant 0 : index
    %272 = vector.load %arg11[%c1_161, %c0_162, %c0_163] : memref<2x1x128xf32, #tpu.memory_space<vmem>>, vector<1x1x128xf32>
    %273 = vector.shape_cast %272 : vector<1x1x128xf32> to vector<1x128xf32>
    %274 = vector.broadcast %273 : vector<1x128xf32> to vector<16x128xf32>
    %275 = arith.addf %271, %274 : vector<16x128xf32>
    %cst_164 = arith.constant 5.000000e-01 : f32
    %276 = vector.broadcast %cst_164 : f32 to vector<16x128xf32>
    %277 = arith.mulf %276, %275 : vector<16x128xf32>
    %cst_165 = arith.constant 0.707106769 : f32
    %278 = vector.broadcast %cst_165 : f32 to vector<16x128xf32>
    %279 = arith.mulf %275, %278 : vector<16x128xf32>
    %cst_166 = arith.constant 0.000000e+00 : f32
    %280 = vector.broadcast %cst_166 : f32 to vector<16x128xf32>
    %281 = arith.cmpf oge, %279, %280 : vector<16x128xf32>
    %cst_167 = arith.constant 1.000000e+00 : f32
    %cst_168 = arith.constant -1.000000e+00 : f32
    %282 = vector.broadcast %cst_167 : f32 to vector<16x128xf32>
    %283 = vector.broadcast %cst_168 : f32 to vector<16x128xf32>
    %284 = arith.select %281, %282, %283 : vector<16x128xi1>, vector<16x128xf32>
    %285 = math.absf %279 : vector<16x128xf32>
    %cst_169 = arith.constant 0.327591091 : f32
    %286 = vector.broadcast %cst_169 : f32 to vector<16x128xf32>
    %287 = arith.mulf %286, %285 : vector<16x128xf32>
    %cst_170 = arith.constant 1.000000e+00 : f32
    %288 = vector.broadcast %cst_170 : f32 to vector<16x128xf32>
    %289 = arith.addf %288, %287 : vector<16x128xf32>
    %cst_171 = arith.constant 1.000000e+00 : f32
    %290 = vector.broadcast %cst_171 : f32 to vector<16x128xf32>
    %291 = arith.divf %290, %289 : vector<16x128xf32>
    %cst_172 = arith.constant 1.06140542 : f32
    %292 = vector.broadcast %cst_172 : f32 to vector<16x128xf32>
    %293 = arith.mulf %291, %292 : vector<16x128xf32>
    %cst_173 = arith.constant -1.45315206 : f32
    %294 = vector.broadcast %cst_173 : f32 to vector<16x128xf32>
    %295 = arith.addf %294, %293 : vector<16x128xf32>
    %296 = arith.mulf %291, %295 : vector<16x128xf32>
    %cst_174 = arith.constant 1.42141378 : f32
    %297 = vector.broadcast %cst_174 : f32 to vector<16x128xf32>
    %298 = arith.addf %297, %296 : vector<16x128xf32>
    %299 = arith.mulf %291, %298 : vector<16x128xf32>
    %cst_175 = arith.constant -0.284496725 : f32
    %300 = vector.broadcast %cst_175 : f32 to vector<16x128xf32>
    %301 = arith.addf %300, %299 : vector<16x128xf32>
    %302 = arith.mulf %291, %301 : vector<16x128xf32>
    %cst_176 = arith.constant 0.254829586 : f32
    %303 = vector.broadcast %cst_176 : f32 to vector<16x128xf32>
    %304 = arith.addf %303, %302 : vector<16x128xf32>
    %305 = arith.mulf %291, %304 : vector<16x128xf32>
    %cst_177 = arith.constant 0.000000e+00 : f32
    %306 = vector.broadcast %cst_177 : f32 to vector<16x128xf32>
    %307 = arith.subf %306, %285 : vector<16x128xf32>
    %308 = arith.mulf %307, %285 : vector<16x128xf32>
    %309 = math.exp %308 : vector<16x128xf32>
    %310 = arith.mulf %305, %309 : vector<16x128xf32>
    %cst_178 = arith.constant 1.000000e+00 : f32
    %311 = vector.broadcast %cst_178 : f32 to vector<16x128xf32>
    %312 = arith.subf %311, %310 : vector<16x128xf32>
    %313 = arith.mulf %284, %312 : vector<16x128xf32>
    %cst_179 = arith.constant 1.000000e+00 : f32
    %314 = vector.broadcast %cst_179 : f32 to vector<16x128xf32>
    %315 = arith.addf %314, %313 : vector<16x128xf32>
    %316 = arith.mulf %277, %315 : vector<16x128xf32>
    %c1_180 = arith.constant 1 : index
    %c0_181 = arith.constant 0 : index
    %c0_182 = arith.constant 0 : index
    %317 = vector.load %arg12[%c1_180, %c0_181, %c0_182] : memref<2x128x32xf32, #tpu.memory_space<vmem>>, vector<1x128x32xf32>
    %318 = vector.shape_cast %317 : vector<1x128x32xf32> to vector<128x32xf32>
    %cst_183 = arith.constant dense<0.000000e+00> : vector<16x32xf32>
    %319 = tpu.matmul %316, %318, %cst_183 {dimension_numbers = #tpu.dot_dimension_numbers<[1], [0], [0], [1], [0, 0, 1, 1], [], []>, precision = #tpu.contract_precision<fp32>} : vector<16x128xf32>, vector<128x32xf32>, vector<16x32xf32> -> vector<16x32xf32>
    %c1_184 = arith.constant 1 : index
    %c0_185 = arith.constant 0 : index
    %c0_186 = arith.constant 0 : index
    %320 = vector.load %arg13[%c1_184, %c0_185, %c0_186] : memref<2x1x32xf32, #tpu.memory_space<vmem>>, vector<1x1x32xf32>
    %321 = vector.shape_cast %320 : vector<1x1x32xf32> to vector<1x32xf32>
    %322 = vector.broadcast %321 : vector<1x32xf32> to vector<16x32xf32>
    %323 = arith.addf %319, %322 : vector<16x32xf32>
    %c1_187 = arith.constant 1 : index
    %c0_188 = arith.constant 0 : index
    %c0_189 = arith.constant 0 : index
    %324 = vector.load %arg14[%c1_187, %c0_188, %c0_189] : memref<2x1x32xf32, #tpu.memory_space<vmem>>, vector<1x1x32xf32>
    %325 = vector.shape_cast %324 : vector<1x1x32xf32> to vector<1x32xf32>
    %326 = vector.broadcast %325 : vector<1x32xf32> to vector<16x32xf32>
    %327 = arith.mulf %326, %323 : vector<16x32xf32>
    %328 = arith.addf %201, %327 : vector<16x32xf32>
    %c0_190 = arith.constant 0 : index
    %c0_191 = arith.constant 0 : index
    %329 = vector.load %arg15[%c0_190, %c0_191] : memref<32x128xf32, #tpu.memory_space<vmem>>, vector<32x128xf32>
    %cst_192 = arith.constant dense<0.000000e+00> : vector<16x128xf32>
    %330 = tpu.matmul %328, %329, %cst_192 {dimension_numbers = #tpu.dot_dimension_numbers<[1], [0], [0], [1], [0, 0, 1, 1], [], []>, precision = #tpu.contract_precision<fp32>} : vector<16x32xf32>, vector<32x128xf32>, vector<16x128xf32> -> vector<16x128xf32>
    %c0_193 = arith.constant 0 : index
    %c0_194 = arith.constant 0 : index
    %c0_195 = arith.constant 0 : index
    %331 = vector.load %arg16[%c0_193, %c0_194, %c0_195] : memref<1x16x128xf32, #tpu.memory_space<vmem>>, vector<1x16x128xf32>
    %332 = vector.shape_cast %331 : vector<1x16x128xf32> to vector<16x128xf32>
    %333 = vector.shape_cast %330 : vector<16x128xf32> to vector<1x16x128xf32>
    tpu.vector_store %arg16[%c0_193, %c0_194, %c0_195], %333 {strides = array<i32>} : memref<1x16x128xf32, #tpu.memory_space<vmem>>, vector<1x16x128xf32>,
    return
  }
  func.func @transform_0(%arg0: i32) -> (i32, i32, i32) {
    %c0_i32 = arith.constant 0 : i32
    %c0_i32_0 = arith.constant 0 : i32
    %c0_i32_1 = arith.constant 0 : i32
    return %arg0, %c0_i32, %c0_i32_0 : i32, i32, i32
  }
  func.func @transform_1(%arg0: i32) -> (i32, i32) {
    %c0_i32 = arith.constant 0 : i32
    %c0_i32_0 = arith.constant 0 : i32
    %c0_i32_1 = arith.constant 0 : i32
    return %c0_i32, %c0_i32_0 : i32, i32
  }
  func.func @transform_2(%arg0: i32) -> (i32, i32) {
    %c0_i32 = arith.constant 0 : i32
    %c0_i32_0 = arith.constant 0 : i32
    %c0_i32_1 = arith.constant 0 : i32
    return %c0_i32, %c0_i32_0 : i32, i32
  }
  func.func @transform_3(%arg0: i32) -> (i32, i32) {
    %c0_i32 = arith.constant 0 : i32
    %c0_i32_0 = arith.constant 0 : i32
    %c0_i32_1 = arith.constant 0 : i32
    return %c0_i32, %c0_i32_0 : i32, i32
  }
  func.func @transform_4(%arg0: i32) -> (i32, i32) {
    %c0_i32 = arith.constant 0 : i32
    %c0_i32_0 = arith.constant 0 : i32
    %c0_i32_1 = arith.constant 0 : i32
    return %c0_i32, %c0_i32_0 : i32, i32
  }
  func.func @transform_5(%arg0: i32) -> (i32, i32, i32) {
    %c0_i32 = arith.constant 0 : i32
    %c0_i32_0 = arith.constant 0 : i32
    %c0_i32_1 = arith.constant 0 : i32
    %c0_i32_2 = arith.constant 0 : i32
    return %c0_i32, %c0_i32_0, %c0_i32_1 : i32, i32, i32
  }
  func.func @transform_6(%arg0: i32) -> (i32, i32, i32) {
    %c0_i32 = arith.constant 0 : i32
    %c0_i32_0 = arith.constant 0 : i32
    %c0_i32_1 = arith.constant 0 : i32
    %c0_i32_2 = arith.constant 0 : i32
    return %c0_i32, %c0_i32_0, %c0_i32_1 : i32, i32, i32
  }
  func.func @transform_7(%arg0: i32) -> (i32, i32, i32) {
    %c0_i32 = arith.constant 0 : i32
    %c0_i32_0 = arith.constant 0 : i32
    %c0_i32_1 = arith.constant 0 : i32
    %c0_i32_2 = arith.constant 0 : i32
    return %c0_i32, %c0_i32_0, %c0_i32_1 : i32, i32, i32
  }
  func.func @transform_8(%arg0: i32) -> (i32, i32, i32) {
    %c0_i32 = arith.constant 0 : i32
    %c0_i32_0 = arith.constant 0 : i32
    %c0_i32_1 = arith.constant 0 : i32
    %c0_i32_2 = arith.constant 0 : i32
    return %c0_i32, %c0_i32_0, %c0_i32_1 : i32, i32, i32
  }
  func.func @transform_9(%arg0: i32) -> (i32, i32, i32) {
    %c0_i32 = arith.constant 0 : i32
    %c0_i32_0 = arith.constant 0 : i32
    %c0_i32_1 = arith.constant 0 : i32
    %c0_i32_2 = arith.constant 0 : i32
    return %c0_i32, %c0_i32_0, %c0_i32_1 : i32, i32, i32
  }
  func.func @transform_10(%arg0: i32) -> (i32, i32, i32) {
    %c0_i32 = arith.constant 0 : i32
    %c0_i32_0 = arith.constant 0 : i32
    %c0_i32_1 = arith.constant 0 : i32
    %c0_i32_2 = arith.constant 0 : i32
    return %c0_i32, %c0_i32_0, %c0_i32_1 : i32, i32, i32
  }
  func.func @transform_11(%arg0: i32) -> (i32, i32, i32) {
    %c0_i32 = arith.constant 0 : i32
    %c0_i32_0 = arith.constant 0 : i32
    %c0_i32_1 = arith.constant 0 : i32
    %c0_i32_2 = arith.constant 0 : i32
    return %c0_i32, %c0_i32_0, %c0_i32_1 : i32, i32, i32
  }
  func.func @transform_12(%arg0: i32) -> (i32, i32, i32) {
    %c0_i32 = arith.constant 0 : i32
    %c0_i32_0 = arith.constant 0 : i32
    %c0_i32_1 = arith.constant 0 : i32
    %c0_i32_2 = arith.constant 0 : i32
    return %c0_i32, %c0_i32_0, %c0_i32_1 : i32, i32, i32
  }
  func.func @transform_13(%arg0: i32) -> (i32, i32, i32) {
    %c0_i32 = arith.constant 0 : i32
    %c0_i32_0 = arith.constant 0 : i32
    %c0_i32_1 = arith.constant 0 : i32
    %c0_i32_2 = arith.constant 0 : i32
    return %c0_i32, %c0_i32_0, %c0_i32_1 : i32, i32, i32
  }
  func.func @transform_14(%arg0: i32) -> (i32, i32) {
    %c0_i32 = arith.constant 0 : i32
    %c0_i32_0 = arith.constant 0 : i32
    %c0_i32_1 = arith.constant 0 : i32
    return %c0_i32, %c0_i32_0 : i32, i32
  }
  func.func @transform_15(%arg0: i32) -> (i32, i32, i32) {
    %c0_i32 = arith.constant 0 : i32
    %c0_i32_0 = arith.constant 0 : i32
    %c0_i32_1 = arith.constant 0 : i32
    return %arg0, %c0_i32, %c0_i32_0 : i32, i32, i32
  }
}

</mosaic_0001>

<bundles_post_ra>
// kernel: tpu_custom_call.1
= control target key start
LH: loop header
LB: loop body
LE: loop exit
PB: predicated region body
PF: predicated region fallthrough
CT: control target
= control target key end

     0   :  { %s8599_s0 = inlined_call_operand.vmem [shape: f32[2,16,8], index: 0, kind: input, shape index: {}]   ;;  %s8600_s1 = inlined_call_operand.vmem [shape: f32[24,16], index: 1, kind: input, shape index: {}]   ;;  %s8601_s2 = inlined_call_operand.vmem [shape: f32[1,16], index: 2, kind: input, shape index: {}]   ;;  %s8602_s3 = inlined_call_operand.vmem [shape: f32[48,32], index: 3, kind: input, shape index: {}]   ;;  %s8603_s4 = inlined_call_operand.vmem [shape: f32[1,32], index: 4, kind: input, shape index: {}]   ;;  %s8604_s5 = inlined_call_operand.vmem [shape: f32[2,7,32], index: 5, kind: input, shape index: {}]   ;;  %s8605_s6 = inlined_call_operand.vmem [shape: f32[2,1,32], index: 6, kind: input, shape index: {}]   ;;  %s8606_s7 = inlined_call_operand.vmem [shape: f32[2,1,32], index: 7, kind: input, shape index: {}]   ;;  %s8607_s8 = inlined_call_operand.vmem [shape: f32[2,1,32], index: 8, kind: input, shape index: {}]   ;;  %s8608_s9 = inlined_call_operand.vmem [shape: f32[2,32,128], index: 9, kind: input, shape index: {}]   ;;  %s8609_s10 = inlined_call_operand.vmem [shape: f32[2,1,128], index: 10, kind: input, shape index: {}]   ;;  %s8610_s11 = inlined_call_operand.vmem [shape: f32[2,128,32], index: 11, kind: input, shape index: {}]   ;;  %s8611_s12 = inlined_call_operand.vmem [shape: f32[2,1,32], index: 12, kind: input, shape index: {}]   ;;  %s8612_s13 = inlined_call_operand.vmem [shape: f32[2,1,32], index: 13, kind: input, shape index: {}]   ;;  %s8613_s14 = inlined_call_operand.vmem [shape: f32[32,128], index: 14, kind: input, shape index: {}]   ;;  %s8614_s15 = inlined_call_operand.hbm [shape: f32[2,16,128], index: 15, kind: output, shape index: {}]  }
   0x1   :  { %8677 = sst [smem:[#allocation20_spill]] %s8599_s0 }
   0x2   :  { %8678 = sst [smem:[#allocation21_spill]] %s8600_s1 }
   0x3   :  { %20 = vsyncpa [#allocation8], 0 }
   0x4   :  { %22 = vsyncpa [#allocation8 + $0x1], 0  ;;  %s7397_s18 = smov 0   ;;  %s7399_s19 = smov 0  }
   0x5   :  { %s7401_s20 = smov 0   ;;  %s7403_s21 = smov 0  }
   0x6 LB: > { %8679 = sst [smem:[#allocation10_spill]] %s7304_s20  ;;  %s7418_s22 = sadd.s32 4294967295, %s7308_s21   ;;  %s7308_s21 = sphi %s7403_s21, %s8756_s21   ;;  %s7304_s20 = sphi %s7401_s20, %s8758_s20   ;;  %s7300_s19 = sphi %s7399_s19, %s8760_s19   ;;  %s7296_s18 = sphi %s7397_s18, %s8759_s18  }
   0x7   : > { %s5244_s23 = sadd.s32 4294967294, %s7308_s21   ;;  %s7422_s24 = sadd.s32 1, %s7308_s21  }
   0x8   : > { %8680 = sst [smem:[#allocation11_spill]] %s7422_s24  ;;  %s355_s25 = sadd.s32 1, %s7304_s20 }
   0x9   : > { %s352_s26 = ssub.s32 %s7308_s21, %s7422_s24  ;;  %p365_p0 = scmp.ne.s32.totalorder %s7304_s20, %s7300_s19 }
   0xa   : > { %p353_p1 = scmp.eq.s32.totalorder %s352_s26, 0  ;;  %p366_p2 = scmp.eq.s32.totalorder %s7418_s22, 1 }
   0xb   : > { %p371_p3 = scmp.ne.s32.totalorder %s7300_s19, %s7296_s18  ;;  %p372_p4 = scmp.eq.s32.totalorder %s5244_s23, 1 }
   0xc   : > { %s7433_s27 = scalar_select %p353_p1, %s7304_s20, %s355_s25  }
   0xd   : > { %p7435_p5 = por %p366_p2, %p365_p0  ;;  %p7439_p6 = por %p372_p4, %p371_p3 }
   0xe   : > { %8681 = sst [smem:[#allocation12_spill]] %s7433_s27  ;;  %p5247_p7 = scmp.ge.s32.totalorder %s7308_s21, 1 }
   0xf   : > { %p440_p8 = scmp.lt.s32.totalorder %s7308_s21, 3 }
  0x11   : > { %p441_p9 = pnand %p5247_p7, %p440_p8 }
  0x13   : > { %444 = sbr.rel (%p441_p9) target bundleno = 3258 (0xcba), region = 80 }
  0x1a   : > { %p488_p10 = scmp.lt.s32.totalorder %s7418_s22, 1  ;;  %vm493_vm0 = vcmask 64512   ;;  %s8684_s1 = sld [smem:[#allocation21_spill]]  ;;  %v7310_v1 = vmov 0.0   ;;  %vm526_vm1 = vcmask 130112   ;;  %vm539_vm2 = vcmask 195712  }
  0x1b   : > { %495 = vst.msk [vmem:[#allocation2 + $0x8] sm:$0xff] %vm493_vm0, %v7310_v1  ;;  %494 = vst.msk [vmem:[#allocation2] sm:$0xff] %vm493_vm0, %v7310_v1  ;;  %s8685_s0 = sld [smem:[#allocation20_spill]]  ;;  %s8618_s20 = smov 8   ;;  %vm554_vm3 = vcmask 195584   ;;  %vm498_vm4 = vcmask 130048  }
  0x1c   : > { %496 = vst.msk [vmem:[#allocation2 + $0x10] sm:$0xff] %vm493_vm0, %v7310_v1  ;;  %497 = vst.msk [vmem:[#allocation2 + $0x18] sm:$0xff] %vm493_vm0, %v7310_v1  ;;  %s489_s25 = scalar_select %p488_p10, %s7418_s22, 1  ;;  %v5251_v51 = vld [vmem:[%s8601_s2] ss:$0 sm:$0xff]  ;;  %vm503_vm7 = vcmask 261120  }
  0x1d   : > { %s8619_s24 = smov 16   ;;  %501 = vst.msk [vmem:[#allocation4 + $0x10] sm:$0xff] %vm498_vm4, %v7310_v1  ;;  %499 = vst.msk [vmem:[#allocation4] sm:$0xff] %vm498_vm4, %v7310_v1  ;;  %vm1146_vm8 = vcmask 261248   ;;  %vm1159_vm9 = vcmask 392448   ;;  %vm1177_vm10 = vcmask 392192  }
  0x1e   : > { %s5297_s26 = sshll.u32 %s489_s25, 4  ;;  %500 = vst.msk [vmem:[#allocation4 + $0x8] sm:$0xff] %vm498_vm4, %v7310_v1  ;;  %502 = vst.msk [vmem:[#allocation4 + $0x18] sm:$0xff] %vm498_vm4, %v7310_v1  ;;  %s485_s16 = sand.u32 1, %s7300_s19  }
  0x1f   : > { %506 = vst.msk [vmem:[#allocation6 + $0x10] sm:$0xff] %vm503_vm7, %v7310_v1  ;;  %504 = vst.msk [vmem:[#allocation6] sm:$0xff] %vm503_vm7, %v7310_v1  ;;  %s5298_s25 = sshll.u32 %s7418_s22, 8  ;;  %s8557_s30 = scalar_lea.sflag [#allocation8], %s485_s16 }
  0x20   : > { %v544_v0 = vld [vmem:[%s8684_s1] sm:$0xff]  ;;  %v545_v2 = vld [vmem:[%s8684_s1 + $0x8] sm:$0xff]  ;;  %v546_v8 = vld [vmem:[%s8684_s1 + $0x10] sm:$0xff]  ;;  %505 = vst.msk [vmem:[#allocation6 + $0x8] sm:$0xff] %vm503_vm7, %v7310_v1  ;;  %s7315_s22 = smov [#allocation7]  }
  0x21   : > { %v562_v3 = vand.u32 4294901760, %v544_v0  ;;  %v565_v4 = vand.u32 4294901760, %v545_v2  ;;  %s492_s27 = scalar_lea.vmem %s8685_s0, %s5297_s26  ;;  %v7467_v12 = vand.u32 4294901760, %v546_v8  ;;  %507 = vst.msk [vmem:[#allocation6 + $0x18] sm:$0xff] %vm503_vm7, %v7310_v1 }
  0x22   : > { %v508_v9 = vld [vmem:[%s492_s27] sm:$0xff]  ;;  %v509_v10 = vld [vmem:[%s492_s27 + $0x8] sm:$0xff]  ;;  %s5248_s27 = sshll.u32 %s485_s16, 4 }
  0x23   : > { %v651_v5 = vsub.f32 %v544_v0, %v562_v3  ;;  %v658_v6 = vsub.f32 %v545_v2, %v565_v4  ;;  %510 = vst.msk [vmem:[#allocation2 + $0x8] sm:$0xff] %vm493_vm0, %v508_v9  ;;  %511 = vst.msk [vmem:[#allocation2 + $0x10] sm:$0xff] %vm493_vm0, %v509_v10  ;;  %v7471_v13 = vpack.c.bf16 %v565_v4, %v562_v3  ;;  %s487_s17 = scalar_lea.vmem [#allocation7], %s5248_s27  ;;  %s7250_s27 = sshll.u32 %s7315_s22, 4  ;;  %s7251_s27 = int_to_ptr.vmem [resolvable:$false] %s7250_s27 }
  0x24   : > { %v665_v16 = vsub.f32 %v546_v8, %v7467_v12  ;;  %s5182_s23 = sshll.u32 %s487_s17, 4  ;;  %s7252_s1 = scalar_lea.vmem %s7251_s27, 512  ;;  %s8550_s23 = int_to_ptr.vmem [resolvable:$true] %s5182_s23 }
  0x25   : > { %v652_v7 = vand.u32 4294901760, %v651_v5  ;;  %v659_v11 = vand.u32 4294901760, %v658_v6  ;;  %6464 = vmatprep.subr.bf16.mxu1 %v7471_v13  ;;  %v6471_v29 = vpack.c.bf16 %v658_v6, %v651_v5  ;;  %s7246_s0 = scalar_lea.vmem %s8550_s23, 256  ;;  %p7253_p0 = scmp.lt.s32.totalorder %s8550_s23, %s7251_s27 }
  0x26   : > { %v7475_v19 = vand.u32 4294901760, %v665_v16  ;;  %6466 = vmatpush3.bf16.msra.mxu1 %v7471_v13  ;;  %p7247_p11 = scmp.ne.s32.totalorder %s8550_s23, %s7246_s0  ;;  %p7254_p1 = scmp.lt.s32.totalorder %s7252_s1, %s7246_s0 }
  0x27   : > { %v653_v14 = vsub.f32 %v651_v5, %v652_v7  ;;  %v660_v15 = vsub.f32 %v658_v6, %v659_v11  ;;  %5705 = vmatprep.subr.mxu1 %v7467_v12  ;;  %v6479_v30 = vpack.c.bf16 %v659_v11, %v652_v7 }
  0x28   : > { %v667_v21 = vsub.f32 %v665_v16, %v7475_v19  ;;  %p7248_p12 = pnand %p7247_p11, %p7435_p5  ;;  %p7255_p2 = por %p7254_p1, %p7253_p0 }
  0x29   : > { %v654_v17 = vand.u32 4294901760, %v653_v14  ;;  %v661_v18 = vand.u32 4294901760, %v660_v15 }
  0x2a   : > { %v516_v22 = vld [vmem:[#allocation2 + $0x8] sm:$0xff]  ;;  %v668_v24 = vand.u32 4294901760, %v667_v21  ;;  %5706 = vmatpush3.msra.mxu1 %v7467_v12  ;;  %v517_v27 = vld [vmem:[#allocation2 + $0x10] sm:$0xff]  ;;  %p7249_p13 = pneg %p7248_p12 }
  0x2b   : > { %v6467_v20 = vpack.c.bf16 %v661_v18, %v654_v17  ;;  %v529_v23 = vld [vmem:[#allocation2 + $0x9] sm:$0xff]  ;;  %520 = vrot.lane.b32.xlu0 %v516_v22, %s8618_s20  ;;  %v530_v28 = vld [vmem:[#allocation2 + $0x11] sm:$0xff] }
  0x2c   : > { %533 = vrot.lane.b32.xlu1 %v529_v23, %s8619_s24  ;;  %v512_v25 = vld [vmem:[#allocation2 + $0x7] sm:$0xff]  ;;  %v513_v26 = vld [vmem:[#allocation2 + $0xf] sm:$0xff]  ;;  %p7256_p3 = pnand %p7255_p2, %p7249_p13 }
  0x2d   : > { %6468 = vmatprep.subr.bf16.mxu0 %v6467_v20  ;;  %514 = vst.msk [vmem:[#allocation3] sm:$0xff] %vm493_vm0, %v512_v25  ;;  %515 = vst.msk [vmem:[#allocation3 + $0x8] sm:$0xff] %vm493_vm0, %v513_v26 }
  0x2e   : > { %6470 = vmatpush3.bf16.msra.mxu0 %v6467_v20 }
  0x2f   : > { %5714 = vmatprep.subr.mxu0 %v668_v24  ;;  %522 = vrot.lane.b32.xlu0 %v517_v27, %s8618_s20  ;;  %s8686_s20 = smov 16  }
  0x30   : > { %535 = vrot.lane.b32.xlu1 %v530_v28, %s8619_s24  ;;  %s7314_s24 = smov 32  }
  0x32   : > { %5715 = vmatpush3.msra.mxu0 %v668_v24 }
  0x33   : > { %6472 = vmatprep.subr.bf16.mxu0 %v6471_v29 }
  0x9d   : > { %v521_v31 = vpop.permute.xlu0 %520 }
  0x9e   : > { %v534_v32 = vpop.permute.xlu1 %533  ;;  %527 = vst.msk [vmem:[#allocation3] sm:$0xff] %vm526_vm1, %v521_v31 }
  0x9f   : > { %540 = vst.msk [vmem:[#allocation3] sm:$0xff] %vm539_vm2, %v534_v32 }
  0xa1   : > { %v523_v33 = vpop.permute.xlu0 %522 }
  0xa2   : > { %v536_v34 = vpop.permute.xlu1 %535  ;;  %528 = vst.msk [vmem:[#allocation3 + $0x8] sm:$0xff] %vm526_vm1, %v523_v33 }
  0xa3   : > { %541 = vst.msk [vmem:[#allocation3 + $0x8] sm:$0xff] %vm539_vm2, %v536_v34  ;;  %v8644_v34 = vmov -1.0  }
  0xa6   : > { %v542_v35 = vld [vmem:[#allocation3] sm:$0xff] }
  0xa7   : > { %v556_v36 = vsel %vm554_vm3, %v542_v35, 0 }
  0xa8   : > { %v629_v37 = vand.u32 4294901760, %v556_v36 }
  0xaa   : > { %5716 = vmatprep.mubr.f32.mxu0 %v629_v37  ;;  %v543_v38 = vld [vmem:[#allocation3 + $0x8] sm:$0xff]  ;;  %v630_v39 = vsub.f32 %v556_v36, %v629_v37 }
  0xab   : > { %v559_v40 = vsel %vm554_vm3, %v543_v38, 0 }
  0xac   : > { %v639_v41 = vand.u32 4294901760, %v559_v40  ;;  %v631_v42 = vand.u32 4294901760, %v630_v39 }
  0xae   : > { %5717 = vmatmul.mubr.f32.vlgmr.msra.gmra.mrb[0].mxu0 %v639_v41  ;;  %v632_v43 = vsub.f32 %v630_v39, %v631_v42  ;;  %v640_v44 = vsub.f32 %v559_v40, %v639_v41 }
  0xaf   : > { %6474 = vmatpush3.bf16.msra.mxu0 %v6471_v29  ;;  %5725 = vmatprep.mubr.f32.mxu0 %v630_v39 }
  0xb0   : > { %5723 = vmatprep.subr.mxu0 %v665_v16  ;;  %v633_v45 = vand.u32 4294901760, %v632_v43  ;;  %v641_v46 = vand.u32 4294901760, %v640_v44 }
  0xb2   : > { %5707 = vmatprep.mubr.f32.mxu1 %v633_v45  ;;  %v642_v47 = vsub.f32 %v640_v44, %v641_v46 }
  0xb3   : > { %5724 = vmatpush3.msra.mxu0 %v665_v16 }
  0xb4   : > { %6476 = vmatprep.subr.bf16.mxu0 %v7471_v13  ;;  %v643_v48 = vand.u32 4294901760, %v642_v47  ;;  %v1165_v47 = vld [vmem:[%s8602_s3 + $0x8] sm:$0xff] }
  0xb6   : > { %5708 = vmatmul.mubr.f32.vlgmr.msra.gmra.mrb[0].mxu1 %v643_v48  ;;  %5726 = vmatmul.mubr.f32.vlgmr.msra.gmra.mrb[0].mxu0 %v640_v44  ;;  %v1166_v48 = vld [vmem:[%s8602_s3 + $0x10] sm:$0xff] }
  0xb7   : > { %6478 = vmatpush3.bf16.msra.mxu0 %v7471_v13  ;;  %5734 = vmatprep.mubr.f32.mxu0 %v631_v42 }
  0xb8   : > { %5732 = vmatprep.subr.mxu0 %v7467_v12 }
  0xbb   : > { %5733 = vmatpush3.msra.mxu0 %v7467_v12 }
  0xbc   : > { %6480 = vmatprep.subr.bf16.mxu0 %v6479_v30 }
  0xbe   : > { %5735 = vmatmul.mubr.f32.vlgmr.msra.gmra.mrb[0].mxu0 %v641_v46  ;;  %v1164_v46 = vld [vmem:[%s8602_s3] sm:$0xff] }
  0xbf   : > { %6482 = vmatpush3.bf16.msra.mxu0 %v6479_v30  ;;  %5743 = vmatprep.mubr.f32.mxu0 %v629_v37 }
  0xc0   : > { %5741 = vmatprep.subr.mxu0 %v7475_v19 }
  0xc3   : > { %5742 = vmatpush3.msra.mxu0 %v7475_v19 }
  0xc4   : > { %6484 = vmatprep.subr.bf16.mxu0 %v7471_v13 }
  0xc6   : > { %5744 = vmatmul.mubr.f32.vlgmr.msra.gmra.mrb[0].mxu0 %v639_v41 }
  0xc7   : > { %6486 = vmatpush3.bf16.msra.mxu0 %v7471_v13  ;;  %5752 = vmatprep.mubr.f32.mxu0 %v629_v37 }
  0xc8   : > { %5750 = vmatprep.subr.mxu0 %v7467_v12 }
  0xcb   : > { %5751 = vmatpush3.msra.mxu0 %v7467_v12 }
  0xce   : > { %5753 = vmatmul.mubr.f32.vlgmr.msra.gmra.mrb[0].mxu0 %v639_v41 }
 0x189   : > { %v5709_v49 = vpop.f32.mrb[0].mxu1 }
 0x18a   : > { %v635_v50 = vpop.f32.mrb[1].mxu1  ;;  %v646_v52 = vadd.f32 %v5709_v49, %v5251_v51  ;;  %v1185_v49 = vand.u32 4294901760, %v1164_v46 }
 0x18b   : > { %v636_v53 = vadd.f32 %v5251_v51, %v635_v50  ;;  %v1188_v50 = vand.u32 4294901760, %v1165_v47  ;;  %v1167_v51 = vld [vmem:[%s8602_s3 + $0x18] sm:$0xff] }
 0x1a1   : > { %v5754_v54 = vpop.f32.mrb[0].mxu0 }
 0x1a2   : > { %v7088_v55 = vadd.f32 %v5754_v54, %v646_v52  ;;  %v1066_v56 = vpop.f32.mrb[1].mxu0  ;;  %v1191_v52 = vand.u32 4294901760, %v1166_v48  ;;  %v1169_v54 = vld [vmem:[%s8602_s3 + $0x28] sm:$0xff] }
 0x1a3   : > { %v7090_v57 = vadd.f32 %v1066_v56, %v636_v53  ;;  %v1168_v53 = vld [vmem:[%s8602_s3 + $0x20] sm:$0xff]  ;;  %v7530_v56 = vpack.c.bf16 %v1188_v50, %v1185_v49 }
 0x1a4   : > { %v1079_v58 = vmul.f32 0.70710677, %v7088_v55  ;;  %v1077_v40 = vmul.f32 0.5, %v7088_v55  ;;  %v1194_v55 = vand.u32 4294901760, %v1167_v51 }
 0x1a5   : > { %v1078_v59 = vmul.f32 0.70710677, %v7090_v57  ;;  %v1076_v42 = vmul.f32 0.5, %v7090_v57  ;;  %v1197_v57 = vand.u32 4294901760, %v1168_v53  ;;  %6488 = vmatprep.subr.bf16.mxu1 %v7530_v56 }
 0x1a6   : > { %v1085_v60 = vand.u32 2147483647, %v1079_v58  ;;  %vm1081_vm5 = vcmp.ge.f32.partialorder %v1079_v58, 0.0  ;;  %v1200_v58 = vand.u32 4294901760, %v1169_v54  ;;  %6490 = vmatpush3.bf16.msra.mxu1 %v7530_v56 }
 0x1a7   : > { %v1084_v61 = vand.u32 2147483647, %v1078_v59  ;;  %vm1080_vm6 = vcmp.ge.f32.partialorder %v1078_v59, 0.0  ;;  %v1083_v35 = vsel %vm1081_vm5, 1.0, %v8644_v34  ;;  %v7532_v59 = vpack.c.bf16 %v1194_v55, %v1191_v52 }
 0x1a8   : > { %v1087_v62 = vmul.f32 0.3275911, %v1085_v60  ;;  %v1113_v3 = vsub.f32 0.0, %v1085_v60  ;;  %v1082_v38 = vsel %vm1080_vm6, 1.0, %v8644_v34 }
 0x1a9   : > { %v1086_v63 = vmul.f32 0.3275911, %v1084_v61  ;;  %v1112_v4 = vsub.f32 0.0, %v1084_v61  ;;  %6492 = vmatprep.subr.bf16.mxu1 %v7532_v59 }
 0x1aa   : > { %v1089_v0 = vadd.f32 1.0, %v1087_v62  ;;  %v1115_v6 = vmul.f32 %v1113_v3, %v1085_v60  ;;  %6494 = vmatpush3.bf16.msra.mxu1 %v7532_v59  ;;  %v1284_v3 = vsub.f32 %v1165_v47, %v1188_v50 }
 0x1ab   : > { %v1088_v2 = vadd.f32 1.0, %v1086_v63  ;;  %v1114_v9 = vmul.f32 %v1112_v4, %v1084_v61  ;;  %v7537_v61 = vpack.c.bf16 %v1200_v58, %v1197_v57 }
 0x1ac   : > { %7214 = vrcp.f32 %v1089_v0  ;;  %v1118_v12 = vmul.f32 1.442695, %v1115_v6 }
 0x1ad   : > { %7216 = vrcp.f32 %v1088_v2  ;;  %v1116_v15 = vmul.f32 1.442695, %v1114_v9  ;;  %v1277_v2 = vsub.f32 %v1164_v46, %v1185_v49  ;;  %6496 = vmatprep.subr.bf16.mxu1 %v7537_v61 }
 0x1ae   : > { %7218 = vpow2.f32 %v1118_v12  ;;  %6498 = vmatpush3.bf16.msra.mxu1 %v7537_v61 }
 0x1af   : > { %7220 = vpow2.f32 %v1116_v15  ;;  %v1278_v6 = vand.u32 4294901760, %v1277_v2 }
 0x1b6   : > { %v7215_v5 = vpop.eup %7214 }
 0x1b7   : > { %v7217_v7 = vpop.eup %7216  ;;  %v1095_v8 = vmul.f32 1.0614054, %v7215_v5 }
 0x1b8   : > { %v1094_v10 = vmul.f32 1.0614054, %v7217_v7  ;;  %v7219_v28 = vpop.eup %7218 }
 0x1b9   : > { %v1097_v11 = vadd.f32 -1.4531521, %v1095_v8  ;;  %v7221_v30 = vpop.eup %7220  ;;  %v1279_v8 = vsub.f32 %v1277_v2, %v1278_v6 }
 0x1ba   : > { %v1096_v13 = vadd.f32 -1.4531521, %v1094_v10  ;;  %v1291_v10 = vsub.f32 %v1166_v48, %v1191_v52 }
 0x1bb   : > { %v1099_v14 = vmul.f32 %v7215_v5, %v1097_v11  ;;  %v1298_v11 = vsub.f32 %v1167_v51, %v1194_v55  ;;  %v1280_v12 = vand.u32 4294901760, %v1279_v8  ;;  %v1743_v55 = vlaneseq }
 0x1bc   : > { %v1098_v16 = vmul.f32 %v7217_v7, %v1096_v13 }
 0x1bd   : > { %v1101_v17 = vadd.f32 1.4214138, %v1099_v14  ;;  %v1292_v14 = vand.u32 4294901760, %v1291_v10  ;;  %v1299_v15 = vand.u32 4294901760, %v1298_v11 }
 0x1be   : > { %v1100_v18 = vadd.f32 1.4214138, %v1098_v16 }
 0x1bf   : > { %v1103_v19 = vmul.f32 %v7215_v5, %v1101_v17  ;;  %v1293_v17 = vsub.f32 %v1291_v10, %v1292_v14 }
 0x1c0   : > { %v1102_v20 = vmul.f32 %v7217_v7, %v1100_v18  ;;  %v1300_v18 = vsub.f32 %v1298_v11, %v1299_v15 }
 0x1c1   : > { %v1105_v21 = vadd.f32 -0.28449672, %v1103_v19  ;;  %v1305_v19 = vsub.f32 %v1168_v53, %v1197_v57  ;;  %v5252_v57 = vld [vmem:[%s8603_s4] ss:$0 sm:$0xff] }
 0x1c2   : > { %v1104_v22 = vadd.f32 -0.28449672, %v1102_v20  ;;  %v1312_v20 = vsub.f32 %v1169_v54, %v1200_v58 }
 0x1c3   : > { %v1107_v23 = vmul.f32 %v7215_v5, %v1105_v21  ;;  %v1294_v21 = vand.u32 4294901760, %v1293_v17 }
 0x1c4   : > { %v1106_v24 = vmul.f32 %v7217_v7, %v1104_v22  ;;  %v1301_v22 = vand.u32 4294901760, %v1300_v18 }
 0x1c5   : > { %v1109_v25 = vadd.f32 0.2548296, %v1107_v23  ;;  %v1306_v23 = vand.u32 4294901760, %v1305_v19 }
 0x1c6   : > { %v1108_v26 = vadd.f32 0.2548296, %v1106_v24  ;;  %v1313_v24 = vand.u32 4294901760, %v1312_v20 }
 0x1c7   : > { %v1111_v27 = vmul.f32 %v7215_v5, %v1109_v25  ;;  %v6503_v25 = vpack.c.bf16 %v1301_v22, %v1294_v21 }
 0x1c8   : > { %v1110_v29 = vmul.f32 %v7217_v7, %v1108_v26  ;;  %v1285_v7 = vand.u32 4294901760, %v1284_v3  ;;  %v1307_v26 = vsub.f32 %v1305_v19, %v1306_v23 }
 0x1c9   : > { %v1121_v31 = vmul.f32 %v7219_v28, %v1111_v27  ;;  %v1314_v27 = vsub.f32 %v1312_v20, %v1313_v24 }
 0x1ca   : > { %v1120_v32 = vmul.f32 %v7221_v30, %v1110_v29  ;;  %v1286_v9 = vsub.f32 %v1284_v3, %v1285_v7  ;;  %v1308_v28 = vand.u32 4294901760, %v1307_v26 }
 0x1cb   : > { %v1123_v33 = vsub.f32 1.0, %v1121_v31  ;;  %v1315_v29 = vand.u32 4294901760, %v1314_v27  ;;  %v6511_v31 = vpack.c.bf16 %v1284_v3, %v1277_v2 }
 0x1cc   : > { %v1122_v36 = vsub.f32 1.0, %v1120_v32  ;;  %v1287_v13 = vand.u32 4294901760, %v1286_v9  ;;  %v6515_v32 = vpack.c.bf16 %v1298_v11, %v1291_v10 }
 0x1cd   : > { %v1125_v37 = vmul.f32 %v1123_v33, %v1083_v35  ;;  %v6507_v30 = vpack.c.bf16 %v1315_v29, %v1308_v28  ;;  %v6519_v33 = vpack.c.bf16 %v1312_v20, %v1305_v19  ;;  %v6535_v35 = vpack.c.bf16 %v1285_v7, %v1278_v6 }
 0x1ce   : > { %v1124_v39 = vmul.f32 %v1122_v36, %v1082_v38  ;;  %v6499_v16 = vpack.c.bf16 %v1287_v13, %v1280_v12  ;;  %v6539_v36 = vpack.c.bf16 %v1299_v15, %v1292_v14 }
 0x1cf   : > { %v1127_v41 = vadd.f32 1.0, %v1125_v37  ;;  %v6543_v37 = vpack.c.bf16 %v1313_v24, %v1306_v23 }
 0x1d0   : > { %v1126_v43 = vadd.f32 1.0, %v1124_v39  ;;  %6500 = vmatprep.subr.bf16.mxu1 %v6499_v16 }
 0x1d1   : > { %v1129_v44 = vmul.f32 %v1127_v41, %v1077_v40 }
 0x1d2   : > { %v1128_v45 = vmul.f32 %v1126_v43, %v1076_v42 }
 0x1d3   : > { %1131 = vst.msk [vmem:[#allocation4 + $0x10] sm:$0xff] %vm498_vm4, %v1129_v44 }
 0x1d4   : > { %1130 = vst.msk [vmem:[#allocation4 + $0x8] sm:$0xff] %vm498_vm4, %v1128_v45 }
 0x1da   : > { %v1137_v60 = vld [vmem:[#allocation4 + $0x10] sm:$0xff] }
 0x1db   : > { %1142 = vrot.lane.b32.xlu1 %v1137_v60, %s8686_s20  ;;  %v1136_v62 = vld [vmem:[#allocation4 + $0x8] sm:$0xff]  ;;  %v1150_v4 = vld [vmem:[#allocation4 + $0x11] sm:$0xff]  ;;  %v7569_v60 = vshrl.u32 %v1743_v55, 7 }
 0x1dc   : > { %v1133_v63 = vld [vmem:[#allocation4 + $0xf] sm:$0xff]  ;;  %1140 = vrot.lane.b32.xlu0 %v1136_v62, %s8686_s20  ;;  %v1132_v0 = vld [vmem:[#allocation4 + $0x7] sm:$0xff] }
 0x1dd   : > { %1135 = vst.msk [vmem:[#allocation5 + $0x8] sm:$0xff] %vm498_vm4, %v1133_v63  ;;  %1134 = vst.msk [vmem:[#allocation5] sm:$0xff] %vm498_vm4, %v1132_v0  ;;  %v1149_v5 = vld [vmem:[#allocation4 + $0x9] sm:$0xff]  ;;  %v8625_v2 = vsub.s32 2, %v7569_v60  ;;  %v8623_v7 = vsub.s32 4, %v7569_v60  ;;  %v8622_v14 = vsub.s32 5, %v7569_v60 }
 0x1de   : > { %8687 = vst [vmem:[#allocation13_spill] sm:$0xff] %v7569_v60  ;;  %v1740_v0 = vld [vmem:[%s8604_s5] sm:$0x7f]  ;;  %v8621_v24 = vsub.s32 6, %v7569_v60 }
 0x1df   : > { %1155 = vrot.lane.b32.xlu1 %v1150_v4, %s7314_s24  ;;  %v1766_v6 = vrot.slane %v1740_v0, %v8625_v2  ;;  %v1785_v23 = vrot.slane %v1740_v0, %v8623_v7 }
 0x1e0   : > { %1153 = vrot.lane.b32.xlu0 %v1149_v5, %s7314_s24  ;;  %v8624_v5 = vsub.s32 3, %v7569_v60  ;;  %s8555_s24 = scalar_lea.hbm %s8614_s15, %s5298_s25 }
 0x1e2   : > { %v1776_v13 = vrot.slane %v1740_v0, %v8624_v5 }
 0x24d   : > { %v1143_v38 = vpop.permute.xlu1 %1142 }
 0x24e   : > { %1148 = vst.msk [vmem:[#allocation5 + $0x8] sm:$0xff] %vm1146_vm8, %v1143_v38  ;;  %v1141_v39 = vpop.permute.xlu0 %1140  ;;  %v1803_v38 = vrot.slane %v1740_v0, %v8621_v24 }
 0x24f   : > { %1147 = vst.msk [vmem:[#allocation5] sm:$0xff] %vm1146_vm8, %v1141_v39 }
 0x251   : > { %v1156_v40 = vpop.permute.xlu1 %1155 }
 0x252   : > { %1161 = vst.msk [vmem:[#allocation5 + $0x8] sm:$0xff] %vm1159_vm9, %v1156_v40  ;;  %v1154_v41 = vpop.permute.xlu0 %1153 }
 0x253   : > { %1160 = vst.msk [vmem:[#allocation5] sm:$0xff] %vm1159_vm9, %v1154_v41 }
 0x259   : > { %v1163_v42 = vld [vmem:[#allocation5 + $0x8] sm:$0xff] }
 0x25a   : > { %v1162_v43 = vld [vmem:[#allocation5] sm:$0xff]  ;;  %v1182_v44 = vsel %vm1177_vm10, %v1163_v42, 0 }
 0x25b   : > { %v1179_v45 = vsel %vm1177_vm10, %v1162_v43, 0  ;;  %v1265_v46 = vand.u32 4294901760, %v1182_v44 }
 0x25c   : > { %v1255_v47 = vand.u32 4294901760, %v1179_v45 }
 0x25d   : > { %v1266_v48 = vsub.f32 %v1182_v44, %v1265_v46 }
 0x25e   : > { %v1256_v49 = vsub.f32 %v1179_v45, %v1255_v47 }
 0x25f   : > { %v1267_v1 = vand.u32 4294901760, %v1266_v48 }
 0x260   : > { %v1257_v50 = vand.u32 4294901760, %v1256_v49 }
 0x261   : > { %v1268_v51 = vsub.f32 %v1266_v48, %v1267_v1 }
 0x262   : > { %v1258_v52 = vsub.f32 %v1256_v49, %v1257_v50 }
 0x263   : > { %v1269_v54 = vand.u32 4294901760, %v1268_v51 }
 0x264   : > { %v1259_v53 = vand.u32 4294901760, %v1258_v52 }
 0x266   : > { %5767 = vmatprep.mubr.f32.mxu1 %v1259_v53 }
 0x267   : > { %5768 = vmatmul.mubr.f32.vlgmr.msra.gmra.mrb[2].mxu1 %v1269_v54 }
 0x268   : > { %6502 = vmatpush3.bf16.msra.mxu1 %v6499_v16  ;;  %5782 = vmatprep.mubr.f32.mxu1 %v1255_v47 }
 0x269   : > { %6504 = vmatprep.subr.bf16.mxu1 %v6503_v25 }
 0x26c   : > { %6506 = vmatpush3.bf16.msra.mxu1 %v6503_v25 }
 0x26d   : > { %6508 = vmatprep.subr.bf16.mxu1 %v6507_v30 }
 0x270   : > { %6510 = vmatpush3.bf16.msra.mxu1 %v6507_v30 }
 0x271   : > { %6512 = vmatprep.subr.bf16.mxu1 %v6511_v31 }
 0x273   : > { %5783 = vmatmul.mubr.f32.vlgmr.msra.gmra.mrb[2].mxu1 %v1265_v46 }
 0x274   : > { %6514 = vmatpush3.bf16.msra.mxu1 %v6511_v31  ;;  %5797 = vmatprep.mubr.f32.mxu1 %v1256_v49  ;;  %v1794_v31 = vrot.slane %v1740_v0, %v8622_v14 }
 0x275   : > { %6516 = vmatprep.subr.bf16.mxu1 %v6515_v32 }
 0x278   : > { %6518 = vmatpush3.bf16.msra.mxu1 %v6515_v32 }
 0x279   : > { %6520 = vmatprep.subr.bf16.mxu1 %v6519_v33 }
 0x27c   : > { %6522 = vmatpush3.bf16.msra.mxu1 %v6519_v33 }
 0x27d   : > { %6524 = vmatprep.subr.bf16.mxu1 %v7530_v56 }
 0x27f   : > { %5798 = vmatmul.mubr.f32.vlgmr.msra.gmra.mrb[2].mxu1 %v1266_v48  ;;  %v5253_v48 = vld [vmem:[%s8605_s6] ss:$0 sm:$0xff] }
 0x280   : > { %6526 = vmatpush3.bf16.msra.mxu1 %v7530_v56  ;;  %5812 = vmatprep.mubr.f32.mxu1 %v1257_v50 }
 0x281   : > { %6528 = vmatprep.subr.bf16.mxu1 %v7532_v59 }
 0x284   : > { %6530 = vmatpush3.bf16.msra.mxu1 %v7532_v59 }
 0x285   : > { %6532 = vmatprep.subr.bf16.mxu1 %v7537_v61 }
 0x288   : > { %6534 = vmatpush3.bf16.msra.mxu1 %v7537_v61 }
 0x289   : > { %6536 = vmatprep.subr.bf16.mxu1 %v6535_v35 }
 0x28b   : > { %5813 = vmatmul.mubr.f32.vlgmr.msra.gmra.mrb[2].mxu1 %v1267_v1 }
 0x28c   : > { %6538 = vmatpush3.bf16.msra.mxu1 %v6535_v35  ;;  %5827 = vmatprep.mubr.f32.mxu1 %v1255_v47 }
 0x28d   : > { %6540 = vmatprep.subr.bf16.mxu1 %v6539_v36 }
 0x290   : > { %6542 = vmatpush3.bf16.msra.mxu1 %v6539_v36 }
 0x291   : > { %6544 = vmatprep.subr.bf16.mxu1 %v6543_v37 }
 0x294   : > { %6546 = vmatpush3.bf16.msra.mxu1 %v6543_v37 }
 0x295   : > { %6548 = vmatprep.subr.bf16.mxu1 %v7530_v56 }
 0x297   : > { %5828 = vmatmul.mubr.f32.vlgmr.msra.gmra.mrb[2].mxu1 %v1265_v46 }
 0x298   : > { %6550 = vmatpush3.bf16.msra.mxu1 %v7530_v56  ;;  %5842 = vmatprep.mubr.f32.mxu1 %v1255_v47 }
 0x299   : > { %6552 = vmatprep.subr.bf16.mxu1 %v7532_v59 }
 0x29c   : > { %6554 = vmatpush3.bf16.msra.mxu1 %v7532_v59  ;;  %v8627_v59 = vsub.s32 0, %v7569_v60 }
 0x29d   : > { %6556 = vmatprep.subr.bf16.mxu1 %v7537_v61 }
 0x29e   : > { %v1746_v3 = vrot.slane %v1740_v0, %v8627_v59 }
 0x2a0   : > { %6558 = vmatpush3.bf16.msra.mxu1 %v7537_v61  ;;  %v8626_v61 = vsub.s32 1, %v7569_v60 }
 0x2a2   : > { %v1756_v4 = vrot.slane %v1740_v0, %v8626_v61 }
 0x2a3   : > { %5843 = vmatmul.mubr.f32.vlgmr.msra.gmra.mrb[2].mxu1 %v1265_v46 }
 0x376   : > { %v5844_v58 = vpop.f32.mrb[2].mxu1 }
 0x377   : > { %v7571_v62 = vadd.f32 %v5844_v58, %v5252_v57  ;;  %v1728_v56 = vpop.f32.mrb[3].mxu1 }
 0x378   : > { %v7573_v63 = vadd.f32 %v5252_v57, %v1728_v56 }
 0x379   : > { %8688 = vst [vmem:[#allocation14_spill] sm:$0xff] %v7571_v62  ;;  %1739 = vst.msk [vmem:[#allocation6 + $0x10] sm:$0xff] %vm503_vm7, %v7571_v62 }
 0x37a   : > { %8689 = vst [vmem:[#allocation15_spill] sm:$0xff] %v7573_v63  ;;  %1738 = vst.msk [vmem:[#allocation6 + $0x8] sm:$0xff] %vm503_vm7, %v7573_v63 }
 0x380   : > { %v1772_v17 = vld [vmem:[#allocation6 + $0x10] sm:$0xff] }
 0x381   : > { %v1742_v8 = vld [vmem:[#allocation6 + $0xa] sm:$0xff]  ;;  %v1741_v15 = vld [vmem:[#allocation6 + $0x2] sm:$0xff]  ;;  %v1781_v26 = vld [vmem:[#allocation6 + $0x12] sm:$0xff]  ;;  %v1778_v30 = vmul.f32 %v1776_v13, %v1772_v17 }
 0x382   : > { %v1752_v9 = vld [vmem:[#allocation6 + $0xc] sm:$0xff]  ;;  %v1748_v11 = vmul.f32 %v1746_v3, %v1742_v8  ;;  %v1751_v16 = vld [vmem:[#allocation6 + $0x4] sm:$0xff]  ;;  %v1747_v18 = vmul.f32 %v1746_v3, %v1741_v15  ;;  %v1790_v32 = vld [vmem:[#allocation6 + $0x14] sm:$0xff]  ;;  %v1787_v37 = vmul.f32 %v1785_v23, %v1781_v26  ;;  %v1786_v41 = vmul.f32 %v1785_v23, %v1742_v8 }
 0x383   : > { %v1762_v10 = vld [vmem:[#allocation6 + $0xe] sm:$0xff]  ;;  %v1758_v12 = vmul.f32 %v1756_v4, %v1752_v9  ;;  %v1757_v19 = vmul.f32 %v1756_v4, %v1751_v16  ;;  %v1761_v20 = vld [vmem:[#allocation6 + $0x6] sm:$0xff]  ;;  %v1799_v39 = vld [vmem:[#allocation6 + $0x16] sm:$0xff]  ;;  %v1796_v43 = vmul.f32 %v1794_v31, %v1790_v32  ;;  %v1795_v45 = vmul.f32 %v1794_v31, %v1752_v9 }
 0x384   : > { %v1768_v22 = vmul.f32 %v1766_v6, %v1762_v10  ;;  %v1771_v25 = vld [vmem:[#allocation6 + $0x8] sm:$0xff]  ;;  %v1767_v28 = vmul.f32 %v1766_v6, %v1761_v20  ;;  %v1805_v47 = vmul.f32 %v1803_v38, %v1799_v39  ;;  %v1804_v1 = vmul.f32 %v1803_v38, %v1762_v10  ;;  %v1865_v17 = vld [vmem:[%s8608_s9 + $0x18] sm:$0xff] }
 0x385   : > { %v1760_v21 = vadd.f32 %v1758_v12, %v1748_v11  ;;  %v1759_v27 = vadd.f32 %v1757_v19, %v1747_v18  ;;  %v1777_v35 = vmul.f32 %v1776_v13, %v1771_v25  ;;  %v1862_v11 = vld [vmem:[%s8608_s9] sm:$0xff]  ;;  %v1863_v12 = vld [vmem:[%s8608_s9 + $0x8] sm:$0xff]  ;;  %v1864_v13 = vld [vmem:[%s8608_s9 + $0x10] sm:$0xff]  ;;  %v1889_v19 = vand.u32 4294901760, %v1865_v17 }
 0x386   : > { %v1880_v15 = vand.u32 4294901760, %v1862_v11  ;;  %v1883_v16 = vand.u32 4294901760, %v1863_v12  ;;  %v1886_v18 = vand.u32 4294901760, %v1864_v13 }
 0x387   : > { %v1770_v29 = vadd.f32 %v1768_v22, %v1760_v21  ;;  %v1769_v33 = vadd.f32 %v1767_v28, %v1759_v27 }
 0x388   : > { %v7622_v20 = vpack.c.bf16 %v1883_v16, %v1880_v15  ;;  %v7624_v21 = vpack.c.bf16 %v1889_v19, %v1886_v18  ;;  %v1970_v22 = vsub.f32 %v1862_v11, %v1880_v15  ;;  %v1977_v23 = vsub.f32 %v1863_v12, %v1883_v16 }
 0x389   : > { %v1780_v36 = vadd.f32 %v1778_v30, %v1770_v29  ;;  %v1779_v40 = vadd.f32 %v1777_v35, %v1769_v33  ;;  %v1984_v29 = vsub.f32 %v1864_v13, %v1886_v18  ;;  %v1991_v30 = vsub.f32 %v1865_v17, %v1889_v19 }
 0x38a   : > { %6560 = vmatprep.subr.bf16.mxu0 %v7622_v20  ;;  %v1971_v25 = vand.u32 4294901760, %v1970_v22  ;;  %v1978_v26 = vand.u32 4294901760, %v1977_v23 }
 0x38b   : > { %v1789_v42 = vadd.f32 %v1787_v37, %v1780_v36  ;;  %v1788_v44 = vadd.f32 %v1786_v41, %v1779_v40  ;;  %6562 = vmatpush3.bf16.msra.mxu0 %v7622_v20  ;;  %v1985_v33 = vand.u32 4294901760, %v1984_v29  ;;  %v1992_v35 = vand.u32 4294901760, %v1991_v30 }
 0x38c   : > { %6564 = vmatprep.subr.bf16.mxu0 %v7624_v21  ;;  %v1972_v27 = vsub.f32 %v1970_v22, %v1971_v25  ;;  %v1979_v28 = vsub.f32 %v1977_v23, %v1978_v26 }
 0x38d   : > { %v1798_v46 = vadd.f32 %v1796_v43, %v1789_v42  ;;  %v1797_v49 = vadd.f32 %v1795_v45, %v1788_v44  ;;  %v1986_v37 = vsub.f32 %v1984_v29, %v1985_v33  ;;  %v1993_v38 = vsub.f32 %v1991_v30, %v1992_v35 }
 0x38e   : > { %v1973_v31 = vand.u32 4294901760, %v1972_v27  ;;  %v1980_v32 = vand.u32 4294901760, %v1979_v28  ;;  %v6575_v42 = vpack.c.bf16 %v1977_v23, %v1970_v22  ;;  %v6579_v43 = vpack.c.bf16 %v1991_v30, %v1984_v29  ;;  %v2462_v22 = vld [vmem:[%s8610_s11 + $0x8] sm:$0xff]  ;;  %v2465_v30 = vld [vmem:[%s8610_s11 + $0x20] sm:$0xff] }
 0x38f   : > { %v1807_v50 = vadd.f32 %v1805_v47, %v1798_v46  ;;  %v1806_v51 = vadd.f32 %v1804_v1, %v1797_v49  ;;  %6566 = vmatpush3.bf16.msra.mxu0 %v7624_v21  ;;  %v1987_v39 = vand.u32 4294901760, %v1986_v37  ;;  %v1994_v40 = vand.u32 4294901760, %v1993_v38  ;;  %v2468_v37 = vld [vmem:[%s8610_s11 + $0x38] sm:$0xff] }
 0x390   : > { %v6567_v36 = vpack.c.bf16 %v1980_v32, %v1973_v31  ;;  %v6591_v44 = vpack.c.bf16 %v1978_v26, %v1971_v25  ;;  %v6595_v45 = vpack.c.bf16 %v1992_v35, %v1985_v33  ;;  %v2488_v25 = vand.u32 4294901760, %v2462_v22  ;;  %v2466_v31 = vld [vmem:[%s8610_s11 + $0x28] sm:$0xff] }
 0x391   : > { %v1816_v52 = vadd.f32 %v5253_v48, %v1807_v50  ;;  %v1815_v53 = vadd.f32 %v5253_v48, %v1806_v51  ;;  %v6571_v41 = vpack.c.bf16 %v1994_v40, %v1987_v39  ;;  %v2497_v32 = vand.u32 4294901760, %v2465_v30 }
 0x392   : > { %6568 = vmatprep.subr.bf16.mxu0 %v6567_v36  ;;  %v2500_v33 = vand.u32 4294901760, %v2466_v31  ;;  %v2506_v39 = vand.u32 4294901760, %v2468_v37 }
 0x393   : > { %v1820_v54 = vsel %vm503_vm7, %v1816_v52, 0.0  ;;  %v1817_v55 = vsel %vm503_vm7, %v1815_v53, 0.0 }
 0x394   : > { %1821 = vadd.xlane.f32.xlu1 %v1820_v54  ;;  %1818 = vadd.xlane.f32.xlu0 %v1817_v55  ;;  %v5255_v54 = vld [vmem:[%s8607_s8] ss:$0 sm:$0xff]  ;;  %v7672_v35 = vpack.c.bf16 %v2500_v33, %v2497_v32 }
 0x421   : > { %v1822_v57 = vpop.xlane.xlu1 %1821  ;;  %v1819_v56 = vpop.xlane.xlu0 %1818 }
 0x422   : > { %v1825_v58 = vmul.f32 0.03125, %v1822_v57  ;;  %v1824_v0 = vmul.f32 0.03125, %v1819_v56 }
 0x424   : > { %v1827_v3 = vsub.f32 %v1816_v52, %v1825_v58  ;;  %v1826_v4 = vsub.f32 %v1815_v53, %v1824_v0  ;;  %v5254_v52 = vld [vmem:[%s8606_s7] ss:$0 sm:$0xff] }
 0x426   : > { %v1828_v6 = vmul.f32 %v1826_v4, %v1826_v4  ;;  %v1829_v9 = vmul.f32 %v1827_v3, %v1827_v3 }
 0x428   : > { %v1830_v8 = vsel %vm503_vm7, %v1828_v6, 0.0  ;;  %v1833_v10 = vsel %vm503_vm7, %v1829_v9, 0.0 }
 0x429   : > { %1831 = vadd.xlane.f32.xlu0 %v1830_v8 }
 0x42d   : > { %1834 = vadd.xlane.f32.xlu0 %v1833_v10 }
 0x4b6   : > { %v1832_v46 = vpop.xlane.xlu0 %1831 }
 0x4b7   : > { %v1836_v47 = vmul.f32 0.03125, %v1832_v46  ;;  %v7703_v46 = vld [vmem:[%s8610_s11 + $0x50] sm:$0xff] }
 0x4b9   : > { %v1838_v48 = vadd.f32 1e-06, %v1836_v47  ;;  %v7708_v47 = vld [vmem:[%s8610_s11 + $0x58] sm:$0xff] }
 0x4ba   : > { %v1835_v49 = vpop.xlane.xlu0 %1834 }
 0x4bb   : > { %7222 = vrsqrt.f32 %v1838_v48  ;;  %v1837_v1 = vmul.f32 0.03125, %v1835_v49  ;;  %v2515_v48 = vand.u32 4294901760, %v7703_v46  ;;  %v2518_v49 = vand.u32 4294901760, %v7708_v47 }
 0x4bd   : > { %v1839_v50 = vadd.f32 1e-06, %v1837_v1  ;;  %v7714_v1 = vpack.c.bf16 %v2518_v49, %v2515_v48 }
 0x4bf   : > { %7224 = vrsqrt.f32 %v1839_v50  ;;  %v7719_v50 = vld [vmem:[%s8610_s11 + $0x60] sm:$0xff] }
 0x4c5   : > { %v7223_v51 = vpop.eup %7222 }
 0x4c6   : > { %v1842_v53 = vmul.f32 %v7223_v51, %v1826_v4  ;;  %v7724_v51 = vld [vmem:[%s8610_s11 + $0x68] sm:$0xff] }
 0x4c8   : > { %v1851_v55 = vmul.f32 %v5254_v52, %v1842_v53  ;;  %v2524_v53 = vand.u32 4294901760, %v7724_v51 }
 0x4c9   : > { %v7225_v57 = vpop.eup %7224 }
 0x4ca   : > { %v1843_v58 = vmul.f32 %v7225_v57, %v1827_v3  ;;  %v1860_v56 = vadd.f32 %v5255_v54, %v1851_v55  ;;  %v2461_v3 = vld [vmem:[%s8610_s11] sm:$0xff]  ;;  %v7738_v57 = vsub.f32 %v2462_v22, %v2488_v25  ;;  %v7781_v22 = vsub.f32 %v2465_v30, %v2497_v32 }
 0x4cb   : > { %v2485_v23 = vand.u32 4294901760, %v2461_v3  ;;  %v7799_v32 = vsub.f32 %v2468_v37, %v2506_v39 }
 0x4cc   : > { %v1852_v0 = vmul.f32 %v5254_v52, %v1843_v58  ;;  %v1874_v6 = vsel %vm503_vm7, %v1860_v56, 0  ;;  %v2521_v52 = vand.u32 4294901760, %v7719_v50  ;;  %v7743_v58 = vld [vmem:[%s8610_s11 + $0x70] sm:$0xff]  ;;  %v7748_v56 = vld [vmem:[%s8610_s11 + $0x78] sm:$0xff] }
 0x4cd   : > { %v1948_v8 = vand.u32 4294901760, %v1874_v6  ;;  %v7652_v26 = vpack.c.bf16 %v2488_v25, %v2485_v23  ;;  %v7736_v55 = vsub.f32 %v2461_v3, %v2485_v23  ;;  %v7783_v23 = vsub.f32 %v2466_v31, %v2500_v33 }
 0x4ce   : > { %v1861_v9 = vadd.f32 %v5255_v54, %v1852_v0  ;;  %v7734_v54 = vpack.c.bf16 %v2524_v53, %v2521_v52  ;;  %v2527_v0 = vand.u32 4294901760, %v7743_v58 }
 0x4cf   : > { %v1949_v10 = vsub.f32 %v1874_v6, %v1948_v8  ;;  %6608 = vmatprep.subr.bf16.mxu1 %v7652_v26  ;;  %v2530_v6 = vand.u32 4294901760, %v7748_v56 }
 0x4d0   : > { %v1877_v11 = vsel %vm503_vm7, %v1861_v9, 0  ;;  %6610 = vmatpush3.bf16.msra.mxu1 %v7652_v26  ;;  %v8642_v9 = vand.u32 4294901760, %v7738_v57 }
 0x4d1   : > { %v1950_v12 = vand.u32 4294901760, %v1949_v10  ;;  %v1958_v13 = vand.u32 4294901760, %v1877_v11 }
 0x4d3   : > { %v1951_v15 = vsub.f32 %v1949_v10, %v1950_v12  ;;  %v1959_v4 = vsub.f32 %v1877_v11, %v1958_v13 }
 0x4d5   : > { %v1952_v16 = vand.u32 4294901760, %v1951_v15  ;;  %v1960_v17 = vand.u32 4294901760, %v1959_v4 }
 0x4d7   : > { %5853 = vmatprep.mubr.f32.mxu0 %v1952_v16  ;;  %v1961_v18 = vsub.f32 %v1959_v4, %v1960_v17 }
 0x4d9   : > { %v1962_v19 = vand.u32 4294901760, %v1961_v18 }
 0x4db   : > { %5854 = vmatmul.mubr.f32.vlgmr.msra.gmra.mrb[2].mxu0 %v1962_v19 }
 0x4dc   : > { %6570 = vmatpush3.bf16.msra.mxu0 %v6567_v36  ;;  %5864 = vmatprep.mubr.f32.mxu0 %v1948_v8  ;;  %v2467_v36 = vld [vmem:[%s8610_s11 + $0x30] sm:$0xff] }
 0x4dd   : > { %6572 = vmatprep.subr.bf16.mxu0 %v6571_v41  ;;  %v2503_v38 = vand.u32 4294901760, %v2467_v36 }
 0x4df   : > { %v7682_v40 = vpack.c.bf16 %v2506_v39, %v2503_v38  ;;  %v7797_v31 = vsub.f32 %v2467_v36, %v2503_v38 }
 0x4e0   : > { %6574 = vmatpush3.bf16.msra.mxu0 %v6571_v41  ;;  %v7687_v41 = vld [vmem:[%s8610_s11 + $0x40] sm:$0xff] }
 0x4e1   : > { %6576 = vmatprep.subr.bf16.mxu0 %v6575_v42 }
 0x4e3   : > { %5865 = vmatmul.mubr.f32.vlgmr.msra.gmra.mrb[2].mxu0 %v1958_v13 }
 0x4e4   : > { %6578 = vmatpush3.bf16.msra.mxu0 %v6575_v42  ;;  %5875 = vmatprep.mubr.f32.mxu0 %v1949_v10  ;;  %v7692_v42 = vld [vmem:[%s8610_s11 + $0x48] sm:$0xff]  ;;  %v7760_v10 = vpack.c.bf16 %v2530_v6, %v2527_v0 }
 0x4e5   : > { %6580 = vmatprep.subr.bf16.mxu0 %v6579_v43 }
 0x4e8   : > { %6582 = vmatpush3.bf16.msra.mxu0 %v6579_v43  ;;  %v2509_v43 = vand.u32 4294901760, %v7687_v41 }
 0x4e9   : > { %6584 = vmatprep.subr.bf16.mxu0 %v7622_v20 }
 0x4ea   : > { %v7814_v37 = vsub.f32 %v7687_v41, %v2509_v43  ;;  %v7830_v41 = vsub.f32 %v7708_v47, %v2518_v49  ;;  %v7846_v47 = vsub.f32 %v7719_v50, %v2521_v52 }
 0x4eb   : > { %5876 = vmatmul.mubr.f32.vlgmr.msra.gmra.mrb[2].mxu0 %v1959_v4 }
 0x4ec   : > { %6586 = vmatpush3.bf16.msra.mxu0 %v7622_v20  ;;  %5886 = vmatprep.mubr.f32.mxu0 %v1950_v12  ;;  %v2596_v12 = vsub.f32 %v7738_v57, %v8642_v9  ;;  %8690 = vst [vmem:[#allocation16_spill] sm:$0xff] %v7846_v47 }
 0x4ed   : > { %6588 = vmatprep.subr.bf16.mxu0 %v7624_v21 }
 0x4ee   : > { %v2597_v16 = vand.u32 4294901760, %v2596_v12 }
 0x4f0   : > { %6590 = vmatpush3.bf16.msra.mxu0 %v7624_v21 }
 0x4f1   : > { %6592 = vmatprep.subr.bf16.mxu0 %v6591_v44 }
 0x4f3   : > { %5887 = vmatmul.mubr.f32.vlgmr.msra.gmra.mrb[2].mxu0 %v1960_v17 }
 0x4f4   : > { %6594 = vmatpush3.bf16.msra.mxu0 %v6591_v44  ;;  %5897 = vmatprep.mubr.f32.mxu0 %v1948_v8  ;;  %v2512_v44 = vand.u32 4294901760, %v7692_v42 }
 0x4f5   : > { %6596 = vmatprep.subr.bf16.mxu0 %v6595_v45 }
 0x4f6   : > { %v7817_v38 = vsub.f32 %v7692_v42, %v2512_v44 }
 0x4f8   : > { %6598 = vmatpush3.bf16.msra.mxu0 %v6595_v45  ;;  %v7698_v45 = vpack.c.bf16 %v2512_v44, %v2509_v43  ;;  %v8632_v44 = vand.u32 4294901760, %v7830_v41 }
 0x4f9   : > { %6600 = vmatprep.subr.bf16.mxu0 %v7622_v20 }
 0x4fb   : > { %5898 = vmatmul.mubr.f32.vlgmr.msra.gmra.mrb[2].mxu0 %v1958_v13 }
 0x4fc   : > { %6602 = vmatpush3.bf16.msra.mxu0 %v7622_v20  ;;  %5908 = vmatprep.mubr.f32.mxu0 %v1948_v8  ;;  %v2463_v20 = vld [vmem:[%s8610_s11 + $0x10] sm:$0xff]  ;;  %v8643_v8 = vand.u32 4294901760, %v7736_v55 }
 0x4fd   : > { %6604 = vmatprep.subr.bf16.mxu0 %v7624_v21  ;;  %v2491_v27 = vand.u32 4294901760, %v2463_v20 }
 0x4fe   : > { %v2589_v11 = vsub.f32 %v7736_v55, %v8643_v8 }
 0x500   : > { %6606 = vmatpush3.bf16.msra.mxu0 %v7624_v21  ;;  %v2464_v21 = vld [vmem:[%s8610_s11 + $0x18] sm:$0xff]  ;;  %v2590_v4 = vand.u32 4294901760, %v2589_v11 }
 0x501   : > { %v2494_v28 = vand.u32 4294901760, %v2464_v21 }
 0x502   : > { %v7776_v19 = vpack.c.bf16 %v2597_v16, %v2590_v4  ;;  %v8637_v16 = vand.u32 4294901760, %v7797_v31 }
 0x503   : > { %5909 = vmatmul.mubr.f32.vlgmr.msra.gmra.mrb[2].mxu0 %v1958_v13  ;;  %v7662_v29 = vpack.c.bf16 %v2494_v28, %v2491_v27  ;;  %v7768_v13 = vsub.f32 %v2463_v20, %v2491_v27  ;;  %v7770_v15 = vsub.f32 %v2464_v21, %v2494_v28  ;;  %v8639_v21 = vand.u32 4294901760, %v7781_v22 }
 0x504   : > { %v8638_v27 = vand.u32 4294901760, %v7783_v23  ;;  %v2631_v24 = vsub.f32 %v7797_v31, %v8637_v16 }
 0x505   : > { %6612 = vmatprep.subr.bf16.mxu1 %v7662_v29  ;;  %v8641_v17 = vand.u32 4294901760, %v7768_v13  ;;  %v8640_v18 = vand.u32 4294901760, %v7770_v15  ;;  %v2617_v11 = vsub.f32 %v7781_v22, %v8639_v21 }
 0x506   : > { %6614 = vmatpush3.bf16.msra.mxu1 %v7662_v29  ;;  %v2624_v30 = vsub.f32 %v7783_v23, %v8638_v27  ;;  %v2632_v39 = vand.u32 4294901760, %v2631_v24 }
 0x507   : > { %6616 = vmatprep.subr.bf16.mxu1 %v7672_v35  ;;  %v2603_v3 = vsub.f32 %v7768_v13, %v8641_v17  ;;  %v2610_v25 = vsub.f32 %v7770_v15, %v8640_v18  ;;  %v2618_v12 = vand.u32 4294901760, %v2617_v11  ;;  %v8634_v11 = vand.u32 4294901760, %v7817_v38 }
 0x508   : > { %v2625_v4 = vand.u32 4294901760, %v2624_v30 }
 0x509   : > { %v2604_v20 = vand.u32 4294901760, %v2603_v3  ;;  %v2611_v28 = vand.u32 4294901760, %v2610_v25  ;;  %v8636_v3 = vand.u32 4294901760, %v7799_v32  ;;  %v2652_v24 = vsub.f32 %v7817_v38, %v8634_v11 }
 0x50a   : > { %6618 = vmatpush3.bf16.msra.mxu1 %v7672_v35  ;;  %v7805_v25 = vpack.c.bf16 %v2625_v4, %v2618_v12  ;;  %v7827_v4 = vsub.f32 %v7703_v46, %v2515_v48  ;;  %v2666_v46 = vsub.f32 %v7830_v41, %v8632_v44  ;;  %v7851_v48 = vsub.f32 %v7724_v51, %v2524_v53 }
 0x50b   : > { %6620 = vmatprep.subr.bf16.mxu1 %v7682_v40  ;;  %v7801_v33 = vpack.c.bf16 %v2611_v28, %v2604_v20  ;;  %v2638_v36 = vsub.f32 %v7799_v32, %v8636_v3  ;;  %v8635_v28 = vand.u32 4294901760, %v7814_v37  ;;  %v7868_v51 = vsub.f32 %v7743_v58, %v2527_v0 }
 0x50c   : > { %v8633_v43 = vand.u32 4294901760, %v7827_v4  ;;  %8691 = vst [vmem:[#allocation17_spill] sm:$0xff] %v7851_v48  ;;  %v8630_v14 = vand.u32 4294901760, %v7851_v48  ;;  %v7873_v53 = vsub.f32 %v7748_v56, %v2530_v6  ;;  %v7889_v6 = vpack.c.bf16 %v7738_v57, %v7736_v55 }
 0x50d   : > { %v2639_v20 = vand.u32 4294901760, %v2638_v36  ;;  %v2645_v12 = vsub.f32 %v7814_v37, %v8635_v28  ;;  %v2653_v36 = vand.u32 4294901760, %v2652_v24  ;;  %v8631_v24 = vand.u32 4294901760, %v7846_v47  ;;  %8692 = vst [vmem:[#allocation18_spill] sm:$0xff] %v7868_v51 }
 0x50e   : > { %6622 = vmatpush3.bf16.msra.mxu1 %v7682_v40  ;;  %v2680_v52 = vsub.f32 %v7851_v48, %v8630_v14  ;;  %8693 = vst [vmem:[#allocation19_spill] sm:$0xff] %v7873_v53 }
 0x50f   : > { %6624 = vmatprep.subr.bf16.mxu1 %v7698_v45  ;;  %v7821_v30 = vpack.c.bf16 %v2639_v20, %v2632_v39  ;;  %v2646_v42 = vand.u32 4294901760, %v2645_v12  ;;  %v2659_v39 = vsub.f32 %v7827_v4, %v8633_v43  ;;  %v2667_v12 = vand.u32 4294901760, %v2666_v46 }
 0x510   : > { %v2673_v50 = vsub.f32 %v7846_v47, %v8631_v24  ;;  %v8628_v46 = vand.u32 4294901760, %v7873_v53 }
 0x511   : > { %v7853_v49 = vpack.c.bf16 %v2653_v36, %v2646_v42  ;;  %v2660_v20 = vand.u32 4294901760, %v2659_v39  ;;  %v2681_v36 = vand.u32 4294901760, %v2680_v52  ;;  %v8629_v39 = vand.u32 4294901760, %v7868_v51 }
 0x512   : > { %6626 = vmatpush3.bf16.msra.mxu1 %v7698_v45  ;;  %v2674_v42 = vand.u32 4294901760, %v2673_v50  ;;  %v2694_v58 = vsub.f32 %v7873_v53, %v8628_v46  ;;  %v7893_v50 = vpack.c.bf16 %v7770_v15, %v7768_v13  ;;  %v7897_v52 = vpack.c.bf16 %v7783_v23, %v7781_v22 }
 0x513   : > { %6628 = vmatprep.subr.bf16.mxu1 %v7714_v1  ;;  %v7857_v7 = vpack.c.bf16 %v2667_v12, %v2660_v20  ;;  %v2687_v12 = vsub.f32 %v7868_v51, %v8629_v39 }
 0x514   : > { %v7877_v20 = vpack.c.bf16 %v2681_v36, %v2674_v42  ;;  %v2695_v5 = vand.u32 4294901760, %v2694_v58  ;;  %v7901_v42 = vpack.c.bf16 %v7799_v32, %v7797_v31  ;;  %v7909_v36 = vpack.c.bf16 %v7830_v41, %v7827_v4 }
 0x515   : > { %v2688_v0 = vand.u32 4294901760, %v2687_v12  ;;  %v7913_v12 = vpack.c.bf16 %v7851_v48, %v7846_v47  ;;  %v7917_v58 = vpack.c.bf16 %v7873_v53, %v7868_v51 }
 0x516   : > { %6630 = vmatpush3.bf16.msra.mxu1 %v7714_v1 }
 0x517   : > { %6632 = vmatprep.subr.bf16.mxu1 %v7734_v54  ;;  %v7885_v56 = vpack.c.bf16 %v2695_v5, %v2688_v0  ;;  %v7905_v5 = vpack.c.bf16 %v7817_v38, %v7814_v37  ;;  %v5256_v0 = vld [vmem:[%s8609_s10] ss:$0 sm:$0xff] }
 0x51a   : > { %6634 = vmatpush3.bf16.msra.mxu1 %v7734_v54 }
 0x51b   : > { %6636 = vmatprep.subr.bf16.mxu1 %v7760_v10 }
 0x51e   : > { %6638 = vmatpush3.bf16.msra.mxu1 %v7760_v10 }
 0x51f   : > { %6640 = vmatprep.subr.bf16.mxu1 %v7776_v19 }
 0x5d6   : > { %v5910_v2 = vpop.f32.mrb[2].mxu0 }
 0x5d7   : > { %v7093_v61 = vadd.f32 %v5910_v2, %v5256_v0  ;;  %v2397_v59 = vpop.f32.mrb[3].mxu0 }
 0x5d8   : > { %v7094_v46 = vadd.f32 %v5256_v0, %v2397_v59 }
 0x5d9   : > { %v2410_v39 = vmul.f32 0.70710677, %v7093_v61 }
 0x5da   : > { %v2409_v14 = vmul.f32 0.70710677, %v7094_v46 }
 0x5db   : > { %v2416_v24 = vand.u32 2147483647, %v2410_v39  ;;  %vm2412_vm11 = vcmp.ge.f32.partialorder %v2410_v39, 0.0 }
 0x5dc   : > { %v2415_v44 = vand.u32 2147483647, %v2409_v14  ;;  %vm2411_vm12 = vcmp.ge.f32.partialorder %v2409_v14, 0.0 }
 0x5dd   : > { %v2418_v43 = vmul.f32 0.3275911, %v2416_v24  ;;  %v2444_v16 = vsub.f32 0.0, %v2416_v24 }
 0x5de   : > { %v2417_v11 = vmul.f32 0.3275911, %v2415_v44  ;;  %v2443_v27 = vsub.f32 0.0, %v2415_v44 }
 0x5df   : > { %v2420_v28 = vadd.f32 1.0, %v2418_v43  ;;  %v2446_v18 = vmul.f32 %v2444_v16, %v2416_v24 }
 0x5e0   : > { %v2419_v3 = vadd.f32 1.0, %v2417_v11  ;;  %v2445_v8 = vmul.f32 %v2443_v27, %v2415_v44 }
 0x5e1   : > { %7226 = vrcp.f32 %v2420_v28  ;;  %v2449_v59 = vmul.f32 1.442695, %v2446_v18 }
 0x5e2   : > { %7228 = vrcp.f32 %v2419_v3  ;;  %v2447_v63 = vmul.f32 1.442695, %v2445_v8 }
 0x5e3   : > { %7230 = vpow2.f32 %v2449_v59 }
 0x5e4   : > { %7232 = vpow2.f32 %v2447_v63 }
 0x5eb   : > { %v7227_v21 = vpop.eup %7226 }
 0x5ec   : > { %v7229_v17 = vpop.eup %7228  ;;  %v2426_v9 = vmul.f32 1.0614054, %v7227_v21 }
 0x5ed   : > { %v2425_v2 = vmul.f32 1.0614054, %v7229_v17  ;;  %v7231_v44 = vpop.eup %7230 }
 0x5ee   : > { %v2428_v34 = vadd.f32 -1.4531521, %v2426_v9  ;;  %v7233_v18 = vpop.eup %7232 }
 0x5ef   : > { %v2427_v0 = vadd.f32 -1.4531521, %v2425_v2  ;;  %v8694_v2 = vmov -1.0  }
 0x5f0   : > { %v2430_v60 = vmul.f32 %v7227_v21, %v2428_v34  ;;  %v2413_v59 = vsel %vm2411_vm12, 1.0, %v8694_v2 }
 0x5f1   : > { %v2429_v62 = vmul.f32 %v7229_v17, %v2427_v0 }
 0x5f2   : > { %v2432_v53 = vadd.f32 1.4214138, %v2430_v60 }
 0x5f3   : > { %v2431_v43 = vadd.f32 1.4214138, %v2429_v62  ;;  %v2414_v62 = vsel %vm2412_vm11, 1.0, %v8694_v2 }
 0x5f4   : > { %v2434_v11 = vmul.f32 %v7227_v21, %v2432_v53 }
 0x5f5   : > { %v2433_v3 = vmul.f32 %v7229_v17, %v2431_v43  ;;  %v2408_v43 = vmul.f32 0.5, %v7093_v61 }
 0x5f6   : > { %v2436_v28 = vadd.f32 -0.28449672, %v2434_v11 }
 0x5f7   : > { %v2435_v51 = vadd.f32 -0.28449672, %v2433_v3 }
 0x5f8   : > { %v2438_v48 = vmul.f32 %v7227_v21, %v2436_v28 }
 0x5f9   : > { %v2437_v16 = vmul.f32 %v7229_v17, %v2435_v51 }
 0x5fa   : > { %v2440_v24 = vadd.f32 0.2548296, %v2438_v48  ;;  %v2407_v48 = vmul.f32 0.5, %v7094_v46 }
 0x5fb   : > { %v2439_v47 = vadd.f32 0.2548296, %v2437_v16 }
 0x5fc   : > { %v2442_v27 = vmul.f32 %v7227_v21, %v2440_v24 }
 0x5fd   : > { %v2441_v9 = vmul.f32 %v7229_v17, %v2439_v47 }
 0x5fe   : > { %v2452_v34 = vmul.f32 %v7231_v44, %v2442_v27 }
 0x5ff   : > { %v2451_v8 = vmul.f32 %v7233_v18, %v2441_v9 }
 0x600   : > { %v2454_v60 = vsub.f32 1.0, %v2452_v34 }
 0x601   : > { %v2453_v53 = vsub.f32 1.0, %v2451_v8  ;;  %v5259_v8 = vld [vmem:[%s8604_s5 + $0x8] sm:$0x7f] }
 0x602   : > { %v2456_v63 = vmul.f32 %v2454_v60, %v2414_v62  ;;  %v8719_v60 = vld [vmem:[#allocation13_spill] sm:$0xff] }
 0x603   : > { %v2455_v0 = vmul.f32 %v2453_v53, %v2413_v59  ;;  %v8720_v62 = vsub.s32 0, %v8719_v60 }
 0x604   : > { %v2458_v51 = vadd.f32 1.0, %v2456_v63  ;;  %v8721_v63 = vsub.s32 1, %v8719_v60 }
 0x605   : > { %v2457_v11 = vadd.f32 1.0, %v2455_v0  ;;  %v3188_v53 = vrot.slane %v5259_v8, %v8720_v62  ;;  %v8722_v0 = vsub.s32 2, %v8719_v60 }
 0x606   : > { %v2460_v21 = vmul.f32 %v2458_v51, %v2408_v43  ;;  %v3198_v59 = vrot.slane %v5259_v8, %v8721_v63 }
 0x607   : > { %v2459_v3 = vmul.f32 %v2457_v11, %v2407_v48  ;;  %v3208_v43 = vrot.slane %v5259_v8, %v8722_v0 }
 0x608   : > { %v7924_v17 = vand.u32 4294901760, %v2460_v21 }
 0x609   : > { %v7926_v47 = vand.u32 4294901760, %v2459_v3 }
 0x60a   : > { %v7929_v14 = vsub.f32 %v2460_v21, %v7924_v17 }
 0x60b   : > { %v2566_v39 = vsub.f32 %v2459_v3, %v7926_v47 }
 0x60c   : > { %v2577_v28 = vand.u32 4294901760, %v7929_v14 }
 0x60d   : > { %v2567_v16 = vand.u32 4294901760, %v2566_v39 }
 0x60e   : > { %v2578_v61 = vsub.f32 %v7929_v14, %v2577_v28 }
 0x60f   : > { %v2568_v46 = vsub.f32 %v2566_v39, %v2567_v16 }
 0x610   : > { %v2579_v27 = vand.u32 4294901760, %v2578_v61 }
 0x611   : > { %v2569_v24 = vand.u32 4294901760, %v2568_v46 }
 0x613   : > { %5943 = vmatprep.mubr.f32.mxu1 %v2569_v24 }
 0x614   : > { %5944 = vmatmul.mubr.f32.vlgmr.msra.gmra.mrb[4].mxu1 %v2579_v27 }
 0x615   : > { %6642 = vmatpush3.bf16.msra.mxu1 %v7776_v19  ;;  %5978 = vmatprep.mubr.f32.mxu1 %v7926_v47  ;;  %v8696_v19 = vand.u32 4294901760, %v7738_v57  ;;  %v8700_v57 = vand.u32 4294901760, %v7783_v23  ;;  %v8706_v23 = vand.u32 4294901760, %v7830_v41  ;;  %v8715_v41 = vld [vmem:[#allocation14_spill] sm:$0xff] }
 0x616   : > { %6644 = vmatprep.subr.bf16.mxu1 %v7801_v33 }
 0x619   : > { %6646 = vmatpush3.bf16.msra.mxu1 %v7801_v33 }
 0x61a   : > { %6648 = vmatprep.subr.bf16.mxu1 %v7805_v25 }
 0x61d   : > { %6650 = vmatpush3.bf16.msra.mxu1 %v7805_v25  ;;  %v8697_v25 = vand.u32 4294901760, %v7768_v13  ;;  %v8702_v13 = vand.u32 4294901760, %v7799_v32  ;;  %v8709_v32 = vld [vmem:[#allocation17_spill] sm:$0xff] }
 0x61e   : > { %6652 = vmatprep.subr.bf16.mxu1 %v7821_v30 }
 0x621   : > { %6654 = vmatpush3.bf16.msra.mxu1 %v7821_v30  ;;  %v8698_v30 = vand.u32 4294901760, %v7770_v15 }
 0x622   : > { %6656 = vmatprep.subr.bf16.mxu1 %v7853_v49 }
 0x625   : > { %6658 = vmatpush3.bf16.msra.mxu1 %v7853_v49  ;;  %v6739_v49 = vpack.c.bf16 %v8698_v30, %v8697_v25 }
 0x626   : > { %6660 = vmatprep.subr.bf16.mxu1 %v7857_v7 }
 0x629   : > { %6662 = vmatpush3.bf16.msra.mxu1 %v7857_v7  ;;  %v8695_v7 = vand.u32 4294901760, %v7736_v55  ;;  %v8699_v55 = vand.u32 4294901760, %v7781_v22  ;;  %v8705_v22 = vand.u32 4294901760, %v7827_v4 }
 0x62a   : > { %6664 = vmatprep.subr.bf16.mxu1 %v7877_v20 }
 0x62b   : > { %v6735_v33 = vpack.c.bf16 %v8696_v19, %v8695_v7  ;;  %v8724_v7 = vsub.s32 4, %v8719_v60 }
 0x62d   : > { %6666 = vmatpush3.bf16.msra.mxu1 %v7877_v20  ;;  %v6743_v20 = vpack.c.bf16 %v8700_v57, %v8699_v55  ;;  %v3227_v19 = vrot.slane %v5259_v8, %v8724_v7 }
 0x62e   : > { %6668 = vmatprep.subr.bf16.mxu1 %v7885_v56 }
 0x631   : > { %6670 = vmatpush3.bf16.msra.mxu1 %v7885_v56  ;;  %v8701_v56 = vand.u32 4294901760, %v7797_v31  ;;  %v8707_v31 = vld [vmem:[#allocation16_spill] sm:$0xff] }
 0x632   : > { %6672 = vmatprep.subr.bf16.mxu1 %v7889_v6 }
 0x633   : > { %v6747_v15 = vpack.c.bf16 %v8702_v13, %v8701_v56 }
 0x634   : > { %5979 = vmatmul.mubr.f32.vlgmr.msra.gmra.mrb[4].mxu1 %v7924_v17 }
 0x635   : > { %6674 = vmatpush3.bf16.msra.mxu1 %v7889_v6  ;;  %6013 = vmatprep.mubr.f32.mxu1 %v2566_v39  ;;  %v8703_v6 = vand.u32 4294901760, %v7814_v37  ;;  %v8711_v37 = vld [vmem:[#allocation18_spill] sm:$0xff] }
 0x636   : > { %6676 = vmatprep.subr.bf16.mxu1 %v7893_v50 }
 0x639   : > { %6678 = vmatpush3.bf16.msra.mxu1 %v7893_v50  ;;  %v8704_v50 = vand.u32 4294901760, %v7817_v38  ;;  %v8713_v38 = vld [vmem:[#allocation19_spill] sm:$0xff] }
 0x63a   : > { %6680 = vmatprep.subr.bf16.mxu1 %v7897_v52  ;;  %v8714_v44 = vand.u32 4294901760, %v8713_v38 }
 0x63d   : > { %6682 = vmatpush3.bf16.msra.mxu1 %v7897_v52  ;;  %v6751_v52 = vpack.c.bf16 %v8704_v50, %v8703_v6 }
 0x63e   : > { %6684 = vmatprep.subr.bf16.mxu1 %v7901_v42 }
 0x641   : > { %6686 = vmatpush3.bf16.msra.mxu1 %v7901_v42  ;;  %v6755_v42 = vpack.c.bf16 %v8706_v23, %v8705_v22  ;;  %v8726_v22 = vsub.s32 6, %v8719_v60 }
 0x642   : > { %6688 = vmatprep.subr.bf16.mxu1 %v7905_v5 }
 0x643   : > { %v3245_v23 = vrot.slane %v5259_v8, %v8726_v22 }
 0x645   : > { %6690 = vmatpush3.bf16.msra.mxu1 %v7905_v5  ;;  %v8708_v5 = vand.u32 4294901760, %v8707_v31 }
 0x646   : > { %6692 = vmatprep.subr.bf16.mxu1 %v7909_v36 }
 0x649   : > { %6694 = vmatpush3.bf16.msra.mxu1 %v7909_v36  ;;  %v8710_v36 = vand.u32 4294901760, %v8709_v32 }
 0x64a   : > { %6696 = vmatprep.subr.bf16.mxu1 %v7913_v12 }
 0x64d   : > { %6698 = vmatpush3.bf16.msra.mxu1 %v7913_v12  ;;  %v6759_v12 = vpack.c.bf16 %v8710_v36, %v8708_v5 }
 0x64e   : > { %6700 = vmatprep.subr.bf16.mxu1 %v7917_v58 }
 0x651   : > { %6702 = vmatpush3.bf16.msra.mxu1 %v7917_v58  ;;  %v8712_v58 = vand.u32 4294901760, %v8711_v37 }
 0x652   : > { %6704 = vmatprep.subr.bf16.mxu1 %v7652_v26 }
 0x653   : > { %v6763_v9 = vpack.c.bf16 %v8714_v44, %v8712_v58  ;;  %v5261_v44 = vld [vmem:[%s8605_s6 + $0x1] ss:$0 sm:$0xff] }
 0x654   : > { %6014 = vmatmul.mubr.f32.vlgmr.msra.gmra.mrb[4].mxu1 %v7929_v14 }
 0x655   : > { %6706 = vmatpush3.bf16.msra.mxu1 %v7652_v26  ;;  %6048 = vmatprep.mubr.f32.mxu1 %v2567_v16 }
 0x656   : > { %6708 = vmatprep.subr.bf16.mxu1 %v7662_v29 }
 0x659   : > { %6710 = vmatpush3.bf16.msra.mxu1 %v7662_v29 }
 0x65a   : > { %6712 = vmatprep.subr.bf16.mxu1 %v7672_v35 }
 0x65d   : > { %6714 = vmatpush3.bf16.msra.mxu1 %v7672_v35 }
 0x65e   : > { %6716 = vmatprep.subr.bf16.mxu1 %v7682_v40 }
 0x661   : > { %6718 = vmatpush3.bf16.msra.mxu1 %v7682_v40 }
 0x662   : > { %6720 = vmatprep.subr.bf16.mxu1 %v7698_v45 }
 0x665   : > { %6722 = vmatpush3.bf16.msra.mxu1 %v7698_v45 }
 0x666   : > { %6724 = vmatprep.subr.bf16.mxu1 %v7714_v1 }
 0x669   : > { %6726 = vmatpush3.bf16.msra.mxu1 %v7714_v1 }
 0x66a   : > { %6728 = vmatprep.subr.bf16.mxu1 %v7734_v54 }
 0x66d   : > { %6730 = vmatpush3.bf16.msra.mxu1 %v7734_v54 }
 0x66e   : > { %6732 = vmatprep.subr.bf16.mxu1 %v7760_v10 }
 0x671   : > { %6734 = vmatpush3.bf16.msra.mxu1 %v7760_v10 }
 0x672   : > { %6736 = vmatprep.subr.bf16.mxu1 %v6735_v33 }
 0x674   : > { %6049 = vmatmul.mubr.f32.vlgmr.msra.gmra.mrb[4].mxu1 %v2577_v28 }
 0x675   : > { %6738 = vmatpush3.bf16.msra.mxu1 %v6735_v33  ;;  %6083 = vmatprep.mubr.f32.mxu1 %v7926_v47 }
 0x676   : > { %6740 = vmatprep.subr.bf16.mxu1 %v6739_v49 }
 0x679   : > { %6742 = vmatpush3.bf16.msra.mxu1 %v6739_v49 }
 0x67a   : > { %6744 = vmatprep.subr.bf16.mxu1 %v6743_v20 }
 0x67d   : > { %6746 = vmatpush3.bf16.msra.mxu1 %v6743_v20  ;;  %v8725_v20 = vsub.s32 5, %v8719_v60 }
 0x67e   : > { %6748 = vmatprep.subr.bf16.mxu1 %v6747_v15 }
 0x67f   : > { %v3236_v56 = vrot.slane %v5259_v8, %v8725_v20 }
 0x681   : > { %6750 = vmatpush3.bf16.msra.mxu1 %v6747_v15 }
 0x682   : > { %6752 = vmatprep.subr.bf16.mxu1 %v6751_v52 }
 0x685   : > { %6754 = vmatpush3.bf16.msra.mxu1 %v6751_v52 }
 0x686   : > { %6756 = vmatprep.subr.bf16.mxu1 %v6755_v42 }
 0x689   : > { %6758 = vmatpush3.bf16.msra.mxu1 %v6755_v42 }
 0x68a   : > { %6760 = vmatprep.subr.bf16.mxu1 %v6759_v12 }
 0x68d   : > { %6762 = vmatpush3.bf16.msra.mxu1 %v6759_v12 }
 0x68e   : > { %6764 = vmatprep.subr.bf16.mxu1 %v6763_v9 }
 0x691   : > { %6766 = vmatpush3.bf16.msra.mxu1 %v6763_v9 }
 0x692   : > { %6768 = vmatprep.subr.bf16.mxu1 %v7652_v26 }
 0x694   : > { %6084 = vmatmul.mubr.f32.vlgmr.msra.gmra.mrb[4].mxu1 %v7924_v17 }
 0x695   : > { %6770 = vmatpush3.bf16.msra.mxu1 %v7652_v26  ;;  %6118 = vmatprep.mubr.f32.mxu1 %v7926_v47  ;;  %v5257_v26 = vld [vmem:[%s8611_s12] ss:$0 sm:$0xff] }
 0x696   : > { %6772 = vmatprep.subr.bf16.mxu1 %v7662_v29 }
 0x699   : > { %6774 = vmatpush3.bf16.msra.mxu1 %v7662_v29 }
 0x69a   : > { %6776 = vmatprep.subr.bf16.mxu1 %v7672_v35 }
 0x69d   : > { %6778 = vmatpush3.bf16.msra.mxu1 %v7672_v35  ;;  %v5258_v35 = vld [vmem:[%s8612_s13] ss:$0 sm:$0xff] }
 0x69e   : > { %6780 = vmatprep.subr.bf16.mxu1 %v7682_v40 }
 0x6a1   : > { %6782 = vmatpush3.bf16.msra.mxu1 %v7682_v40 }
 0x6a2   : > { %6784 = vmatprep.subr.bf16.mxu1 %v7698_v45 }
 0x6a5   : > { %6786 = vmatpush3.bf16.msra.mxu1 %v7698_v45 }
 0x6a6   : > { %6788 = vmatprep.subr.bf16.mxu1 %v7714_v1 }
 0x6a9   : > { %6790 = vmatpush3.bf16.msra.mxu1 %v7714_v1 }
 0x6aa   : > { %6792 = vmatprep.subr.bf16.mxu1 %v7734_v54 }
 0x6ad   : > { %6794 = vmatpush3.bf16.msra.mxu1 %v7734_v54 }
 0x6ae   : > { %6796 = vmatprep.subr.bf16.mxu1 %v7760_v10 }
 0x6b1   : > { %6798 = vmatpush3.bf16.msra.mxu1 %v7760_v10  ;;  %v8717_v10 = vld [vmem:[#allocation15_spill] sm:$0xff] }
 0x6b4   : > { %6119 = vmatmul.mubr.f32.vlgmr.msra.gmra.mrb[4].mxu1 %v7924_v17  ;;  %v8723_v17 = vsub.s32 3, %v8719_v60 }
 0x6b6   : > { %v3218_v47 = vrot.slane %v5259_v8, %v8723_v17 }
 0x787   : > { %v6120_v29 = vpop.f32.mrb[4].mxu1 }
 0x788   : > { %v7095_v40 = vadd.f32 %v6120_v29, %v5257_v26  ;;  %v3158_v45 = vpop.f32.mrb[5].mxu1 }
 0x789   : > { %v7096_v1 = vadd.f32 %v5257_v26, %v3158_v45 }
 0x78a   : > { %v3176_v4 = vmul.f32 %v7095_v40, %v5258_v35 }
 0x78b   : > { %v3175_v54 = vmul.f32 %v7096_v1, %v5258_v35 }
 0x78c   : > { %v8047_v18 = vadd.f32 %v8715_v41, %v3176_v4 }
 0x78d   : > { %v8050_v34 = vadd.f32 %v8717_v10, %v3175_v54 }
 0x78e   : > { %8716 = vst [vmem:[#allocation16_spill] sm:$0xff] %v8047_v18  ;;  %3180 = vst.msk [vmem:[#allocation6 + $0x10] sm:$0xff] %vm503_vm7, %v8047_v18 }
 0x78f   : > { %8718 = vst [vmem:[#allocation17_spill] sm:$0xff] %v8050_v34  ;;  %3179 = vst.msk [vmem:[#allocation6 + $0x8] sm:$0xff] %vm503_vm7, %v8050_v34 }
 0x795   : > { %v3214_v28 = vld [vmem:[#allocation6 + $0x10] sm:$0xff] }
 0x796   : > { %v3184_v51 = vld [vmem:[#allocation6 + $0xa] sm:$0xff]  ;;  %v3183_v14 = vld [vmem:[#allocation6 + $0x2] sm:$0xff]  ;;  %v3223_v25 = vld [vmem:[#allocation6 + $0x12] sm:$0xff]  ;;  %v3220_v57 = vmul.f32 %v3218_v47, %v3214_v28 }
 0x797   : > { %v3194_v48 = vld [vmem:[#allocation6 + $0xc] sm:$0xff]  ;;  %v3190_v21 = vmul.f32 %v3188_v53, %v3184_v51  ;;  %v3193_v39 = vld [vmem:[#allocation6 + $0x4] sm:$0xff]  ;;  %v3189_v16 = vmul.f32 %v3188_v53, %v3183_v14  ;;  %v3232_v13 = vld [vmem:[#allocation6 + $0x14] sm:$0xff]  ;;  %v3229_v52 = vmul.f32 %v3227_v19, %v3223_v25  ;;  %v3228_v5 = vmul.f32 %v3227_v19, %v3184_v51 }
 0x798   : > { %v3204_v11 = vld [vmem:[#allocation6 + $0xe] sm:$0xff]  ;;  %v3200_v3 = vmul.f32 %v3198_v59, %v3194_v48  ;;  %v3199_v61 = vmul.f32 %v3198_v59, %v3193_v39  ;;  %v3203_v46 = vld [vmem:[#allocation6 + $0x6] sm:$0xff]  ;;  %v3241_v42 = vld [vmem:[#allocation6 + $0x16] sm:$0xff]  ;;  %v3238_v36 = vmul.f32 %v3236_v56, %v3232_v13  ;;  %v3237_v37 = vmul.f32 %v3236_v56, %v3194_v48 }
 0x799   : > { %v3210_v27 = vmul.f32 %v3208_v43, %v3204_v11  ;;  %v3213_v33 = vld [vmem:[#allocation6 + $0x8] sm:$0xff]  ;;  %v3209_v49 = vmul.f32 %v3208_v43, %v3203_v46  ;;  %v3247_v38 = vmul.f32 %v3245_v23, %v3241_v42  ;;  %v3246_v26 = vmul.f32 %v3245_v23, %v3204_v11  ;;  %v5266_v43 = vld [vmem:[%s8608_s9 + $0x20] sm:$0xff]  ;;  %v5268_v48 = vld [vmem:[%s8608_s9 + $0x30] sm:$0xff] }
 0x79a   : > { %v3202_v24 = vadd.f32 %v3200_v3, %v3190_v21  ;;  %v3201_v30 = vadd.f32 %v3199_v61, %v3189_v16  ;;  %v3219_v6 = vmul.f32 %v3218_v47, %v3213_v33  ;;  %v5267_v51 = vld [vmem:[%s8608_s9 + $0x28] sm:$0xff]  ;;  %v3326_v11 = vand.u32 4294901760, %v5266_v43  ;;  %v5269_v3 = vld [vmem:[%s8608_s9 + $0x38] sm:$0xff] }
 0x79b   : > { %v3329_v21 = vand.u32 4294901760, %v5267_v51  ;;  %v3332_v17 = vand.u32 4294901760, %v5268_v48  ;;  %v3335_v47 = vand.u32 4294901760, %v5269_v3 }
 0x79c   : > { %v3212_v55 = vadd.f32 %v3210_v27, %v3202_v24  ;;  %v3211_v15 = vadd.f32 %v3209_v49, %v3201_v30  ;;  %v3416_v28 = vsub.f32 %v5266_v43, %v3326_v11  ;;  %v5273_v43 = vld [vmem:[%s8610_s11 + $0x88] sm:$0xff] }
 0x79d   : > { %v8092_v14 = vpack.c.bf16 %v3329_v21, %v3326_v11  ;;  %v8094_v39 = vpack.c.bf16 %v3335_v47, %v3332_v17  ;;  %v3423_v16 = vsub.f32 %v5267_v51, %v3329_v21  ;;  %v3430_v7 = vsub.f32 %v5268_v48, %v3332_v17  ;;  %v5274_v21 = vld [vmem:[%s8610_s11 + $0x90] sm:$0xff] }
 0x79e   : > { %v3222_v50 = vadd.f32 %v3220_v57, %v3212_v55  ;;  %v3221_v31 = vadd.f32 %v3219_v6, %v3211_v15  ;;  %v3417_v61 = vand.u32 4294901760, %v3416_v28  ;;  %v3437_v19 = vsub.f32 %v5269_v3, %v3335_v47  ;;  %v5275_v3 = vld [vmem:[%s8610_s11 + $0x98] sm:$0xff] }
 0x79f   : > { %6800 = vmatprep.subr.bf16.mxu0 %v8092_v14  ;;  %v3424_v46 = vand.u32 4294901760, %v3423_v16  ;;  %v3431_v30 = vand.u32 4294901760, %v3430_v7  ;;  %v6815_v6 = vpack.c.bf16 %v3423_v16, %v3416_v28  ;;  %v3936_v48 = vand.u32 4294901760, %v5273_v43 }
 0x7a0   : > { %v3231_v32 = vadd.f32 %v3229_v52, %v3222_v50  ;;  %v3230_v12 = vadd.f32 %v3228_v5, %v3221_v31  ;;  %6802 = vmatpush3.bf16.msra.mxu0 %v8092_v14  ;;  %v3418_v24 = vsub.f32 %v3416_v28, %v3417_v61  ;;  %v3438_v49 = vand.u32 4294901760, %v3437_v19  ;;  %v5277_v28 = vld [vmem:[%s8610_s11 + $0xa8] sm:$0xff] }
 0x7a1   : > { %6804 = vmatprep.subr.bf16.mxu0 %v8094_v39  ;;  %v3425_v27 = vsub.f32 %v3423_v16, %v3424_v46  ;;  %v3432_v57 = vsub.f32 %v3430_v7, %v3431_v30  ;;  %v6819_v50 = vpack.c.bf16 %v3437_v19, %v3430_v7  ;;  %v6831_v52 = vpack.c.bf16 %v3424_v46, %v3417_v61 }
 0x7a2   : > { %v3240_v58 = vadd.f32 %v3238_v36, %v3231_v32  ;;  %v3239_v9 = vadd.f32 %v3237_v37, %v3230_v12  ;;  %v3419_v33 = vand.u32 4294901760, %v3418_v24  ;;  %v3439_v20 = vsub.f32 %v3437_v19, %v3438_v49  ;;  %v5263_v37 = vld [vmem:[%s8606_s7 + $0x1] ss:$0 sm:$0xff]  ;;  %v5278_v24 = vld [vmem:[%s8610_s11 + $0xb0] sm:$0xff] }
 0x7a3   : > { %v3426_v25 = vand.u32 4294901760, %v3425_v27  ;;  %v3433_v56 = vand.u32 4294901760, %v3432_v57  ;;  %v6835_v22 = vpack.c.bf16 %v3438_v49, %v3431_v30  ;;  %v3939_v17 = vand.u32 4294901760, %v5274_v21  ;;  %v5279_v27 = vld [vmem:[%s8610_s11 + $0xb8] sm:$0xff]  ;;  %v8162_v30 = vld [vmem:[%s8610_s11 + $0xc8] sm:$0xff] }
 0x7a4   : > { %v3249_v29 = vadd.f32 %v3247_v38, %v3240_v58  ;;  %v3248_v35 = vadd.f32 %v3246_v26, %v3239_v9  ;;  %6806 = vmatpush3.bf16.msra.mxu0 %v8094_v39  ;;  %v3440_v13 = vand.u32 4294901760, %v3439_v20  ;;  %v5265_v9 = vld [vmem:[%s8607_s8 + $0x1] ss:$0 sm:$0xff]  ;;  %v3942_v47 = vand.u32 4294901760, %v5275_v3  ;;  %v8173_v20 = vld [vmem:[%s8610_s11 + $0xd0] sm:$0xff] }
 0x7a5   : > { %v6807_v55 = vpack.c.bf16 %v3426_v25, %v3419_v33  ;;  %v3948_v61 = vand.u32 4294901760, %v5277_v28  ;;  %v3951_v7 = vand.u32 4294901760, %v5278_v24  ;;  %v3954_v19 = vand.u32 4294901760, %v5279_v27  ;;  %v8157_v25 = vld [vmem:[%s8610_s11 + $0xc0] sm:$0xff] }
 0x7a6   : > { %v3259_v40 = vadd.f32 %v5261_v44, %v3249_v29  ;;  %v3258_v45 = vadd.f32 %v5261_v44, %v3248_v35  ;;  %v6811_v15 = vpack.c.bf16 %v3440_v13, %v3433_v56  ;;  %v3957_v49 = vand.u32 4294901760, %v8157_v25  ;;  %v8178_v56 = vld [vmem:[%s8610_s11 + $0xd8] sm:$0xff] }
 0x7a7   : > { %6808 = vmatprep.subr.bf16.mxu0 %v6807_v55  ;;  %v8152_v33 = vpack.c.bf16 %v3954_v19, %v3951_v7  ;;  %v3963_v13 = vand.u32 4294901760, %v8173_v20 }
 0x7a8   : > { %v3263_v1 = vsel %vm503_vm7, %v3259_v40, 0.0  ;;  %v3260_v4 = vsel %vm503_vm7, %v3258_v45, 0.0 }
 0x7a9   : > { %3264 = vadd.xlane.f32.xlu0 %v3263_v1  ;;  %3261 = vadd.xlane.f32.xlu1 %v3260_v4 }
 0x836   : > { %v3265_v54 = vpop.xlane.xlu0 %3264  ;;  %v3262_v10 = vpop.xlane.xlu1 %3261 }
 0x837   : > { %v3267_v41 = vmul.f32 0.03125, %v3265_v54  ;;  %v3266_v8 = vmul.f32 0.03125, %v3262_v10 }
 0x839   : > { %v3269_v60 = vsub.f32 %v3259_v40, %v3267_v41  ;;  %v3268_v62 = vsub.f32 %v3258_v45, %v3266_v8 }
 0x83b   : > { %v3271_v53 = vmul.f32 %v3269_v60, %v3269_v60  ;;  %v3270_v63 = vmul.f32 %v3268_v62, %v3268_v62 }
 0x83d   : > { %v3275_v59 = vsel %vm503_vm7, %v3271_v53, 0.0  ;;  %v3272_v0 = vsel %vm503_vm7, %v3270_v63, 0.0 }
 0x83e   : > { %3276 = vadd.xlane.f32.xlu0 %v3275_v59  ;;  %3273 = vadd.xlane.f32.xlu1 %v3272_v0  ;;  %v5272_v0 = vld [vmem:[%s8610_s11 + $0x80] sm:$0xff] }
 0x83f   : > { %v3933_v51 = vand.u32 4294901760, %v5272_v0 }
 0x841   : > { %v8122_v11 = vpack.c.bf16 %v3936_v48, %v3933_v51 }
 0x8cb   : > { %v3277_v23 = vpop.xlane.xlu0 %3276  ;;  %v3274_v31 = vpop.xlane.xlu1 %3273 }
 0x8cc   : > { %v3279_v42 = vmul.f32 0.03125, %v3277_v23  ;;  %v3278_v5 = vmul.f32 0.03125, %v3274_v31  ;;  %v8206_v31 = vsub.f32 %v5272_v0, %v3933_v51  ;;  %v8267_v51 = vsub.f32 %v5278_v24, %v3951_v7 }
 0x8cd   : > { %v8284_v24 = vsub.f32 %v8157_v25, %v3957_v49 }
 0x8ce   : > { %v3281_v32 = vadd.f32 1e-06, %v3279_v42  ;;  %v3280_v36 = vadd.f32 1e-06, %v3278_v5  ;;  %v8208_v5 = vsub.f32 %v5273_v43, %v3936_v48  ;;  %v8269_v48 = vsub.f32 %v5279_v27, %v3954_v19 }
 0x8d0   : > { %7234 = vrsqrt.f32 %v3281_v32  ;;  %v8213_v32 = vld [vmem:[%s8610_s11 + $0xf0] sm:$0xff] }
 0x8d1   : > { %7236 = vrsqrt.f32 %v3280_v36  ;;  %v8218_v36 = vld [vmem:[%s8610_s11 + $0xf8] sm:$0xff] }
 0x8da   : > { %v7235_v12 = vpop.eup %7234 }
 0x8db   : > { %v7237_v58 = vpop.eup %7236  ;;  %v3285_v38 = vmul.f32 %v7235_v12, %v3269_v60  ;;  %v3975_v12 = vand.u32 4294901760, %v8213_v32 }
 0x8dc   : > { %v3284_v44 = vmul.f32 %v7237_v58, %v3268_v62  ;;  %v8669_v58 = vand.u32 4294901760, %v8206_v31 }
 0x8dd   : > { %v3295_v26 = vmul.f32 %v5263_v37, %v3285_v38  ;;  %v8668_v38 = vand.u32 4294901760, %v8208_v5 }
 0x8de   : > { %v3294_v29 = vmul.f32 %v5263_v37, %v3284_v44  ;;  %v3978_v37 = vand.u32 4294901760, %v8218_v36 }
 0x8df   : > { %v3305_v35 = vadd.f32 %v5265_v9, %v3295_v26  ;;  %v4044_v26 = vsub.f32 %v8208_v5, %v8668_v38 }
 0x8e0   : > { %v3304_v40 = vadd.f32 %v5265_v9, %v3294_v29  ;;  %v8230_v44 = vpack.c.bf16 %v3978_v37, %v3975_v12  ;;  %v4037_v9 = vsub.f32 %v8206_v31, %v8669_v58  ;;  %v8238_v29 = vsub.f32 %v5274_v21, %v3939_v17 }
 0x8e1   : > { %v3323_v45 = vsel %vm503_vm7, %v3305_v35, 0  ;;  %v8240_v35 = vsub.f32 %v5275_v3, %v3942_v47 }
 0x8e2   : > { %v3320_v1 = vsel %vm503_vm7, %v3304_v40, 0  ;;  %v3404_v4 = vand.u32 4294901760, %v3323_v45  ;;  %v4038_v40 = vand.u32 4294901760, %v4037_v9  ;;  %v8661_v9 = vand.u32 4294901760, %v8284_v24 }
 0x8e3   : > { %v3394_v54 = vand.u32 4294901760, %v3320_v1 }
 0x8e4   : > { %v3405_v41 = vsub.f32 %v3323_v45, %v3404_v4  ;;  %v4045_v45 = vand.u32 4294901760, %v4044_v26 }
 0x8e5   : > { %v3395_v10 = vsub.f32 %v3320_v1, %v3394_v54  ;;  %v8667_v1 = vand.u32 4294901760, %v8238_v29 }
 0x8e6   : > { %v3406_v8 = vand.u32 4294901760, %v3405_v41 }
 0x8e7   : > { %v3396_v53 = vand.u32 4294901760, %v3395_v10 }
 0x8e8   : > { %v3407_v60 = vsub.f32 %v3405_v41, %v3406_v8 }
 0x8e9   : > { %v3397_v62 = vsub.f32 %v3395_v10, %v3396_v53 }
 0x8ea   : > { %v3408_v63 = vand.u32 4294901760, %v3407_v60 }
 0x8eb   : > { %v3398_v59 = vand.u32 4294901760, %v3397_v62 }
 0x8ed   : > { %6129 = vmatprep.mubr.f32.mxu0 %v3398_v59 }
 0x8ee   : > { %6130 = vmatmul.mubr.f32.vlgmr.msra.gmra.mrb[4].mxu0 %v3408_v63 }
 0x8ef   : > { %6810 = vmatpush3.bf16.msra.mxu0 %v6807_v55  ;;  %6140 = vmatprep.mubr.f32.mxu0 %v3394_v54  ;;  %v3960_v55 = vand.u32 4294901760, %v8162_v30 }
 0x8f0   : > { %6812 = vmatprep.subr.bf16.mxu0 %v6811_v15 }
 0x8f1   : > { %v8168_v57 = vpack.c.bf16 %v3960_v55, %v3957_v49  ;;  %v8287_v27 = vsub.f32 %v8162_v30, %v3960_v55 }
 0x8f3   : > { %6814 = vmatpush3.bf16.msra.mxu0 %v6811_v15  ;;  %v3966_v15 = vand.u32 4294901760, %v8178_v56  ;;  %v8660_v26 = vand.u32 4294901760, %v8287_v27 }
 0x8f4   : > { %6816 = vmatprep.subr.bf16.mxu0 %v6815_v6 }
 0x8f5   : > { %v8300_v25 = vsub.f32 %v8178_v56, %v3966_v15  ;;  %v4100_v30 = vsub.f32 %v8287_v27, %v8660_v26 }
 0x8f6   : > { %6141 = vmatmul.mubr.f32.vlgmr.msra.gmra.mrb[4].mxu0 %v3404_v4 }
 0x8f7   : > { %6818 = vmatpush3.bf16.msra.mxu0 %v6815_v6  ;;  %6151 = vmatprep.mubr.f32.mxu0 %v3395_v10  ;;  %v8184_v6 = vpack.c.bf16 %v3966_v15, %v3963_v13  ;;  %8727 = vst [vmem:[#allocation18_spill] sm:$0xff] %v8300_v25 }
 0x8f8   : > { %6820 = vmatprep.subr.bf16.mxu0 %v6819_v50 }
 0x8fb   : > { %6822 = vmatpush3.bf16.msra.mxu0 %v6819_v50  ;;  %v8189_v50 = vld [vmem:[%s8610_s11 + $0xe0] sm:$0xff] }
 0x8fc   : > { %6824 = vmatprep.subr.bf16.mxu0 %v8092_v14 }
 0x8fe   : > { %6152 = vmatmul.mubr.f32.vlgmr.msra.gmra.mrb[4].mxu0 %v3405_v41  ;;  %v4051_v41 = vsub.f32 %v8238_v29, %v8667_v1 }
 0x8ff   : > { %6826 = vmatpush3.bf16.msra.mxu0 %v8092_v14  ;;  %6162 = vmatprep.mubr.f32.mxu0 %v3396_v53 }
 0x900   : > { %6828 = vmatprep.subr.bf16.mxu0 %v8094_v39  ;;  %v4052_v60 = vand.u32 4294901760, %v4051_v41  ;;  %v8297_v41 = vsub.f32 %v8173_v20, %v3963_v13 }
 0x902   : > { %v8659_v55 = vand.u32 4294901760, %v8297_v41 }
 0x903   : > { %6830 = vmatpush3.bf16.msra.mxu0 %v8094_v39 }
 0x904   : > { %6832 = vmatprep.subr.bf16.mxu0 %v6831_v52 }
 0x906   : > { %6163 = vmatmul.mubr.f32.vlgmr.msra.gmra.mrb[4].mxu0 %v3406_v8  ;;  %v8253_v8 = vsub.f32 %v5277_v28, %v3948_v61 }
 0x907   : > { %6834 = vmatpush3.bf16.msra.mxu0 %v6831_v52  ;;  %6173 = vmatprep.mubr.f32.mxu0 %v3394_v54  ;;  %v8194_v52 = vld [vmem:[%s8610_s11 + $0xe8] sm:$0xff] }
 0x908   : > { %6836 = vmatprep.subr.bf16.mxu0 %v6835_v22  ;;  %v3972_v23 = vand.u32 4294901760, %v8194_v52  ;;  %v8664_v63 = vand.u32 4294901760, %v8253_v8 }
 0x90a   : > { %v4072_v43 = vsub.f32 %v8253_v8, %v8664_v63  ;;  %v8321_v13 = vsub.f32 %v8194_v52, %v3972_v23  ;;  %v8338_v52 = vsub.f32 %v8213_v32, %v3975_v12 }
 0x90b   : > { %6838 = vmatpush3.bf16.msra.mxu0 %v6835_v22  ;;  %v3969_v22 = vand.u32 4294901760, %v8189_v50 }
 0x90c   : > { %6840 = vmatprep.subr.bf16.mxu0 %v8092_v14  ;;  %8729 = vst [vmem:[#allocation14_spill] sm:$0xff] %v8321_v13  ;;  %8730 = vst [vmem:[#allocation15_spill] sm:$0xff] %v8338_v52 }
 0x90d   : > { %v8204_v42 = vpack.c.bf16 %v3972_v23, %v3969_v22  ;;  %v8316_v56 = vsub.f32 %v8189_v50, %v3969_v22  ;;  %v8343_v23 = vsub.f32 %v8218_v36, %v3978_v37  ;;  %v8359_v37 = vpack.c.bf16 %v8208_v5, %v8206_v31 }
 0x90e   : > { %6174 = vmatmul.mubr.f32.vlgmr.msra.gmra.mrb[4].mxu0 %v3404_v4 }
 0x90f   : > { %6842 = vmatpush3.bf16.msra.mxu0 %v8092_v14  ;;  %6184 = vmatprep.mubr.f32.mxu0 %v3394_v54  ;;  %v8132_v14 = vpack.c.bf16 %v3942_v47, %v3939_v17  ;;  %v8246_v54 = vpack.c.bf16 %v4045_v45, %v4038_v40  ;;  %v4073_v17 = vand.u32 4294901760, %v4072_v43  ;;  %v8663_v47 = vand.u32 4294901760, %v8267_v51  ;;  %8728 = vst [vmem:[#allocation19_spill] sm:$0xff] %v8316_v56 }
 0x910   : > { %6844 = vmatprep.subr.bf16.mxu0 %v8094_v39  ;;  %v4093_v45 = vsub.f32 %v8284_v24, %v8661_v9  ;;  %8731 = vst [vmem:[#allocation13_spill] sm:$0xff] %v8343_v23 }
 0x912   : > { %v4094_v49 = vand.u32 4294901760, %v4093_v45  ;;  %v8654_v45 = vand.u32 4294901760, %v8343_v23 }
 0x913   : > { %6846 = vmatpush3.bf16.msra.mxu0 %v8094_v39  ;;  %v5276_v39 = vld [vmem:[%s8610_s11 + $0xa0] sm:$0xff] }
 0x914   : > { %6848 = vmatprep.subr.bf16.mxu0 %v8122_v11  ;;  %v3945_v16 = vand.u32 4294901760, %v5276_v39  ;;  %v4142_v32 = vsub.f32 %v8343_v23, %v8654_v45 }
 0x916   : > { %6185 = vmatmul.mubr.f32.vlgmr.msra.gmra.mrb[4].mxu0 %v3404_v4  ;;  %v8142_v46 = vpack.c.bf16 %v3948_v61, %v3945_v16  ;;  %v8666_v4 = vand.u32 4294901760, %v8240_v35  ;;  %v8251_v10 = vsub.f32 %v5276_v39, %v3945_v16  ;;  %v8662_v39 = vand.u32 4294901760, %v8269_v48 }
 0x917   : > { %6850 = vmatpush3.bf16.msra.mxu0 %v8122_v11  ;;  %v4079_v16 = vsub.f32 %v8267_v51, %v8663_v47 }
 0x918   : > { %6852 = vmatprep.subr.bf16.mxu0 %v8132_v14  ;;  %v4058_v53 = vsub.f32 %v8240_v35, %v8666_v4  ;;  %v8665_v62 = vand.u32 4294901760, %v8251_v10  ;;  %v4086_v61 = vsub.f32 %v8269_v48, %v8662_v39 }
 0x919   : > { %v4080_v7 = vand.u32 4294901760, %v4079_v16 }
 0x91a   : > { %v4059_v59 = vand.u32 4294901760, %v4058_v53  ;;  %v4065_v0 = vsub.f32 %v8251_v10, %v8665_v62  ;;  %v4087_v19 = vand.u32 4294901760, %v4086_v61  ;;  %v8658_v53 = vand.u32 4294901760, %v8300_v25 }
 0x91b   : > { %6854 = vmatpush3.bf16.msra.mxu0 %v8132_v14 }
 0x91c   : > { %6856 = vmatprep.subr.bf16.mxu0 %v8142_v46  ;;  %v8271_v21 = vpack.c.bf16 %v4059_v59, %v4052_v60  ;;  %v4066_v3 = vand.u32 4294901760, %v4065_v0  ;;  %v8291_v40 = vpack.c.bf16 %v4087_v19, %v4080_v7  ;;  %v4101_v60 = vand.u32 4294901760, %v4100_v30 }
 0x91d   : > { %v4107_v59 = vsub.f32 %v8297_v41, %v8659_v55  ;;  %v4114_v20 = vsub.f32 %v8300_v25, %v8658_v53  ;;  %v8655_v19 = vand.u32 4294901760, %v8338_v52 }
 0x91e   : > { %v8275_v28 = vpack.c.bf16 %v4073_v17, %v4066_v3  ;;  %v8323_v15 = vpack.c.bf16 %v4101_v60, %v4094_v49  ;;  %v8657_v3 = vand.u32 4294901760, %v8316_v56  ;;  %v8656_v17 = vand.u32 4294901760, %v8321_v13 }
 0x91f   : > { %6858 = vmatpush3.bf16.msra.mxu0 %v8142_v46  ;;  %v4108_v0 = vand.u32 4294901760, %v4107_v59  ;;  %v4115_v43 = vand.u32 4294901760, %v4114_v20  ;;  %v4135_v49 = vsub.f32 %v8338_v52, %v8655_v19  ;;  %v4143_v60 = vand.u32 4294901760, %v4142_v32 }
 0x920   : > { %6860 = vmatprep.subr.bf16.mxu0 %v8152_v33  ;;  %v4121_v50 = vsub.f32 %v8316_v56, %v8657_v3  ;;  %v4128_v22 = vsub.f32 %v8321_v13, %v8656_v17  ;;  %v8363_v59 = vpack.c.bf16 %v8240_v35, %v8238_v29  ;;  %v8367_v20 = vpack.c.bf16 %v8253_v8, %v8251_v10 }
 0x921   : > { %v8327_v16 = vpack.c.bf16 %v4115_v43, %v4108_v0  ;;  %v4136_v12 = vand.u32 4294901760, %v4135_v49  ;;  %v8371_v0 = vpack.c.bf16 %v8269_v48, %v8267_v51  ;;  %v8375_v43 = vpack.c.bf16 %v8287_v27, %v8284_v24 }
 0x922   : > { %v4122_v61 = vand.u32 4294901760, %v4121_v50  ;;  %v4129_v7 = vand.u32 4294901760, %v4128_v22  ;;  %v8379_v50 = vpack.c.bf16 %v8300_v25, %v8297_v41  ;;  %v8383_v22 = vpack.c.bf16 %v8321_v13, %v8316_v56 }
 0x923   : > { %6862 = vmatpush3.bf16.msra.mxu0 %v8152_v33  ;;  %v8355_v36 = vpack.c.bf16 %v4143_v60, %v4136_v12 }
 0x924   : > { %6864 = vmatprep.subr.bf16.mxu0 %v8168_v57  ;;  %v8347_v30 = vpack.c.bf16 %v4129_v7, %v4122_v61  ;;  %v8387_v61 = vpack.c.bf16 %v8343_v23, %v8338_v52  ;;  %v5271_v7 = vld [vmem:[%s8609_s10 + $0x1] ss:$0 sm:$0xff] }
 0x927   : > { %6866 = vmatpush3.bf16.msra.mxu0 %v8168_v57 }
 0x928   : > { %6868 = vmatprep.subr.bf16.mxu0 %v8184_v6 }
 0x92b   : > { %6870 = vmatpush3.bf16.msra.mxu0 %v8184_v6 }
 0x92c   : > { %6872 = vmatprep.subr.bf16.mxu0 %v8204_v42 }
 0x92f   : > { %6874 = vmatpush3.bf16.msra.mxu0 %v8204_v42 }
 0x930   : > { %6876 = vmatprep.subr.bf16.mxu0 %v8230_v44 }
 0x933   : > { %6878 = vmatpush3.bf16.msra.mxu0 %v8230_v44 }
 0x934   : > { %6880 = vmatprep.subr.bf16.mxu0 %v8246_v54 }
 0x9e9   : > { %v6186_v49 = vpop.f32.mrb[4].mxu0 }
 0x9ea   : > { %v7097_v32 = vadd.f32 %v6186_v49, %v5271_v7  ;;  %v3843_v12 = vpop.f32.mrb[5].mxu0 }
 0x9eb   : > { %v7098_v60 = vadd.f32 %v5271_v7, %v3843_v12 }
 0x9ec   : > { %v3856_v45 = vmul.f32 0.70710677, %v7097_v32 }
 0x9ed   : > { %v3855_v19 = vmul.f32 0.70710677, %v7098_v60 }
 0x9ee   : > { %v3862_v17 = vand.u32 2147483647, %v3856_v45  ;;  %vm3858_vm13 = vcmp.ge.f32.partialorder %v3856_v45, 0.0 }
 0x9ef   : > { %v3861_v3 = vand.u32 2147483647, %v3855_v19  ;;  %vm3857_vm14 = vcmp.ge.f32.partialorder %v3855_v19, 0.0 }
 0x9f0   : > { %v3864_v53 = vmul.f32 0.3275911, %v3862_v17  ;;  %v3890_v39 = vsub.f32 0.0, %v3862_v17 }
 0x9f1   : > { %v3863_v55 = vmul.f32 0.3275911, %v3861_v3  ;;  %v3889_v47 = vsub.f32 0.0, %v3861_v3 }
 0x9f2   : > { %v3866_v26 = vadd.f32 1.0, %v3864_v53  ;;  %v3892_v62 = vmul.f32 %v3890_v39, %v3862_v17 }
 0x9f3   : > { %v3865_v9 = vadd.f32 1.0, %v3863_v55  ;;  %v3891_v38 = vmul.f32 %v3889_v47, %v3861_v3 }
 0x9f4   : > { %7238 = vrcp.f32 %v3866_v26  ;;  %v3895_v7 = vmul.f32 1.442695, %v3892_v62 }
 0x9f5   : > { %7240 = vrcp.f32 %v3865_v9  ;;  %v3893_v18 = vmul.f32 1.442695, %v3891_v38 }
 0x9f6   : > { %7242 = vpow2.f32 %v3895_v7 }
 0x9f7   : > { %7244 = vpow2.f32 %v3893_v18 }
 0x9fe   : > { %v7239_v63 = vpop.eup %7238 }
 0x9ff   : > { %v7241_v4 = vpop.eup %7240  ;;  %v3872_v1 = vmul.f32 1.0614054, %v7239_v63 }
 0xa00   : > { %v3871_v49 = vmul.f32 1.0614054, %v7241_v4  ;;  %v7243_v3 = vpop.eup %7242 }
 0xa01   : > { %v3874_v58 = vadd.f32 -1.4531521, %v3872_v1  ;;  %v7245_v62 = vpop.eup %7244 }
 0xa02   : > { %v3873_v12 = vadd.f32 -1.4531521, %v3871_v49  ;;  %v3859_v49 = vsel %vm3857_vm14, 1.0, %v8694_v2 }
 0xa03   : > { %v3876_v34 = vmul.f32 %v7239_v63, %v3874_v58 }
 0xa04   : > { %v3875_v23 = vmul.f32 %v7241_v4, %v3873_v12  ;;  %v3854_v12 = vmul.f32 0.5, %v7097_v32 }
 0xa05   : > { %v3878_v52 = vadd.f32 1.4214138, %v3876_v34 }
 0xa06   : > { %v3877_v53 = vadd.f32 1.4214138, %v3875_v23  ;;  %v3860_v23 = vsel %vm3858_vm13, 1.0, %v8694_v2 }
 0xa07   : > { %v3880_v55 = vmul.f32 %v7239_v63, %v3878_v52 }
 0xa08   : > { %v3879_v9 = vmul.f32 %v7241_v4, %v3877_v53 }
 0xa09   : > { %v3882_v26 = vadd.f32 -0.28449672, %v3880_v55 }
 0xa0a   : > { %v3881_v13 = vadd.f32 -0.28449672, %v3879_v9 }
 0xa0b   : > { %v3884_v56 = vmul.f32 %v7239_v63, %v3882_v26 }
 0xa0c   : > { %v3883_v39 = vmul.f32 %v7241_v4, %v3881_v13 }
 0xa0d   : > { %v3886_v17 = vadd.f32 0.2548296, %v3884_v56  ;;  %v3853_v56 = vmul.f32 0.5, %v7098_v60 }
 0xa0e   : > { %v3885_v25 = vadd.f32 0.2548296, %v3883_v39 }
 0xa0f   : > { %v3888_v47 = vmul.f32 %v7239_v63, %v3886_v17 }
 0xa10   : > { %v3887_v1 = vmul.f32 %v7241_v4, %v3885_v25 }
 0xa11   : > { %v3898_v58 = vmul.f32 %v7243_v3, %v3888_v47 }
 0xa12   : > { %v3897_v38 = vmul.f32 %v7245_v62, %v3887_v1 }
 0xa13   : > { %v3900_v34 = vsub.f32 1.0, %v3898_v58 }
 0xa14   : > { %v3899_v52 = vsub.f32 1.0, %v3897_v38 }
 0xa15   : > { %v3902_v18 = vmul.f32 %v3900_v34, %v3860_v23 }
 0xa16   : > { %v3901_v7 = vmul.f32 %v3899_v52, %v3859_v49 }
 0xa17   : > { %v3904_v13 = vadd.f32 1.0, %v3902_v18 }
 0xa18   : > { %v3903_v53 = vadd.f32 1.0, %v3901_v7 }
 0xa19   : > { %v3906_v63 = vmul.f32 %v3904_v13, %v3854_v12 }
 0xa1a   : > { %v3905_v55 = vmul.f32 %v3903_v53, %v3853_v56 }
 0xa1b   : > { %v8394_v4 = vand.u32 4294901760, %v3906_v63 }
 0xa1c   : > { %v8396_v25 = vand.u32 4294901760, %v3905_v55 }
 0xa1d   : > { %v8399_v19 = vsub.f32 %v3906_v63, %v8394_v4 }
 0xa1e   : > { %v4014_v45 = vsub.f32 %v3905_v55, %v8396_v25 }
 0xa1f   : > { %v4025_v9 = vand.u32 4294901760, %v8399_v19 }
 0xa20   : > { %v4015_v26 = vand.u32 4294901760, %v4014_v45 }
 0xa21   : > { %v4026_v2 = vsub.f32 %v8399_v19, %v4025_v9 }
 0xa22   : > { %v4016_v32 = vsub.f32 %v4014_v45, %v4015_v26 }
 0xa23   : > { %v4027_v39 = vand.u32 4294901760, %v4026_v2 }
 0xa24   : > { %v4017_v60 = vand.u32 4294901760, %v4016_v32  ;;  %v5289_v32 = vld [vmem:[%s8611_s12 + $0x1] ss:$0 sm:$0xff] }
 0xa26   : > { %6219 = vmatprep.mubr.f32.mxu0 %v4017_v60 }
 0xa27   : > { %6220 = vmatmul.mubr.f32.vlgmr.msra.gmra.mrb[6].mxu0 %v4027_v39  ;;  %v5291_v39 = vld [vmem:[%s8612_s13 + $0x1] ss:$0 sm:$0xff] }
 0xa28   : > { %6882 = vmatpush3.bf16.msra.mxu0 %v8246_v54  ;;  %6254 = vmatprep.mubr.f32.mxu0 %v8396_v25  ;;  %v8732_v54 = vand.u32 4294901760, %v8206_v31  ;;  %v8736_v31 = vand.u32 4294901760, %v8251_v10  ;;  %v8742_v10 = vand.u32 4294901760, %v8297_v41  ;;  %v4631_v41 = vld [vmem:[%s8613_s14 + $0x18] sm:$0xff] }
 0xa29   : > { %6884 = vmatprep.subr.bf16.mxu0 %v8271_v21  ;;  %v4648_v62 = vand.u32 4294901760, %v4631_v41 }
 0xa2b   : > { %v4750_v49 = vsub.f32 %v4631_v41, %v4648_v62 }
 0xa2c   : > { %6886 = vmatpush3.bf16.msra.mxu0 %v8271_v21  ;;  %v8733_v21 = vand.u32 4294901760, %v8208_v5  ;;  %v8737_v5 = vand.u32 4294901760, %v8253_v8  ;;  %v8743_v8 = vld [vmem:[#allocation18_spill] sm:$0xff] }
 0xa2d   : > { %6888 = vmatprep.subr.bf16.mxu0 %v8275_v28  ;;  %v4751_v56 = vand.u32 4294901760, %v4750_v49 }
 0xa2f   : > { %v4752_v55 = vsub.f32 %v4750_v49, %v4751_v56 }
 0xa30   : > { %6890 = vmatpush3.bf16.msra.mxu0 %v8275_v28  ;;  %v6975_v28 = vpack.c.bf16 %v8733_v21, %v8732_v54 }
 0xa31   : > { %6892 = vmatprep.subr.bf16.mxu0 %v8291_v40 }
 0xa34   : > { %6894 = vmatpush3.bf16.msra.mxu0 %v8291_v40  ;;  %v8734_v40 = vand.u32 4294901760, %v8238_v29  ;;  %v8739_v29 = vand.u32 4294901760, %v8269_v48  ;;  %v8747_v48 = vld [vmem:[#allocation14_spill] sm:$0xff] }
 0xa35   : > { %6896 = vmatprep.subr.bf16.mxu0 %v8323_v15 }
 0xa38   : > { %6898 = vmatpush3.bf16.msra.mxu0 %v8323_v15  ;;  %v8735_v15 = vand.u32 4294901760, %v8240_v35 }
 0xa39   : > { %6900 = vmatprep.subr.bf16.mxu0 %v8327_v16 }
 0xa3c   : > { %6902 = vmatpush3.bf16.msra.mxu0 %v8327_v16  ;;  %v6979_v16 = vpack.c.bf16 %v8735_v15, %v8734_v40 }
 0xa3d   : > { %6904 = vmatprep.subr.bf16.mxu0 %v8347_v30 }
 0xa40   : > { %6906 = vmatpush3.bf16.msra.mxu0 %v8347_v30  ;;  %v6983_v30 = vpack.c.bf16 %v8737_v5, %v8736_v31  ;;  %v8754_v5 = vld [vmem:[#allocation17_spill] sm:$0xff] }
 0xa41   : > { %6908 = vmatprep.subr.bf16.mxu0 %v8355_v36 }
 0xa44   : > { %6910 = vmatpush3.bf16.msra.mxu0 %v8355_v36  ;;  %v8738_v36 = vand.u32 4294901760, %v8267_v51  ;;  %v8745_v51 = vld [vmem:[#allocation19_spill] sm:$0xff] }
 0xa45   : > { %6912 = vmatprep.subr.bf16.mxu0 %v8359_v37 }
 0xa46   : > { %v6987_v35 = vpack.c.bf16 %v8739_v29, %v8738_v36 }
 0xa47   : > { %6255 = vmatmul.mubr.f32.vlgmr.msra.gmra.mrb[6].mxu0 %v8394_v4 }
 0xa48   : > { %6914 = vmatpush3.bf16.msra.mxu0 %v8359_v37  ;;  %6289 = vmatprep.mubr.f32.mxu0 %v4014_v45  ;;  %v8740_v37 = vand.u32 4294901760, %v8284_v24  ;;  %v8749_v24 = vld [vmem:[#allocation15_spill] sm:$0xff] }
 0xa49   : > { %6916 = vmatprep.subr.bf16.mxu0 %v8363_v59  ;;  %v8750_v17 = vand.u32 4294901760, %v8749_v24 }
 0xa4c   : > { %6918 = vmatpush3.bf16.msra.mxu0 %v8363_v59  ;;  %v8741_v59 = vand.u32 4294901760, %v8287_v27  ;;  %v8751_v27 = vld [vmem:[#allocation13_spill] sm:$0xff] }
 0xa4d   : > { %6920 = vmatprep.subr.bf16.mxu0 %v8367_v20  ;;  %v8752_v47 = vand.u32 4294901760, %v8751_v27 }
 0xa4f   : > { %v7003_v3 = vpack.c.bf16 %v8752_v47, %v8750_v17 }
 0xa50   : > { %6922 = vmatpush3.bf16.msra.mxu0 %v8367_v20  ;;  %v6991_v20 = vpack.c.bf16 %v8741_v59, %v8740_v37 }
 0xa51   : > { %6924 = vmatprep.subr.bf16.mxu0 %v8371_v0 }
 0xa54   : > { %6926 = vmatpush3.bf16.msra.mxu0 %v8371_v0  ;;  %v8744_v0 = vand.u32 4294901760, %v8743_v8 }
 0xa55   : > { %6928 = vmatprep.subr.bf16.mxu0 %v8375_v43 }
 0xa58   : > { %6930 = vmatpush3.bf16.msra.mxu0 %v8375_v43  ;;  %v6995_v43 = vpack.c.bf16 %v8744_v0, %v8742_v10 }
 0xa59   : > { %6932 = vmatprep.subr.bf16.mxu0 %v8379_v50 }
 0xa5c   : > { %6934 = vmatpush3.bf16.msra.mxu0 %v8379_v50  ;;  %v8746_v50 = vand.u32 4294901760, %v8745_v51 }
 0xa5d   : > { %6936 = vmatprep.subr.bf16.mxu0 %v8383_v22 }
 0xa60   : > { %6938 = vmatpush3.bf16.msra.mxu0 %v8383_v22  ;;  %v8748_v22 = vand.u32 4294901760, %v8747_v48 }
 0xa61   : > { %6940 = vmatprep.subr.bf16.mxu0 %v8387_v61 }
 0xa64   : > { %6942 = vmatpush3.bf16.msra.mxu0 %v8387_v61  ;;  %v6999_v61 = vpack.c.bf16 %v8748_v22, %v8746_v50 }
 0xa65   : > { %6944 = vmatprep.subr.bf16.mxu0 %v8122_v11 }
 0xa67   : > { %6290 = vmatmul.mubr.f32.vlgmr.msra.gmra.mrb[6].mxu0 %v8399_v19 }
 0xa68   : > { %6946 = vmatpush3.bf16.msra.mxu0 %v8122_v11  ;;  %6324 = vmatprep.mubr.f32.mxu0 %v4015_v26 }
 0xa69   : > { %6948 = vmatprep.subr.bf16.mxu0 %v8132_v14 }
 0xa6c   : > { %6950 = vmatpush3.bf16.msra.mxu0 %v8132_v14 }
 0xa6d   : > { %6952 = vmatprep.subr.bf16.mxu0 %v8142_v46 }
 0xa70   : > { %6954 = vmatpush3.bf16.msra.mxu0 %v8142_v46 }
 0xa71   : > { %6956 = vmatprep.subr.bf16.mxu0 %v8152_v33 }
 0xa74   : > { %6958 = vmatpush3.bf16.msra.mxu0 %v8152_v33 }
 0xa75   : > { %6960 = vmatprep.subr.bf16.mxu0 %v8168_v57 }
 0xa78   : > { %6962 = vmatpush3.bf16.msra.mxu0 %v8168_v57 }
 0xa79   : > { %6964 = vmatprep.subr.bf16.mxu0 %v8184_v6 }
 0xa7c   : > { %6966 = vmatpush3.bf16.msra.mxu0 %v8184_v6 }
 0xa7d   : > { %6968 = vmatprep.subr.bf16.mxu0 %v8204_v42 }
 0xa80   : > { %6970 = vmatpush3.bf16.msra.mxu0 %v8204_v42 }
 0xa81   : > { %6972 = vmatprep.subr.bf16.mxu0 %v8230_v44 }
 0xa84   : > { %6974 = vmatpush3.bf16.msra.mxu0 %v8230_v44 }
 0xa85   : > { %6976 = vmatprep.subr.bf16.mxu0 %v6975_v28 }
 0xa87   : > { %6325 = vmatmul.mubr.f32.vlgmr.msra.gmra.mrb[6].mxu0 %v4025_v9 }
 0xa88   : > { %6978 = vmatpush3.bf16.msra.mxu0 %v6975_v28  ;;  %6359 = vmatprep.mubr.f32.mxu0 %v8396_v25 }
 0xa89   : > { %6980 = vmatprep.subr.bf16.mxu0 %v6979_v16 }
 0xa8c   : > { %6982 = vmatpush3.bf16.msra.mxu0 %v6979_v16  ;;  %v8753_v16 = vld [vmem:[#allocation16_spill] sm:$0xff] }
 0xa8d   : > { %6984 = vmatprep.subr.bf16.mxu0 %v6983_v30 }
 0xa90   : > { %6986 = vmatpush3.bf16.msra.mxu0 %v6983_v30 }
 0xa91   : > { %6988 = vmatprep.subr.bf16.mxu0 %v6987_v35 }
 0xa94   : > { %6990 = vmatpush3.bf16.msra.mxu0 %v6987_v35 }
 0xa95   : > { %6992 = vmatprep.subr.bf16.mxu0 %v6991_v20 }
 0xa98   : > { %6994 = vmatpush3.bf16.msra.mxu0 %v6991_v20 }
 0xa99   : > { %6996 = vmatprep.subr.bf16.mxu0 %v6995_v43 }
 0xa9c   : > { %6998 = vmatpush3.bf16.msra.mxu0 %v6995_v43 }
 0xa9d   : > { %7000 = vmatprep.subr.bf16.mxu0 %v6999_v61 }
 0xaa0   : > { %7002 = vmatpush3.bf16.msra.mxu0 %v6999_v61 }
 0xaa1   : > { %7004 = vmatprep.subr.bf16.mxu0 %v7003_v3 }
 0xaa4   : > { %7006 = vmatpush3.bf16.msra.mxu0 %v7003_v3 }
 0xaa5   : > { %7008 = vmatprep.subr.bf16.mxu0 %v8122_v11 }
 0xaa7   : > { %6360 = vmatmul.mubr.f32.vlgmr.msra.gmra.mrb[6].mxu0 %v8394_v4 }
 0xaa8   : > { %7010 = vmatpush3.bf16.msra.mxu0 %v8122_v11  ;;  %6394 = vmatprep.mubr.f32.mxu0 %v8396_v25  ;;  %v4628_v11 = vld [vmem:[%s8613_s14] sm:$0xff]  ;;  %v4753_v25 = vand.u32 4294901760, %v4752_v55 }
 0xaa9   : > { %7012 = vmatprep.subr.bf16.mxu0 %v8132_v14 }
 0xaac   : > { %7014 = vmatpush3.bf16.msra.mxu0 %v8132_v14  ;;  %v4629_v14 = vld [vmem:[%s8613_s14 + $0x8] sm:$0xff] }
 0xaad   : > { %7016 = vmatprep.subr.bf16.mxu0 %v8142_v46 }
 0xab0   : > { %7018 = vmatpush3.bf16.msra.mxu0 %v8142_v46  ;;  %v4639_v46 = vand.u32 4294901760, %v4628_v11 }
 0xab1   : > { %7020 = vmatprep.subr.bf16.mxu0 %v8152_v33 }
 0xab4   : > { %7022 = vmatpush3.bf16.msra.mxu0 %v8152_v33  ;;  %v4642_v33 = vand.u32 4294901760, %v4629_v14 }
 0xab5   : > { %7024 = vmatprep.subr.bf16.mxu0 %v8168_v57 }
 0xab8   : > { %7026 = vmatpush3.bf16.msra.mxu0 %v8168_v57  ;;  %v8516_v57 = vpack.c.bf16 %v4642_v33, %v4639_v46 }
 0xab9   : > { %7028 = vmatprep.subr.bf16.mxu0 %v8184_v6 }
 0xaba   : > { %7040 = vmatprep.subr.bf16.mxu1 %v8516_v57 }
 0xabb   : > { %7042 = vmatpush3.bf16.msra.mxu1 %v8516_v57 }
 0xabc   : > { %7030 = vmatpush3.bf16.msra.mxu0 %v8184_v6  ;;  %v4729_v6 = vsub.f32 %v4628_v11, %v4639_v46 }
 0xabd   : > { %7032 = vmatprep.subr.bf16.mxu0 %v8204_v42 }
 0xabe   : > { %v4730_v58 = vand.u32 4294901760, %v4729_v6 }
 0xac0   : > { %7034 = vmatpush3.bf16.msra.mxu0 %v8204_v42  ;;  %v4736_v42 = vsub.f32 %v4629_v14, %v4642_v33  ;;  %v4731_v23 = vsub.f32 %v4729_v6, %v4730_v58 }
 0xac1   : > { %7036 = vmatprep.subr.bf16.mxu0 %v8230_v44 }
 0xac2   : > { %v4737_v38 = vand.u32 4294901760, %v4736_v42  ;;  %v4732_v7 = vand.u32 4294901760, %v4731_v23  ;;  %v7055_v45 = vpack.c.bf16 %v4736_v42, %v4729_v6 }
 0xac4   : > { %7038 = vmatpush3.bf16.msra.mxu0 %v8230_v44  ;;  %v4630_v44 = vld [vmem:[%s8613_s14 + $0x10] sm:$0xff]  ;;  %v4738_v52 = vsub.f32 %v4736_v42, %v4737_v38  ;;  %v7071_v26 = vpack.c.bf16 %v4737_v38, %v4730_v58 }
 0xac5   : > { %v4645_v1 = vand.u32 4294901760, %v4630_v44 }
 0xac6   : > { %v4739_v12 = vand.u32 4294901760, %v4738_v52 }
 0xac7   : > { %6395 = vmatmul.mubr.f32.vlgmr.msra.gmra.mrb[6].mxu0 %v8394_v4  ;;  %v8526_v34 = vpack.c.bf16 %v4648_v62, %v4645_v1  ;;  %v4743_v18 = vsub.f32 %v4630_v44, %v4645_v1 }
 0xac8   : > { %v7047_v53 = vpack.c.bf16 %v4739_v12, %v4732_v7 }
 0xac9   : > { %7044 = vmatprep.subr.bf16.mxu1 %v8526_v34  ;;  %v4744_v13 = vand.u32 4294901760, %v4743_v18  ;;  %v7059_v9 = vpack.c.bf16 %v4750_v49, %v4743_v18 }
 0xaca   : > { %7046 = vmatpush3.bf16.msra.mxu1 %v8526_v34 }
 0xacb   : > { %v4745_v63 = vsub.f32 %v4743_v18, %v4744_v13  ;;  %7048 = vmatprep.subr.bf16.mxu1 %v7047_v53  ;;  %v7075_v2 = vpack.c.bf16 %v4751_v56, %v4744_v13 }
 0xacd   : > { %v4746_v4 = vand.u32 4294901760, %v4745_v63 }
 0xacf   : > { %v7051_v19 = vpack.c.bf16 %v4753_v25, %v4746_v4 }
 0xb9a   : > { %v6396_v60 = vpop.f32.mrb[6].mxu0 }
 0xb9b   : > { %v7099_v54 = vadd.f32 %v6396_v60, %v5289_v32  ;;  %v4606_v21 = vpop.f32.mrb[7].mxu0 }
 0xb9c   : > { %v7100_v28 = vadd.f32 %v5289_v32, %v4606_v21 }
 0xb9d   : > { %v4625_v40 = vmul.f32 %v7099_v54, %v5291_v39 }
 0xb9e   : > { %v4624_v15 = vmul.f32 %v7100_v28, %v5291_v39 }
 0xb9f   : > { %v4627_v31 = vadd.f32 %v4625_v40, %v8753_v16 }
 0xba0   : > { %v4626_v30 = vadd.f32 %v4624_v15, %v8754_v5 }
 0xba1   : > { %v4636_v36 = vsel %vm503_vm7, %v4627_v31, 0 }
 0xba2   : > { %v4717_v29 = vand.u32 4294901760, %v4636_v36  ;;  %v4633_v35 = vsel %vm503_vm7, %v4626_v30, 0 }
 0xba3   : > { %v4707_v37 = vand.u32 4294901760, %v4633_v35 }
 0xba4   : > { %v4718_v59 = vsub.f32 %v4636_v36, %v4717_v29 }
 0xba5   : > { %v4708_v20 = vsub.f32 %v4633_v35, %v4707_v37 }
 0xba6   : > { %v4719_v10 = vand.u32 4294901760, %v4718_v59 }
 0xba7   : > { %v4709_v8 = vand.u32 4294901760, %v4708_v20 }
 0xba8   : > { %v4720_v0 = vsub.f32 %v4718_v59, %v4719_v10 }
 0xba9   : > { %v4710_v43 = vsub.f32 %v4708_v20, %v4709_v8 }
 0xbaa   : > { %v4721_v50 = vand.u32 4294901760, %v4720_v0 }
 0xbab   : > { %v4711_v51 = vand.u32 4294901760, %v4710_v43 }
 0xbad   : > { %6405 = vmatprep.mubr.f32.mxu1 %v4711_v51 }
 0xbae   : > { %6406 = vmatmul.mubr.f32.vlgmr.msra.gmra.mrb[6].mxu1 %v4721_v50 }
 0xbaf   : > { %7050 = vmatpush3.bf16.msra.mxu1 %v7047_v53  ;;  %6416 = vmatprep.mubr.f32.mxu1 %v4707_v37 }
 0xbb0   : > { %7052 = vmatprep.subr.bf16.mxu1 %v7051_v19 }
 0xbb3   : > { %7054 = vmatpush3.bf16.msra.mxu1 %v7051_v19 }
 0xbb4   : > { %7056 = vmatprep.subr.bf16.mxu1 %v7055_v45 }
 0xbb6   : > { %6417 = vmatmul.mubr.f32.vlgmr.msra.gmra.mrb[6].mxu1 %v4717_v29 }
 0xbb7   : > { %7058 = vmatpush3.bf16.msra.mxu1 %v7055_v45  ;;  %6427 = vmatprep.mubr.f32.mxu1 %v4708_v20 }
 0xbb8   : > { %7060 = vmatprep.subr.bf16.mxu1 %v7059_v9 }
 0xbbb   : > { %7062 = vmatpush3.bf16.msra.mxu1 %v7059_v9 }
 0xbbc   : > { %7064 = vmatprep.subr.bf16.mxu1 %v8516_v57 }
 0xbbe   : > { %6428 = vmatmul.mubr.f32.vlgmr.msra.gmra.mrb[6].mxu1 %v4718_v59 }
 0xbbf   : > { %7066 = vmatpush3.bf16.msra.mxu1 %v8516_v57  ;;  %6438 = vmatprep.mubr.f32.mxu1 %v4709_v8 }
 0xbc0   : > { %7068 = vmatprep.subr.bf16.mxu1 %v8526_v34 }
 0xbc3   : > { %7070 = vmatpush3.bf16.msra.mxu1 %v8526_v34 }
 0xbc4   : > { %7072 = vmatprep.subr.bf16.mxu1 %v7071_v26 }
 0xbc6   : > { %6439 = vmatmul.mubr.f32.vlgmr.msra.gmra.mrb[6].mxu1 %v4719_v10 }
 0xbc7   : > { %7074 = vmatpush3.bf16.msra.mxu1 %v7071_v26  ;;  %6449 = vmatprep.mubr.f32.mxu1 %v4707_v37 }
 0xbc8   : > { %7076 = vmatprep.subr.bf16.mxu1 %v7075_v2 }
 0xbcb   : > { %7078 = vmatpush3.bf16.msra.mxu1 %v7075_v2 }
 0xbcc   : > { %7080 = vmatprep.subr.bf16.mxu1 %v8516_v57 }
 0xbce   : > { %6450 = vmatmul.mubr.f32.vlgmr.msra.gmra.mrb[6].mxu1 %v4717_v29 }
 0xbcf   : > { %7082 = vmatpush3.bf16.msra.mxu1 %v8516_v57  ;;  %6460 = vmatprep.mubr.f32.mxu1 %v4707_v37 }
 0xbd0   : > { %7084 = vmatprep.subr.bf16.mxu1 %v8526_v34 }
 0xbd3   : > { %7086 = vmatpush3.bf16.msra.mxu1 %v8526_v34 }
 0xbd6   : > { %6461 = vmatmul.mubr.f32.vlgmr.msra.gmra.mrb[6].mxu1 %v4717_v29 }
 0xca9   : > { %v6462_v48 = vpop.f32.mrb[6].mxu1 }
 0xcaa   : > { %5167 = vst [vmem:[%s487_s17 + $0x8] sm:$0xff] %v6462_v48  ;;  %v5156_v22 = vpop.f32.mrb[7].mxu1 }
 0xcab   : > { %5166 = vst [vmem:[%s487_s17] sm:$0xff] %v5156_v22 }
 0xcac   : > { %7259 = shalt.err (!%p7256_p3)
}
 0xcad   : > { %s7260_s16 = scalar_lea.hbm %s8555_s24, 256  ;;  %s7264_s26 = scalar_lea.hbm %s8614_s15, 512 }
 0xcae   : > { %p7261_p4 = scmp.ne.s32.totalorder %s8555_s24, %s7260_s16  ;;  %p7265_p9 = scmp.lt.u32.totalorder %s8555_s24, %s8614_s15 }
 0xcaf   : > { %p7266_p10 = scmp.lt.u32.totalorder %s7264_s26, %s7260_s16  ;;  %p7268_p12 = scmp.lt.u32.totalorder %s7260_s16, %s8555_s24 }
 0xcb0   : > { %p7262_p7 = pnand %p7261_p4, %p7435_p5 }
 0xcb1   : > { %p7267_p11 = por %p7266_p10, %p7265_p9 }
 0xcb2   : > { %p7263_p8 = pneg %p7262_p7 }
 0xcb3   : > { %p7269_p13 = por %p7268_p12, %p7267_p11 }
 0xcb5   : > { %p7270_p0 = pnand %p7269_p13, %p7263_p8 }
 0xcb7   : > { %7273 = shalt.err (!%p7270_p0)
}
 0xcb8   : > { %s7316_s0 = smov 128   ;;  %s8755_s1 = smov 8  }
 0xcb9   : > { %7169 = dma.vmem_to_hbm [thread:$0]  (%p7435_p5), %s8550_s23, 256, %s8555_s24, %s8557_s30, %s7316_s0, %s7316_s0, %s8755_s1  }
 0xcba PF: > { %p7175_p1 = scmp.ge.s32.totalorder %s7308_s21, 2  ;;  %s5197_s27 = sand.u32 1, %s7296_s18  }
 0xcbb   : > { %s5198_s16 = scalar_lea.sflag [#allocation8], %s5197_s27 }
 0xcbc   : > { %p7172_p2 = pnand %p7175_p1, %p7439_p6 }
 0xcbe   : > { %7291 = dma.done.wait (!%p7172_p2), %s5198_s16, 256  }
 0xcbf   : > { %7293 = vsyncadd (!%p7172_p2), %s5198_s16, 4294967040  ;;  %s8756_s21 = sld [smem:[#allocation11_spill]]  ;;  %s8757_s17 = sld [smem:[#allocation10_spill]] }
 0xcc0   : > { %s8758_s20 = sld [smem:[#allocation12_spill]]  ;;  %s8759_s18 = smov %s7300_s19 }
 0xcc5   : > { %p25_p3 = scmp.ge.s32.totalorder %s8756_s21, 4   ;;  %s8760_s19 = smov %s8757_s17 }
 0xcc7   :  { %27 = sbr.rel (!%p25_p3) target bundleno = 6 (0x6), region = 124 }
 0xcce   :  { %5203 = vsyncpa [#allocation8], 1 }
 0xccf   :  { %5205 = vsyncpa [#allocation8 + $0x1], 1 }

</bundles_post_ra>
